<compile_context>
chip_gen: v7x
topology: tpu7x:2x2x1
jax: 0.10.0
libtpu: 0.0.40
codegen_flags: <defaults>
</compile_context>

<pallas_src>
import jax
import jax.numpy as jnp
from jax.experimental import pallas as pl
from jax.experimental.pallas import tpu as pltpu


def genres_wrapper_kernel(a_ref, m_ref, g_ref, w1_ref, b1_ref, w2_ref, b2_ref,
                          out_ref):
    # x = inputs[0] + g * inputs[1][1]   (g: (1, size) broadcast over rows)
    # Elementwise math in f32 (cheap path on v5e which lacks bf16 VALU).
    x = a_ref[...].astype(jnp.float32) + g_ref[...] * m_ref[...].astype(jnp.float32)
    # encoder: sigmoid(x @ W1 + b1)   -- bf16 operands, f32 accumulation
    h = jax.nn.sigmoid(
        jnp.dot(x.astype(jnp.bfloat16), w1_ref[...],
                preferred_element_type=jnp.float32)
        + b1_ref[...])
    # decoder: h @ W2 + b2            -- bf16 operands, f32 accumulation
    out_ref[...] = (
        jnp.dot(h.astype(jnp.bfloat16), w2_ref[...],
                preferred_element_type=jnp.float32)
        + b2_ref[...]).astype(out_ref.dtype)


def genres_wrapper_chrono(inputs0, inputs1_1, g, w1, b1, w2, b2, *,
                          tb=512, out_dtype=jnp.bfloat16):
    """Fused wrapper + model_pre forward in a single Pallas kernel.

    inputs0, inputs1_1 : (B, size) f32
    g                  : (1, size) f32
    w1 : (size, hidden), b1 : (1, hidden)   (pre-transposed Linear weights)
    w2 : (hidden, size), b2 : (1, size)
    out_dtype          : bf16 by default (mem-bound kernel); pass jnp.float32
                         for full-precision writeback.
    """
    B, size = inputs0.shape
    hidden = w1.shape[1]

    # Batch tile: multiple of 8 sublanes, at most B.
    tb = max(8, min(tb, B))
    tb = (tb // 8) * 8
    n_tiles = pl.cdiv(B, tb)
    Bp = n_tiles * tb
    pad = Bp - B

    # Activations travel over HBM in bf16 (dominant byte traffic), weights too.
    in_dtype = jnp.bfloat16
    a_lo = inputs0.astype(in_dtype)
    m_lo = inputs1_1.astype(in_dtype)
    if pad:
        a_lo = jnp.pad(a_lo, ((0, pad), (0, 0)))
        m_lo = jnp.pad(m_lo, ((0, pad), (0, 0)))
    w1_lo = w1.astype(jnp.bfloat16)
    w2_lo = w2.astype(jnp.bfloat16)

    grid = (n_tiles,)
    batch_spec = pl.BlockSpec((tb, size), lambda i: (i, 0))
    # Constant blocks never change -> single buffer (halves their VMEM cost).
    const = lambda shape: pl.BlockSpec(shape, lambda i: (0, 0),
                                       pipeline_mode=pl.Buffered(1))

    # --- explicit VMEM budget for the big tile -------------------------------
    in_bytes = jnp.dtype(in_dtype).itemsize
    out_bytes = jnp.dtype(out_dtype).itemsize
    pipelined = (2 * 2 * tb * size * in_bytes      # 2 inputs, double-buffered
                 + 2 * tb * size * out_bytes)      # output, double-buffered
    weights = (2 * (size * hidden + hidden * size)           # bf16 W1/W2
               + 4 * (size + hidden + size))                 # f32 g/b1/b2
    vmem_limit = int(1.5 * (pipelined + weights)) + (4 << 20)
    vmem_limit = min(max(vmem_limit, 16 << 20), 64 << 20)

    # --- cost hint (matches new I/O dtypes) ----------------------------------
    flops = 4 * Bp * size * hidden                            # two matmuls
    bytes_accessed = (
        2 * (size * hidden + hidden * size)                   # bf16 weights
        + 4 * (hidden + size + size)                          # f32 biases + g
        + in_bytes * (2 * Bp * size)                          # bf16 inputs
        + out_bytes * (Bp * size))                            # output
    cost = pl.CostEstimate(flops=flops,
                           transcendentals=Bp * hidden,       # sigmoid
                           bytes_accessed=bytes_accessed)

    out = pl.pallas_call(
        genres_wrapper_kernel,
        out_shape=jax.ShapeDtypeStruct((Bp, size), out_dtype),
        grid=grid,
        in_specs=[
            batch_spec,                 # inputs[0]   bf16  (tiled over batch)
            batch_spec,                 # inputs[1][1] bf16 (tiled over batch)
            const((1, size)),           # g    f32          (VMEM-resident)
            const((size, hidden)),      # W1   bf16         (VMEM-resident)
            const((1, hidden)),         # b1   f32
            const((hidden, size)),      # W2   bf16         (VMEM-resident)
            const((1, size)),           # b2   f32
        ],
        out_specs=batch_spec,
        compiler_params=pltpu.CompilerParams(
            dimension_semantics=("parallel",),
            vmem_limit_bytes=vmem_limit),
        cost_estimate=cost,
    )(a_lo, m_lo, g, w1_lo, b1, w2_lo, b2)

    return out[:B] if pad else out


def reference(inputs0, inputs1_1, g, w1, b1, w2, b2):
    """Reference emulating the kernel's bf16 I/O and bf16-operand matmuls."""
    bf = lambda t: t.astype(jnp.bfloat16).astype(jnp.float32)
    x = bf(inputs0) + g * bf(inputs1_1)
    h = jax.nn.sigmoid(bf(x) @ bf(w1) + b1)
    return bf(h) @ bf(w2) + b2


if __name__ == "__main__":
    # 2 grid steps at tb=512 -> exercises the pipeline and both v7x TCs.
    B, size, hidden = 1024, 256, 128

    key = jax.random.PRNGKey(0)
    k0, k1, k2, k3 = jax.random.split(key, 4)

    # inputs[0]: ratings vector; inputs[1][1]: chrono/genres side-input vector
    inputs0 = jax.random.normal(k0, (B, size), dtype=jnp.float32)
    inputs1_1 = jax.random.normal(k1, (B, size), dtype=jnp.float32)

    # g_type == 'unit': g = zeros(1, size) + 0.01
    g = jnp.zeros((1, size), dtype=jnp.float32) + 0.01

    # Deterministic synthetic model_pre parameters (already transposed to (in, out)).
    w1 = jax.random.normal(k2, (size, hidden), dtype=jnp.float32) * 0.05
    b1 = jnp.zeros((1, hidden), dtype=jnp.float32)
    w2 = jax.random.normal(k3, (hidden, size), dtype=jnp.float32) * 0.05
    b2 = jnp.zeros((1, size), dtype=jnp.float32)

    out = genres_wrapper_chrono(inputs0, inputs1_1, g, w1, b1, w2, b2)
    out = jax.block_until_ready(out)

    ref = reference(inputs0, inputs1_1, g, w1, b1, w2, b2)
    assert out.shape == (B, size)
    assert jnp.allclose(out.astype(jnp.float32),
                        ref.astype(jnp.bfloat16).astype(jnp.float32),
                        atol=3e-2, rtol=3e-2), "mismatch vs reference"

    # TODO(synk): g_type == 'genres' path (JSON-driven one-hot scatter) is not
    # implemented; only the 'none'/'fixed'/'one'/'unit' broadcast path is.
    print("KERNEL_OK")
</pallas_src>

<mosaic_0001>
module attributes {stable_mosaic.version = 11 : i64} {
  func.func @genres_wrapper_kernel(%arg0: i32, %arg1: memref<512x256xbf16, #tpu.memory_space<vmem>>, %arg2: memref<512x256xbf16, #tpu.memory_space<vmem>>, %arg3: memref<1x256xf32, #tpu.memory_space<vmem>>, %arg4: memref<256x128xbf16, #tpu.memory_space<vmem>>, %arg5: memref<1x128xf32, #tpu.memory_space<vmem>>, %arg6: memref<128x256xbf16, #tpu.memory_space<vmem>>, %arg7: memref<1x256xf32, #tpu.memory_space<vmem>>, %arg8: memref<512x256xbf16, #tpu.memory_space<vmem>>) attributes {dimension_semantics = [#tpu.dimension_semantics<parallel>], iteration_bounds = array<i64: 2>, scalar_prefetch = 0 : i64, scratch_operands = 0 : i64, tpu.core_type = #tpu.core_type<tc>, window_params = [{transform_indices = @transform_0, window_bounds = array<i64: 512, 256>}, {transform_indices = @transform_1, window_bounds = array<i64: 512, 256>}, {pipeline_mode = #tpu.pipeline_mode<synchronous>, transform_indices = @transform_2, window_bounds = array<i64: 1, 256>}, {pipeline_mode = #tpu.pipeline_mode<synchronous>, transform_indices = @transform_3, window_bounds = array<i64: 256, 128>}, {pipeline_mode = #tpu.pipeline_mode<synchronous>, transform_indices = @transform_4, window_bounds = array<i64: 1, 128>}, {pipeline_mode = #tpu.pipeline_mode<synchronous>, transform_indices = @transform_5, window_bounds = array<i64: 128, 256>}, {pipeline_mode = #tpu.pipeline_mode<synchronous>, transform_indices = @transform_6, window_bounds = array<i64: 1, 256>}, {transform_indices = @transform_7, window_bounds = array<i64: 512, 256>}]} {
    %c0 = arith.constant 0 : index
    %c0_0 = arith.constant 0 : index
    %0 = vector.load %arg1[%c0, %c0_0] : memref<512x256xbf16, #tpu.memory_space<vmem>>, vector<512x256xbf16>
    %1 = arith.extf %0 : vector<512x256xbf16> to vector<512x256xf32>
    %c0_1 = arith.constant 0 : index
    %c0_2 = arith.constant 0 : index
    %2 = vector.load %arg3[%c0_1, %c0_2] : memref<1x256xf32, #tpu.memory_space<vmem>>, vector<1x256xf32>
    %c0_3 = arith.constant 0 : index
    %c0_4 = arith.constant 0 : index
    %3 = vector.load %arg2[%c0_3, %c0_4] : memref<512x256xbf16, #tpu.memory_space<vmem>>, vector<512x256xbf16>
    %4 = arith.extf %3 : vector<512x256xbf16> to vector<512x256xf32>
    %5 = vector.broadcast %2 : vector<1x256xf32> to vector<512x256xf32>
    %6 = arith.mulf %5, %4 : vector<512x256xf32>
    %7 = arith.addf %1, %6 : vector<512x256xf32>
    %8 = arith.truncf %7 : vector<512x256xf32> to vector<512x256xbf16>
    %c0_5 = arith.constant 0 : index
    %c0_6 = arith.constant 0 : index
    %9 = vector.load %arg4[%c0_5, %c0_6] : memref<256x128xbf16, #tpu.memory_space<vmem>>, vector<256x128xbf16>
    %cst = arith.constant dense<0.000000e+00> : vector<512x128xf32>
    %10 = tpu.matmul %8, %9, %cst {dimension_numbers = #tpu.dot_dimension_numbers<[1], [0], [0], [1], [0, 0, 1, 1], [], []>} : vector<512x256xbf16>, vector<256x128xbf16>, vector<512x128xf32> -> vector<512x128xf32>
    %c0_7 = arith.constant 0 : index
    %c0_8 = arith.constant 0 : index
    %11 = vector.load %arg5[%c0_7, %c0_8] : memref<1x128xf32, #tpu.memory_space<vmem>>, vector<1x128xf32>
    %12 = vector.broadcast %11 : vector<1x128xf32> to vector<512x128xf32>
    %13 = arith.addf %10, %12 : vector<512x128xf32>
    %14 = arith.negf %13 : vector<512x128xf32>
    %15 = math.exp %14 : vector<512x128xf32>
    %cst_9 = arith.constant 1.000000e+00 : f32
    %16 = vector.broadcast %cst_9 : f32 to vector<512x128xf32>
    %17 = arith.addf %16, %15 : vector<512x128xf32>
    %18 = arith.divf %16, %17 : vector<512x128xf32>
    %19 = arith.truncf %18 : vector<512x128xf32> to vector<512x128xbf16>
    %c0_10 = arith.constant 0 : index
    %c0_11 = arith.constant 0 : index
    %20 = vector.load %arg6[%c0_10, %c0_11] : memref<128x256xbf16, #tpu.memory_space<vmem>>, vector<128x256xbf16>
    %cst_12 = arith.constant dense<0.000000e+00> : vector<512x256xf32>
    %21 = tpu.matmul %19, %20, %cst_12 {dimension_numbers = #tpu.dot_dimension_numbers<[1], [0], [0], [1], [0, 0, 1, 1], [], []>} : vector<512x128xbf16>, vector<128x256xbf16>, vector<512x256xf32> -> vector<512x256xf32>
    %c0_13 = arith.constant 0 : index
    %c0_14 = arith.constant 0 : index
    %22 = vector.load %arg7[%c0_13, %c0_14] : memref<1x256xf32, #tpu.memory_space<vmem>>, vector<1x256xf32>
    %23 = vector.broadcast %22 : vector<1x256xf32> to vector<512x256xf32>
    %24 = arith.addf %21, %23 : vector<512x256xf32>
    %25 = arith.truncf %24 : vector<512x256xf32> to vector<512x256xbf16>
    %c0_15 = arith.constant 0 : index
    %c0_16 = arith.constant 0 : index
    %26 = vector.load %arg8[%c0_15, %c0_16] : memref<512x256xbf16, #tpu.memory_space<vmem>>, vector<512x256xbf16>
    tpu.vector_store %arg8[%c0_15, %c0_16], %25 {strides = array<i32>} : memref<512x256xbf16, #tpu.memory_space<vmem>>, vector<512x256xbf16>,
    return
  }
  func.func @transform_0(%arg0: i32) -> (i32, i32) {
    %c0_i32 = arith.constant 0 : i32
    %c0_i32_0 = arith.constant 0 : i32
    return %arg0, %c0_i32 : i32, i32
  }
  func.func @transform_1(%arg0: i32) -> (i32, i32) {
    %c0_i32 = arith.constant 0 : i32
    %c0_i32_0 = arith.constant 0 : i32
    return %arg0, %c0_i32 : i32, i32
  }
  func.func @transform_2(%arg0: i32) -> (i32, i32) {
    %c0_i32 = arith.constant 0 : i32
    %c0_i32_0 = arith.constant 0 : i32
    %c0_i32_1 = arith.constant 0 : i32
    return %c0_i32, %c0_i32_0 : i32, i32
  }
  func.func @transform_3(%arg0: i32) -> (i32, i32) {
    %c0_i32 = arith.constant 0 : i32
    %c0_i32_0 = arith.constant 0 : i32
    %c0_i32_1 = arith.constant 0 : i32
    return %c0_i32, %c0_i32_0 : i32, i32
  }
  func.func @transform_4(%arg0: i32) -> (i32, i32) {
    %c0_i32 = arith.constant 0 : i32
    %c0_i32_0 = arith.constant 0 : i32
    %c0_i32_1 = arith.constant 0 : i32
    return %c0_i32, %c0_i32_0 : i32, i32
  }
  func.func @transform_5(%arg0: i32) -> (i32, i32) {
    %c0_i32 = arith.constant 0 : i32
    %c0_i32_0 = arith.constant 0 : i32
    %c0_i32_1 = arith.constant 0 : i32
    return %c0_i32, %c0_i32_0 : i32, i32
  }
  func.func @transform_6(%arg0: i32) -> (i32, i32) {
    %c0_i32 = arith.constant 0 : i32
    %c0_i32_0 = arith.constant 0 : i32
    %c0_i32_1 = arith.constant 0 : i32
    return %c0_i32, %c0_i32_0 : i32, i32
  }
  func.func @transform_7(%arg0: i32) -> (i32, i32) {
    %c0_i32 = arith.constant 0 : i32
    %c0_i32_0 = arith.constant 0 : i32
    return %arg0, %c0_i32 : i32, i32
  }
}

</mosaic_0001>

<bundles_post_ra>
// kernel: tpu_custom_call.1
= control target key start
LH: loop header
LB: loop body
LE: loop exit
PB: predicated region body
PF: predicated region fallthrough
CT: control target
= control target key end

     0   :  { %s4760_s0 = inlined_call_operand.hbm [shape: bf16[1024,256], index: 0, kind: input, shape index: {}]   ;;  %s4761_s1 = inlined_call_operand.hbm [shape: bf16[1024,256], index: 1, kind: input, shape index: {}]   ;;  %s4762_s2 = inlined_call_operand.vmem [shape: f32[1,256], index: 2, kind: input, shape index: {}]   ;;  %s4763_s3 = inlined_call_operand.hbm [shape: bf16[256,128], index: 3, kind: input, shape index: {}]   ;;  %s4764_s4 = inlined_call_operand.vmem [shape: f32[1,128], index: 4, kind: input, shape index: {}]   ;;  %s4765_s5 = inlined_call_operand.hbm [shape: bf16[128,256], index: 5, kind: input, shape index: {}]   ;;  %s4766_s6 = inlined_call_operand.vmem [shape: f32[1,256], index: 6, kind: input, shape index: {}]   ;;  %s4767_s7 = inlined_call_operand.hbm [shape: bf16[1024,256], index: 7, kind: output, shape index: {}]  }
   0x1   :  { %4775 = sst [smem:[#allocation17_spill]] %s4760_s0 }
   0x2   :  { %4776 = sst [smem:[#allocation18_spill]] %s4763_s3 }
   0x3   :  { %4777 = sst [smem:[#allocation19_spill]] %s4765_s5 }
   0x4   :  { %12 = vsyncpa [#allocation3], 0 }
   0x5   :  { %14 = vsyncpa [#allocation3 + $0x1], 0 }
   0x6   :  { %15 = vsyncpa [#allocation6], 0 }
   0x7   :  { %17 = vsyncpa [#allocation6 + $0x1], 0 }
   0x8   :  { %18 = vsyncpa [#allocation9], 0 }
   0x9   :  { %19 = vsyncpa [#allocation4], 0 }
   0xa   :  { %21 = vsyncpa [#allocation4 + $0x1], 0  ;;  %s3847_s24 = smov 0   ;;  %s3849_s25 = smov 0  }
   0xb   :  { %s3851_s26 = smov 0   ;;  %s3853_s27 = smov 0  }
   0xc LB: > { %s3868_s28 = sadd.s32 4294967295, %s3793_s27   ;;  %s2967_s29 = sadd.s32 4294967294, %s3793_s27   ;;  %s3793_s27 = sphi %s3853_s27, %s4803_s27   ;;  %s3789_s26 = sphi %s3851_s26, %s4802_s26   ;;  %s3785_s25 = sphi %s3849_s25, %s4801_s25   ;;  %s3781_s24 = sphi %s3847_s24, %s4800_s24  }
   0xd   : > { %p47_p0 = scmp.ne.s32.totalorder %s3785_s25, %s3781_s24  ;;  %p4768_p1 = scmp.eq.s32.totalorder %s3868_s28, 0 }
   0xe   : > { %p208_p3 = scmp.eq.s32.totalorder %s2967_s29, 1  ;;  %p2968_p5 = scmp.ge.s32.totalorder %s3793_s27, 1 }
   0xf   : > { %p3877_p4 = por %p4768_p1, %p47_p0  ;;  %p215_p7 = scmp.lt.s32.totalorder %s3793_s27, 3 }
  0x10   : > { %p3882_p6 = por %p208_p3, %p47_p0  ;;  %s3795_s10 = smov [#allocation7]  }
  0x11   : > { %s4778_s30 = scalar_select %p3877_p4, 1, 0 }
  0x12   : > { %s4779_s8 = scalar_select %p3882_p6, 1, 0 }
  0x13   : > { %p3887_p8 = pnand %p2968_p5, %p215_p7  ;;  %s230_s11 = sshll.u32 %s3795_s10, 4  ;;  %s3891_s11 = int_to_ptr.vmem [resolvable:$true] %s230_s11 }
  0x14   : > { %s3796_s13 = smov [#allocation8]   ;;  %s4782_s3 = sld [smem:[#allocation18_spill]] }
  0x15   : > { %p3237_p9 = pneg %p3887_p8  ;;  %s246_s14 = sshll.u32 %s3796_s13, 4  ;;  %s3902_s14 = int_to_ptr.vmem [resolvable:$true] %s246_s14 }
  0x17   : > { %p3898_p11 = pnand %p3237_p9, %p4768_p1 }
  0x19   : > { %p3601_p13 = pneg %p3898_p11 }
  0x1a   : > { %s3599_s17 = scalar_lea.hbm %s4782_s3, 2048 }
  0x1b   : > { %p3600_p12 = scmp.ne.s32.totalorder %s4782_s3, %s3599_s17  ;;  %p3606_p5 = scmp.lt.u32.totalorder %s3599_s17, %s4782_s3 }
  0x1d   : > { %p3602_p0 = pnand %p3601_p13, %p3600_p12 }
  0x1f   : > { %p3603_p3 = pneg %p3602_p0 }
  0x21   : > { %p3608_p7 = pnand %p3606_p5, %p3603_p3 }
  0x23   : > { %3611 = shalt.err (!%p3608_p7)
}
  0x24   : > { %s3612_s22 = scalar_lea.vmem %s3891_s11, 2048  ;;  %p3620_p2 = scmp.lt.s32.totalorder %s3891_s11, %s3891_s11 }
  0x25   : > { %p3613_p9 = scmp.ne.s32.totalorder %s3891_s11, %s3612_s22  ;;  %p3621_p12 = scmp.lt.s32.totalorder %s3612_s22, %s3612_s22 }
  0x27   : > { %p3615_p10 = pnand %p3613_p9, %p3601_p13  ;;  %p3622_p0 = por %p3621_p12, %p3620_p2 }
  0x29   : > { %p3616_p1 = pneg %p3615_p10 }
  0x2b   : > { %p3623_p6 = pnand %p3622_p0, %p3616_p1 }
  0x2d   : > { %3626 = shalt.err (!%p3623_p6)
}
  0x2e   : > { %s3797_s23 = smov 64   ;;  %s3798_s29 = smov 4  }
  0x2f   : > { %3240 = dma.hbm_to_vmem [thread:$0]  (!%p3898_p11), %s4782_s3, 2048, %s3891_s11, [#allocation6], %s3797_s23, %s3797_s23, %s3798_s29  }
  0x30   : > { %s4783_s5 = sld [smem:[#allocation19_spill]] }
  0x36   : > { %s3627_s17 = scalar_lea.hbm %s4783_s5, 2048 }
  0x37   : > { %p3628_p2 = scmp.ne.s32.totalorder %s4783_s5, %s3627_s17  ;;  %p3634_p10 = scmp.lt.u32.totalorder %s3627_s17, %s4783_s5 }
  0x39   : > { %p3630_p1 = pnand %p3628_p2, %p3601_p13 }
  0x3b   : > { %p3631_p6 = pneg %p3630_p1 }
  0x3d   : > { %p3636_p3 = pnand %p3634_p10, %p3631_p6 }
  0x3f   : > { %3639 = shalt.err (!%p3636_p3)
}
  0x40   : > { %s3640_s11 = scalar_lea.vmem %s3902_s14, 2048  ;;  %p3648_p12 = scmp.lt.s32.totalorder %s3902_s14, %s3902_s14 }
  0x41   : > { %p3641_p5 = scmp.ne.s32.totalorder %s3902_s14, %s3640_s11  ;;  %p3649_p0 = scmp.lt.s32.totalorder %s3640_s11, %s3640_s11 }
  0x43   : > { %p3643_p7 = pnand %p3641_p5, %p3601_p13  ;;  %p3650_p2 = por %p3649_p0, %p3648_p12 }
  0x45   : > { %p3644_p9 = pneg %p3643_p7 }
  0x47   : > { %p3651_p1 = pnand %p3650_p2, %p3644_p9 }
  0x49   : > { %3654 = shalt.err (!%p3651_p1)
}
  0x4a   : > { %s4769_s22 = smov 128   ;;  %s4771_s23 = smov 8  }
  0x4b   : > { %3243 = dma.hbm_to_vmem [thread:$0]  (!%p3898_p11), %s4783_s5, 2048, %s3902_s14, [#allocation9], %s4769_s22, %s4769_s22, %s4771_s23  }
  0x4c   : > { %s3960_s13 = sadd.s32 1, %s3793_s27   ;;  %s34_s16 = sadd.s32 1, %s3789_s26 }
  0x4d   : > { %s31_s15 = ssub.s32 %s3793_s27, %s3960_s13  ;;  %p41_p6 = scmp.ne.s32.totalorder %s3789_s26, %s3785_s25 }
  0x4e   : > { %p32_p13 = scmp.eq.s32.totalorder %s31_s15, 0  ;;  %p42_p10 = scmp.eq.s32.totalorder %s3793_s27, 0 }
  0x4f   : > { %p4785_p5 = scmp.eq.s32.totalorder %s3868_s28, 1  ;;  %p3257_p9 = scmp.lt.s32.totalorder %s3793_s27, 2 }
  0x50   : > { %s3969_s17 = scalar_select %p32_p13, %s3789_s26, %s34_s16  }
  0x51   : > { %p43_p3 = por %p42_p10, %p41_p6  ;;  %p3973_p7 = por %p4785_p5, %p41_p6 }
  0x52   : > { %4784 = sst [smem:[#allocation16_spill]] %s3969_s17  ;;  %s263_s18 = sand.u32 1, %s3789_s26  }
  0x53   : > { %s4786_s12 = scalar_select %p3973_p7, 1, 0 }
  0x54   : > { %s2972_s19 = sshll.u32 %s263_s18, 9  ;;  %s3154_s14 = sshll.u32 %s3793_s27, 13 }
  0x55   : > { %s4787_s0 = sld [smem:[#allocation17_spill]]  ;;  %s267_s29 = scalar_lea.vmem [#allocation2], %s2972_s19 }
  0x56   : > { %s275_s10 = sshll.u32 %s267_s29, 4  ;;  %p3987_p11 = pnand %p3257_p9, %p43_p3  ;;  %s3985_s10 = int_to_ptr.vmem [resolvable:$true] %s275_s10 }
  0x57   : > { %s3994_s20 = scalar_lea.hbm %s4761_s1, %s3154_s14  ;;  %s289_s21 = scalar_lea.vmem [#allocation5], %s2972_s19 }
  0x58   : > { %s3996_s23 = sshll.u32 %s289_s21, 4  ;;  %s3998_s3 = scalar_lea.sflag [#allocation3], %s263_s18  ;;  %s4030_s23 = int_to_ptr.vmem [resolvable:$true] %s3996_s23 }
  0x59   : > { %p3657_p0 = pneg %p3987_p11 }
  0x5b   : > { %s3983_s11 = scalar_lea.hbm %s4787_s0, %s3154_s14  ;;  %s3660_s22 = scalar_lea.hbm %s4787_s0, 16384 }
  0x5c   : > { %s3655_s29 = scalar_lea.hbm %s3983_s11, 8192  ;;  %p3661_p13 = scmp.lt.u32.totalorder %s3983_s11, %s4787_s0 }
  0x5d   : > { %p3656_p12 = scmp.ne.s32.totalorder %s3983_s11, %s3655_s29  ;;  %p3662_p6 = scmp.lt.u32.totalorder %s3660_s22, %s3655_s29 }
  0x5e   : > { %p3664_p3 = scmp.lt.u32.totalorder %s3655_s29, %s3983_s11 }
  0x5f   : > { %p3658_p2 = pnand %p3657_p0, %p3656_p12  ;;  %p3663_p10 = por %p3662_p6, %p3661_p13 }
  0x61   : > { %p3659_p1 = pneg %p3658_p2  ;;  %p3665_p5 = por %p3664_p3, %p3663_p10 }
  0x63   : > { %p3666_p9 = pnand %p3665_p5, %p3659_p1 }
  0x65   : > { %3669 = shalt.err (!%p3666_p9)
}
  0x66   : > { %s3670_s18 = scalar_lea.vmem %s3985_s10, 8192  ;;  %s3801_s5 = smov [#allocation2]  }
  0x67   : > { %p3671_p12 = scmp.ne.s32.totalorder %s3985_s10, %s3670_s18  ;;  %s3675_s17 = sshll.u32 %s3801_s5, 4  ;;  %s3676_s17 = int_to_ptr.vmem [resolvable:$false] %s3675_s17 }
  0x68   : > { %s3677_s19 = scalar_lea.vmem %s3676_s17, 16384  ;;  %p3678_p4 = scmp.lt.s32.totalorder %s3985_s10, %s3676_s17 }
  0x69   : > { %p3673_p2 = pnand %p3671_p12, %p3657_p0  ;;  %p3679_p13 = scmp.lt.s32.totalorder %s3677_s19, %s3670_s18 }
  0x6b   : > { %p3674_p7 = pneg %p3673_p2  ;;  %p3680_p6 = por %p3679_p13, %p3678_p4 }
  0x6d   : > { %p3681_p10 = pnand %p3680_p6, %p3674_p7 }
  0x6f   : > { %3684 = shalt.err (!%p3681_p10)
}
  0x70   : > { %s4789_s21 = smov 8   ;;  %s4790_s29 = smov 128  }
  0x71   : > { %3247 = dma.hbm_to_vmem [thread:$0]  (!%p3987_p11), %s3983_s11, 8192, %s3985_s10, %s3998_s3, %s4790_s29, %s4790_s29, %s4789_s21  }
  0x72   : > { %s285_s22 = sand.u32 1, %s3793_s27   ;;  %s3685_s14 = scalar_lea.hbm %s3994_s20, 8192 }
  0x73   : > { %s4033_s16 = scalar_lea.sflag [#allocation6], %s285_s22  ;;  %p3686_p4 = scmp.ne.s32.totalorder %s3994_s20, %s3685_s14 }
  0x74   : > { %s3690_s17 = scalar_lea.hbm %s4761_s1, 16384  ;;  %p3691_p3 = scmp.lt.u32.totalorder %s3994_s20, %s4761_s1 }
  0x75   : > { %p3688_p7 = pnand %p3686_p4, %p3657_p0  ;;  %p3692_p5 = scmp.lt.u32.totalorder %s3690_s17, %s3685_s14 }
  0x76   : > { %p3694_p12 = scmp.lt.u32.totalorder %s3685_s14, %s3994_s20 }
  0x77   : > { %p3689_p1 = pneg %p3688_p7  ;;  %p3693_p9 = por %p3692_p5, %p3691_p3 }
  0x79   : > { %p3695_p2 = por %p3694_p12, %p3693_p9 }
  0x7b   : > { %p3696_p13 = pnand %p3695_p2, %p3689_p1 }
  0x7d   : > { %3699 = shalt.err (!%p3696_p13)
}
  0x7e   : > { %s3700_s3 = scalar_lea.vmem %s4030_s23, 8192  ;;  %s3802_s11 = smov [#allocation5]  }
  0x7f   : > { %p3701_p6 = scmp.ne.s32.totalorder %s4030_s23, %s3700_s3  ;;  %s3705_s10 = sshll.u32 %s3802_s11, 4  ;;  %s3706_s10 = int_to_ptr.vmem [resolvable:$false] %s3705_s10 }
  0x80   : > { %s3707_s0 = scalar_lea.vmem %s3706_s10, 16384  ;;  %p3708_p7 = scmp.lt.s32.totalorder %s4030_s23, %s3706_s10 }
  0x81   : > { %p3703_p10 = pnand %p3701_p6, %p3657_p0  ;;  %p3709_p3 = scmp.lt.s32.totalorder %s3707_s0, %s3700_s3 }
  0x83   : > { %p3704_p4 = pneg %p3703_p10  ;;  %p3710_p5 = por %p3709_p3, %p3708_p7 }
  0x85   : > { %p3711_p9 = pnand %p3710_p5, %p3704_p4 }
  0x87   : > { %3714 = shalt.err (!%p3711_p9)
}
  0x88   : > { %3250 = dma.hbm_to_vmem [thread:$0]  (!%p3987_p11), %s3994_s20, 8192, %s4030_s23, %s4033_s16, %s4790_s29, %s4790_s29, %s4789_s21  }
  0x89   : > { %309 = sbr.rel (%p3887_p8) target bundleno = 945 (0x3b1), region = 48  ;;  %s4065_s22 = sand.u32 (!%p3887_p8), 1, %s3785_s25  }
  0x8a   : > { %s4068_s14 = sshll.u32 (!%p3887_p8), %s4065_s22, 9  ;;  %s312_s15 = scalar_lea.sflag (!%p3887_p8), [#allocation3], %s4065_s22 }
  0x8b   : > { %s4072_s18 = scalar_lea.vmem (!%p3887_p8), [#allocation2], %s4068_s14  ;;  %p4791_p0 = scmp.ne.s32.totalorder (!%p3887_p8), %s4778_s30, 0 }
  0x90   : > { %3760 = dma.done.wait (%p4791_p0), %s312_s15, 8192  }
  0x91   : > { %3762 = vsyncadd (%p4791_p0), %s312_s15, 4294959104  ;;  %s320_s9 = sand.u32 1, %s3868_s28   ;;  %s4080_s20 = scalar_lea.vmem [#allocation5], %s4068_s14 }
  0x92   : > { %s321_s23 = scalar_lea.sflag [#allocation6], %s320_s9 }
  0x93   : > { %3764 = dma.done.wait (%p4791_p0), %s321_s23, 8192  }
  0x94   : > { %3766 = vsyncadd (%p4791_p0), %s321_s23, 4294959104  ;;  %p4792_p8 = scmp.eq.s32.totalorder %s3868_s28, 0 }
  0x96   : > { %3768 = dma.done.wait (%p4792_p8), [#allocation6], 2048   ;;  %p4793_p11 = pmov %p4792_p8 }
  0x97   : > { %p4794_p1 = pmov %p4792_p8 }
  0x98   : > { %3770 = vsyncadd (%p4793_p11), [#allocation6], 4294965248 }
  0x99   : > { %3772 = dma.done.wait (%p4794_p1), [#allocation9], 2048   ;;  %p4795_p12 = pmov %p4794_p1 }
  0x9a   : > { %v3803_v0 = vmov 0   ;;  %v3302_v1 = vld [vmem:[#allocation7] sm:$0xff]   ;;  %v3303_v2 = vld [vmem:[#allocation7 + $0x8] sm:$0xff]   ;;  %v3304_v3 = vld [vmem:[#allocation7 + $0x10] sm:$0xff]   ;;  %v758_v4 = vlaneseq  ;;  %s4514_s11 = scalar_lea.vmem [#allocation10], %s4068_s14  ;;  %s3222_s10 = sshll.u32 %s3868_s28, 13 }
  0x9b   : > { %3774 = vsyncadd (%p4795_p12), [#allocation9], 4294965248  ;;  %1223 = vmatprep.subr.bf16.mxu0 %v3803_v0  ;;  %2068 = vmatprep.mubr.bf16.mxu1 %v3803_v0  ;;  %v3305_v5 = vld [vmem:[#allocation7 + $0x18] sm:$0xff]   ;;  %v3306_v7 = vld [vmem:[#allocation7 + $0x20] sm:$0xff]   ;;  %s2852_s0 = sshll.u32 %s4514_s11, 4  ;;  %s2838_s28 = scalar_lea.sflag [#allocation4], %s4065_s22  ;;  %s4714_s0 = int_to_ptr.vmem [resolvable:$true] %s2852_s0 }
  0x9c   : > { %1224 = vmatpush1.bf16.msra.mxu0 %v3302_v1  ;;  %v4099_v6 = vshrl.u32 %v758_v4, 7  ;;  %v4104_v9 = vld [vmem:[%s4072_s18] sm:$0xff]  ;;  %v4107_v10 = vld [vmem:[%s4072_s18 + $0x8] sm:$0xff]  ;;  %v3308_v22 = vld [vmem:[#allocation7 + $0x30] sm:$0xff]   ;;  %s3715_s9 = scalar_lea.vmem %s4714_s0, 8192  ;;  %p4796_p13 = scmp.ne.s32.totalorder %s4786_s12, 0 }
  0x9d   : > { %1225 = vmatprep.subr.bf16.mxu0 %v3803_v0  ;;  %v564_v11 = vld [vmem:[%s4762_s2] sm:$0x3]  ;;  %v566_v13 = vld [vmem:[%s4080_s20 + $0x8] sm:$0xff]  ;;  %v437_v17 = vunpack.c.h.bf16 %v4104_v9  ;;  %v439_v18 = vunpack.c.h.bf16 %v4107_v10  ;;  %v3309_v26 = vld [vmem:[#allocation7 + $0x38] sm:$0xff]   ;;  %v436_v43 = vunpack.c.l.bf16 %v4104_v9  ;;  %v438_v44 = vunpack.c.l.bf16 %v4107_v10  ;;  %p3716_p2 = scmp.ne.s32.totalorder %s4714_s0, %s3715_s9  ;;  %s3804_s23 = smov [#allocation10]  }
  0x9e   : > { %v764_v8 = vsub.s32 1, %v4099_v6  ;;  %v565_v12 = vld [vmem:[%s4080_s20] sm:$0xff]  ;;  %v3307_v14 = vld [vmem:[#allocation7 + $0x28] sm:$0xff]   ;;  %v632_v16 = vunpack.c.h.bf16 %v566_v13  ;;  %v3312_v29 = vld [vmem:[#allocation7 + $0x50] sm:$0xff]   ;;  %v760_v31 = vsub.s32 0, %v4099_v6  ;;  %v631_v36 = vunpack.c.l.bf16 %v566_v13 }
  0x9f   : > { %v630_v15 = vunpack.c.h.bf16 %v565_v12  ;;  %v3310_v27 = vld [vmem:[#allocation7 + $0x40] sm:$0xff]   ;;  %v3311_v28 = vld [vmem:[#allocation7 + $0x48] sm:$0xff]   ;;  %v3313_v30 = vld [vmem:[#allocation7 + $0x58] sm:$0xff]   ;;  %v629_v35 = vunpack.c.l.bf16 %v565_v12  ;;  %p3717_p6 = pnand %p3716_p2, %p4796_p13 }
  0xa0   : > { %1226 = vmatpush1.bf16.msra.mxu0 %v3303_v2  ;;  %v4119_v19 = vrot.slane %v564_v11, %v764_v8  ;;  %v3314_v32 = vld [vmem:[#allocation7 + $0x60] sm:$0xff]   ;;  %v567_v33 = vld [vmem:[%s4080_s20 + $0x10] sm:$0xff]  ;;  %v568_v34 = vld [vmem:[%s4080_s20 + $0x18] sm:$0xff]  ;;  %v4135_v37 = vrot.slane %v564_v11, %v760_v31 }
  0xa1   : > { %1227 = vmatprep.subr.bf16.mxu0 %v3803_v0  ;;  %v3315_v38 = vld [vmem:[#allocation7 + $0x68] sm:$0xff]   ;;  %v634_v39 = vunpack.c.h.bf16 %v567_v33  ;;  %v636_v40 = vunpack.c.h.bf16 %v568_v34  ;;  %v374_v41 = vld [vmem:[%s4072_s18 + $0x10] sm:$0xff]  ;;  %v375_v42 = vld [vmem:[%s4072_s18 + $0x18] sm:$0xff]  ;;  %v633_v56 = vunpack.c.l.bf16 %v567_v33  ;;  %v635_v57 = vunpack.c.l.bf16 %v568_v34  ;;  %p3718_p10 = pneg %p3717_p6 }
  0xa2   : > { %v769_v20 = vmul.f32 %v4119_v19, %v630_v15  ;;  %v771_v21 = vmul.f32 %v4119_v19, %v632_v16  ;;  %v768_v45 = vmul.f32 %v4135_v37, %v629_v35  ;;  %v770_v46 = vmul.f32 %v4135_v37, %v631_v36  ;;  %v3316_v47 = vld [vmem:[#allocation7 + $0x70] sm:$0xff]   ;;  %v569_v52 = vld [vmem:[%s4080_s20 + $0x20] sm:$0xff]  ;;  %v570_v53 = vld [vmem:[%s4080_s20 + $0x28] sm:$0xff] }
  0xa3   : > { %v441_v48 = vunpack.c.h.bf16 %v374_v41  ;;  %v443_v49 = vunpack.c.h.bf16 %v375_v42  ;;  %v773_v50 = vmul.f32 %v4119_v19, %v634_v39  ;;  %v775_v51 = vmul.f32 %v4119_v19, %v636_v40  ;;  %v3317_v58 = vld [vmem:[#allocation7 + $0x78] sm:$0xff]   ;;  %v376_v61 = vld [vmem:[%s4072_s18 + $0x20] sm:$0xff]  ;;  %v377_v1 = vld [vmem:[%s4072_s18 + $0x28] sm:$0xff] }
  0xa4   : > { %1228 = vmatpush1.bf16.msra.mxu0 %v3304_v3  ;;  %v897_v23 = vadd.f32 %v769_v20, %v437_v17  ;;  %v899_v24 = vadd.f32 %v771_v21, %v439_v18  ;;  %v896_v54 = vadd.f32 %v768_v45, %v436_v43  ;;  %v898_v55 = vadd.f32 %v770_v46, %v438_v44  ;;  %v572_v15 = vld [vmem:[%s4080_s20 + $0x38] sm:$0xff]  ;;  %v573_v39 = vld [vmem:[%s4080_s20 + $0x40] sm:$0xff]  ;;  %v574_v40 = vld [vmem:[%s4080_s20 + $0x48] sm:$0xff] }
  0xa5   : > { %1229 = vmatprep.subr.bf16.mxu0 %v3803_v0  ;;  %v901_v59 = vadd.f32 %v773_v50, %v441_v48  ;;  %v903_v60 = vadd.f32 %v775_v51, %v443_v49  ;;  %v638_v62 = vunpack.c.h.bf16 %v569_v52  ;;  %v640_v63 = vunpack.c.h.bf16 %v570_v53  ;;  %v381_v50 = vld [vmem:[%s4072_s18 + $0x48] sm:$0xff] }
  0xa6   : > { %v1025_v25 = vpack.c.bf16 %v899_v24, %v897_v23  ;;  %v440_v2 = vunpack.c.l.bf16 %v374_v41  ;;  %v442_v3 = vunpack.c.l.bf16 %v375_v42  ;;  %v1024_v4 = vpack.c.bf16 %v898_v55, %v896_v54  ;;  %v378_v23 = vld [vmem:[%s4072_s18 + $0x30] sm:$0xff] }
  0xa7   : > { %v445_v9 = vunpack.c.h.bf16 %v376_v61  ;;  %v1027_v10 = vpack.c.bf16 %v903_v60, %v901_v59  ;;  %v447_v11 = vunpack.c.h.bf16 %v377_v1  ;;  %v777_v12 = vmul.f32 %v4119_v19, %v638_v62  ;;  %v576_v62 = vld [vmem:[%s4080_s20 + $0x58] sm:$0xff] }
  0xa8   : > { %1230 = vmatpush1.bf16.msra.mxu0 %v3305_v5  ;;  %1255 = vmatprep.mubr.bf16.mxu0 %v1025_v25  ;;  %v772_v5 = vmul.f32 %v4135_v37, %v633_v56  ;;  %v779_v13 = vmul.f32 %v4119_v19, %v640_v63  ;;  %v637_v18 = vunpack.c.l.bf16 %v569_v52  ;;  %v639_v20 = vunpack.c.l.bf16 %v570_v53 }
  0xa9   : > { %1231 = vmatprep.subr.bf16.mxu0 %v3803_v0  ;;  %v905_v21 = vadd.f32 %v777_v12, %v445_v9  ;;  %v644_v25 = vunpack.c.h.bf16 %v572_v15  ;;  %v449_v33 = vunpack.c.h.bf16 %v378_v23  ;;  %v643_v44 = vunpack.c.l.bf16 %v572_v15 }
  0xaa   : > { %v900_v16 = vadd.f32 %v772_v5, %v440_v2  ;;  %v646_v48 = vunpack.c.h.bf16 %v573_v39  ;;  %v648_v49 = vunpack.c.h.bf16 %v574_v40  ;;  %v448_v51 = vunpack.c.l.bf16 %v378_v23  ;;  %v577_v23 = vld [vmem:[%s4080_s20 + $0x60] sm:$0xff] }
  0xab   : > { %v782_v55 = vmul.f32 %v4135_v37, %v643_v44  ;;  %v645_v2 = vunpack.c.l.bf16 %v573_v39 }
  0xac   : > { %1232 = vmatpush1.bf16.msra.mxu0 %v3306_v7  ;;  %v774_v7 = vmul.f32 %v4135_v37, %v635_v57  ;;  %v785_v59 = vmul.f32 %v4119_v19, %v646_v48  ;;  %v787_v60 = vmul.f32 %v4119_v19, %v648_v49  ;;  %v580_v48 = vld [vmem:[%s4080_s20 + $0x78] sm:$0xff] }
  0xad   : > { %1233 = vmatprep.subr.bf16.mxu0 %v3803_v0  ;;  %v784_v15 = vmul.f32 %v4135_v37, %v645_v2 }
  0xae   : > { %v902_v17 = vadd.f32 %v774_v7, %v442_v3  ;;  %v647_v3 = vunpack.c.l.bf16 %v574_v40  ;;  %v382_v7 = vld [vmem:[%s4072_s18 + $0x50] sm:$0xff] }
  0xb0   : > { %1234 = vmatpush1.bf16.msra.mxu0 %v3307_v14  ;;  %v571_v14 = vld [vmem:[%s4080_s20 + $0x30] sm:$0xff] }
  0xb1   : > { %1235 = vmatprep.subr.bf16.mxu0 %v3803_v0  ;;  %v642_v24 = vunpack.c.h.bf16 %v571_v14  ;;  %v641_v43 = vunpack.c.l.bf16 %v571_v14 }
  0xb3   : > { %v781_v36 = vmul.f32 %v4119_v19, %v642_v24  ;;  %v780_v54 = vmul.f32 %v4135_v37, %v641_v43  ;;  %v578_v24 = vld [vmem:[%s4080_s20 + $0x68] sm:$0xff] }
  0xb4   : > { %1236 = vmatpush1.bf16.msra.mxu0 %v3308_v22  ;;  %v907_v22 = vadd.f32 %v779_v13, %v447_v11  ;;  %v383_v11 = vld [vmem:[%s4072_s18 + $0x58] sm:$0xff]  ;;  %v454_v13 = vunpack.c.l.bf16 %v381_v50 }
  0xb5   : > { %1237 = vmatprep.subr.bf16.mxu0 %v3803_v0  ;;  %v909_v45 = vadd.f32 %v781_v36, %v449_v33  ;;  %v908_v63 = vadd.f32 %v780_v54, %v448_v51  ;;  %v654_v33 = vunpack.c.h.bf16 %v577_v23  ;;  %v456_v36 = vunpack.c.l.bf16 %v382_v7 }
  0xb6   : > { %v1029_v34 = vpack.c.bf16 %v907_v22, %v905_v21  ;;  %v653_v51 = vunpack.c.l.bf16 %v577_v23 }
  0xb8   : > { %1238 = vmatpush1.bf16.msra.mxu0 %v3309_v26  ;;  %v379_v26 = vld [vmem:[%s4072_s18 + $0x38] sm:$0xff] }
  0xb9   : > { %1239 = vmatprep.subr.bf16.mxu0 %v3803_v0  ;;  %v451_v35 = vunpack.c.h.bf16 %v379_v26  ;;  %v450_v52 = vunpack.c.l.bf16 %v379_v26 }
  0xbc   : > { %1240 = vmatpush1.bf16.msra.mxu0 %v3310_v27  ;;  %v444_v27 = vunpack.c.l.bf16 %v376_v61  ;;  %v575_v61 = vld [vmem:[%s4080_s20 + $0x50] sm:$0xff] }
  0xbd   : > { %1241 = vmatprep.subr.bf16.mxu0 %v3803_v0  ;;  %v650_v9 = vunpack.c.h.bf16 %v575_v61 }
  0xbf   : > { %v789_v21 = vmul.f32 %v4119_v19, %v650_v9  ;;  %v582_v9 = vld [vmem:[%s4080_s20 + $0x88] sm:$0xff] }
  0xc0   : > { %1242 = vmatpush1.bf16.msra.mxu0 %v3311_v28  ;;  %v446_v28 = vunpack.c.l.bf16 %v377_v1  ;;  %v910_v1 = vadd.f32 %v782_v55, %v450_v52  ;;  %v655_v52 = vunpack.c.l.bf16 %v578_v24  ;;  %v386_v55 = vld [vmem:[%s4072_s18 + $0x70] sm:$0xff] }
  0xc1   : > { %1243 = vmatprep.subr.bf16.mxu0 %v3803_v0 }
  0xc2   : > { %v1030_v14 = vpack.c.bf16 %v910_v1, %v908_v63  ;;  %v794_v63 = vmul.f32 %v4135_v37, %v655_v52  ;;  %v465_v1 = vunpack.c.h.bf16 %v386_v55 }
  0xc4   : > { %1244 = vmatpush1.bf16.msra.mxu0 %v3312_v29  ;;  %v1026_v29 = vpack.c.bf16 %v902_v17, %v900_v16  ;;  %v786_v16 = vmul.f32 %v4135_v37, %v647_v3  ;;  %v457_v17 = vunpack.c.h.bf16 %v382_v7  ;;  %v581_v7 = vld [vmem:[%s4080_s20 + $0x80] sm:$0xff] }
  0xc5   : > { %1245 = vmatprep.subr.bf16.mxu0 %v3803_v0 }
  0xc6   : > { %v914_v26 = vadd.f32 %v786_v16, %v454_v13  ;;  %v659_v13 = vunpack.c.l.bf16 %v580_v48  ;;  %v388_v16 = vld [vmem:[%s4072_s18 + $0x80] sm:$0xff] }
  0xc8   : > { %1246 = vmatpush1.bf16.msra.mxu0 %v3313_v30  ;;  %v776_v30 = vmul.f32 %v4135_v37, %v637_v18 }
  0xc9   : > { %1247 = vmatprep.subr.bf16.mxu0 %v3803_v0 }
  0xca   : > { %v904_v41 = vadd.f32 %v776_v30, %v444_v27  ;;  %v649_v27 = vunpack.c.l.bf16 %v575_v61 }
  0xcc   : > { %1248 = vmatpush1.bf16.msra.mxu0 %v3314_v32  ;;  %v778_v32 = vmul.f32 %v4135_v37, %v639_v20  ;;  %v459_v20 = vunpack.c.h.bf16 %v383_v11  ;;  %v788_v40 = vmul.f32 %v4135_v37, %v649_v27 }
  0xcd   : > { %1249 = vmatprep.subr.bf16.mxu0 %v3803_v0 }
  0xce   : > { %v906_v42 = vadd.f32 %v778_v32, %v446_v28  ;;  %v651_v28 = vunpack.c.l.bf16 %v576_v62  ;;  %v384_v32 = vld [vmem:[%s4072_s18 + $0x60] sm:$0xff]  ;;  %v916_v49 = vadd.f32 %v788_v40, %v456_v36  ;;  %v661_v36 = vunpack.c.l.bf16 %v581_v7 }
  0xd0   : > { %1250 = vmatpush1.bf16.msra.mxu0 %v3315_v38  ;;  %v783_v38 = vmul.f32 %v4119_v19, %v644_v25  ;;  %v1028_v53 = vpack.c.bf16 %v906_v42, %v904_v41  ;;  %v790_v41 = vmul.f32 %v4135_v37, %v651_v28  ;;  %v461_v42 = vunpack.c.h.bf16 %v384_v32 }
  0xd1   : > { %1251 = vmatprep.subr.bf16.mxu0 %v3803_v0 }
  0xd2   : > { %v911_v46 = vadd.f32 %v783_v38, %v451_v35  ;;  %v385_v35 = vld [vmem:[%s4072_s18 + $0x68] sm:$0xff]  ;;  %v458_v38 = vunpack.c.l.bf16 %v383_v11 }
  0xd3   : > { %v463_v44 = vunpack.c.h.bf16 %v385_v35 }
  0xd4   : > { %1252 = vmatpush1.bf16.msra.mxu0 %v3316_v47  ;;  %v380_v47 = vld [vmem:[%s4072_s18 + $0x40] sm:$0xff]  ;;  %v1031_v57 = vpack.c.bf16 %v911_v46, %v909_v45  ;;  %v793_v45 = vmul.f32 %v4119_v19, %v654_v33  ;;  %v584_v33 = vld [vmem:[%s4080_s20 + $0x98] sm:$0xff] }
  0xd5   : > { %1253 = vmatprep.subr.bf16.mxu0 %v3803_v0  ;;  %v453_v56 = vunpack.c.h.bf16 %v380_v47  ;;  %v452_v12 = vunpack.c.l.bf16 %v380_v47  ;;  %v579_v47 = vld [vmem:[%s4080_s20 + $0x70] sm:$0xff] }
  0xd7   : > { %v912_v25 = vadd.f32 %v784_v15, %v452_v12  ;;  %v657_v12 = vunpack.c.l.bf16 %v579_v47 }
  0xd8   : > { %1254 = vmatpush1.bf16.msra.mxu0 %v3317_v58  ;;  %v455_v58 = vunpack.c.h.bf16 %v381_v50  ;;  %v918_v50 = vadd.f32 %v790_v41, %v458_v38  ;;  %v663_v38 = vunpack.c.l.bf16 %v582_v9  ;;  %v390_v41 = vld [vmem:[%s4072_s18 + $0x90] sm:$0xff] }
  0xd9   : > { %v1032_v39 = vpack.c.bf16 %v914_v26, %v912_v25  ;;  %v798_v25 = vmul.f32 %v4135_v37, %v659_v13  ;;  %v469_v26 = vunpack.c.h.bf16 %v388_v16 }
  0xda   : > { %v915_v5 = vadd.f32 %v787_v60, %v455_v58  ;;  %v387_v58 = vld [vmem:[%s4072_s18 + $0x78] sm:$0xff]  ;;  %v462_v60 = vunpack.c.l.bf16 %v385_v35  ;;  %v1034_v61 = vpack.c.bf16 %v918_v50, %v916_v49  ;;  %v802_v49 = vmul.f32 %v4135_v37, %v663_v38 }
  0xdb   : > { %1256 = vmatmul.mubr.bf16.vlgmr.msra.gmra.mrb[0].mxu0 %v1024_v4  ;;  %v913_v4 = vadd.f32 %v785_v59, %v453_v56  ;;  %v658_v56 = vunpack.c.h.bf16 %v579_v47  ;;  %v460_v59 = vunpack.c.l.bf16 %v384_v32  ;;  %v467_v3 = vunpack.c.h.bf16 %v387_v58  ;;  %v583_v32 = vld [vmem:[%s4080_s20 + $0x90] sm:$0xff] }
  0xdc   : > { %1263 = vmatprep.mubr.bf16.mxu0 %v1027_v10  ;;  %v652_v10 = vunpack.c.h.bf16 %v576_v62  ;;  %v792_v62 = vmul.f32 %v4135_v37, %v653_v51  ;;  %v922_v11 = vadd.f32 %v794_v63, %v462_v60  ;;  %v473_v50 = vunpack.c.h.bf16 %v390_v41  ;;  %v392_v63 = vld [vmem:[%s4072_s18 + $0xa0] sm:$0xff] }
  0xdd   : > { %v1033_v18 = vpack.c.bf16 %v915_v5, %v913_v4  ;;  %v797_v4 = vmul.f32 %v4119_v19, %v658_v56  ;;  %v586_v56 = vld [vmem:[%s4080_s20 + $0xa8] sm:$0xff]  ;;  %v667_v60 = vunpack.c.l.bf16 %v584_v33 }
  0xde   : > { %v791_v22 = vmul.f32 %v4119_v19, %v652_v10  ;;  %v920_v10 = vadd.f32 %v792_v62, %v460_v59  ;;  %v665_v59 = vunpack.c.l.bf16 %v583_v32 }
  0xe0   : > { %v919_v30 = vadd.f32 %v791_v22, %v459_v20  ;;  %v389_v20 = vld [vmem:[%s4072_s18 + $0x88] sm:$0xff]  ;;  %v466_v22 = vunpack.c.l.bf16 %v387_v58  ;;  %v1036_v23 = vpack.c.bf16 %v922_v11, %v920_v10  ;;  %v806_v10 = vmul.f32 %v4135_v37, %v667_v60 }
  0xe1   : > { %v471_v28 = vunpack.c.h.bf16 %v389_v20  ;;  %v477_v11 = vunpack.c.h.bf16 %v392_v63 }
  0xe2   : > { %v926_v35 = vadd.f32 %v798_v25, %v466_v22  ;;  %v671_v22 = vunpack.c.l.bf16 %v586_v56  ;;  %v394_v25 = vld [vmem:[%s4072_s18 + $0xb0] sm:$0xff] }
  0xe3   : > { %1264 = vmatmul.mubr.bf16.gmra.mrb[4].mxu0 %v1026_v29  ;;  %v917_v29 = vadd.f32 %v789_v21, %v457_v17  ;;  %v662_v17 = vunpack.c.h.bf16 %v581_v7  ;;  %v464_v21 = vunpack.c.l.bf16 %v386_v55  ;;  %v585_v55 = vld [vmem:[%s4080_s20 + $0xa0] sm:$0xff] }
  0xe4   : > { %1271 = vmatprep.mubr.bf16.mxu0 %v1029_v34  ;;  %v656_v34 = vunpack.c.h.bf16 %v578_v24  ;;  %v796_v24 = vmul.f32 %v4135_v37, %v657_v12 }
  0xe5   : > { %v1035_v43 = vpack.c.bf16 %v919_v30, %v917_v29  ;;  %v801_v29 = vmul.f32 %v4119_v19, %v662_v17  ;;  %v588_v17 = vld [vmem:[%s4080_s20 + $0xb8] sm:$0xff] }
  0xe6   : > { %v795_v46 = vmul.f32 %v4119_v19, %v656_v34  ;;  %v924_v34 = vadd.f32 %v796_v24, %v464_v21  ;;  %v669_v21 = vunpack.c.l.bf16 %v585_v55 }
  0xe8   : > { %v923_v54 = vadd.f32 %v795_v46, %v463_v44  ;;  %v391_v44 = vld [vmem:[%s4072_s18 + $0x98] sm:$0xff]  ;;  %v470_v46 = vunpack.c.l.bf16 %v389_v20  ;;  %v1038_v47 = vpack.c.bf16 %v926_v35, %v924_v34  ;;  %v810_v34 = vmul.f32 %v4135_v37, %v671_v22 }
  0xe9   : > { %v475_v52 = vunpack.c.h.bf16 %v391_v44  ;;  %v481_v35 = vunpack.c.h.bf16 %v394_v25 }
  0xea   : > { %v930_v58 = vadd.f32 %v802_v49, %v470_v46  ;;  %v675_v46 = vunpack.c.l.bf16 %v588_v17  ;;  %v396_v49 = vld [vmem:[%s4072_s18 + $0xc0] sm:$0xff] }
  0xeb   : > { %1272 = vmatmul.mubr.bf16.gmra.mrb[8].mxu0 %v1028_v53  ;;  %v921_v53 = vadd.f32 %v793_v45, %v461_v42  ;;  %v666_v42 = vunpack.c.h.bf16 %v583_v32  ;;  %v468_v45 = vunpack.c.l.bf16 %v388_v16  ;;  %v587_v16 = vld [vmem:[%s4080_s20 + $0xb0] sm:$0xff] }
  0xec   : > { %1279 = vmatprep.mubr.bf16.mxu0 %v1031_v57  ;;  %v660_v57 = vunpack.c.h.bf16 %v580_v48  ;;  %v800_v48 = vmul.f32 %v4135_v37, %v661_v36 }
  0xed   : > { %v1037_v2 = vpack.c.bf16 %v923_v54, %v921_v53  ;;  %v805_v53 = vmul.f32 %v4119_v19, %v666_v42  ;;  %v590_v42 = vld [vmem:[%s4080_s20 + $0xc8] sm:$0xff] }
  0xee   : > { %v799_v5 = vmul.f32 %v4119_v19, %v660_v57  ;;  %v928_v57 = vadd.f32 %v800_v48, %v468_v45  ;;  %v673_v45 = vunpack.c.l.bf16 %v587_v16 }
  0xf0   : > { %v927_v15 = vadd.f32 %v799_v5, %v467_v3  ;;  %v393_v3 = vld [vmem:[%s4072_s18 + $0xa8] sm:$0xff]  ;;  %v474_v5 = vunpack.c.l.bf16 %v391_v44  ;;  %v1040_v7 = vpack.c.bf16 %v930_v58, %v928_v57  ;;  %v814_v57 = vmul.f32 %v4135_v37, %v675_v46 }
  0xf1   : > { %v479_v13 = vunpack.c.h.bf16 %v393_v3  ;;  %v485_v58 = vunpack.c.h.bf16 %v396_v49  ;;  %v3326_v46 = vld [vmem:[#allocation8 + $0x20] ss:$8 sps:$4 sm:$0xff]  }
  0xf2   : > { %v934_v20 = vadd.f32 %v806_v10, %v474_v5  ;;  %v679_v5 = vunpack.c.l.bf16 %v590_v42  ;;  %v398_v10 = vld [vmem:[%s4072_s18 + $0xd0] sm:$0xff] }
  0xf3   : > { %1280 = vmatmul.mubr.bf16.gmra.mrb[12].mxu0 %v1030_v14  ;;  %v925_v14 = vadd.f32 %v797_v4, %v465_v1  ;;  %v670_v1 = vunpack.c.h.bf16 %v585_v55  ;;  %v472_v4 = vunpack.c.l.bf16 %v390_v41  ;;  %v589_v41 = vld [vmem:[%s4080_s20 + $0xc0] sm:$0xff]  ;;  %v489_v22 = vunpack.c.h.bf16 %v398_v10 }
  0xf4   : > { %1287 = vmatprep.mubr.bf16.mxu0 %v1033_v18  ;;  %v664_v18 = vunpack.c.h.bf16 %v582_v9  ;;  %v804_v9 = vmul.f32 %v4135_v37, %v665_v59 }
  0xf5   : > { %v1039_v27 = vpack.c.bf16 %v927_v15, %v925_v14  ;;  %v809_v14 = vmul.f32 %v4119_v19, %v670_v1  ;;  %v592_v1 = vld [vmem:[%s4080_s20 + $0xd8] sm:$0xff] }
  0xf6   : > { %v803_v30 = vmul.f32 %v4119_v19, %v664_v18  ;;  %v932_v18 = vadd.f32 %v804_v9, %v472_v4  ;;  %v677_v4 = vunpack.c.l.bf16 %v589_v41 }
  0xf8   : > { %v931_v40 = vadd.f32 %v803_v30, %v471_v28  ;;  %v395_v28 = vld [vmem:[%s4072_s18 + $0xb8] sm:$0xff]  ;;  %v478_v30 = vunpack.c.l.bf16 %v393_v3  ;;  %v1042_v32 = vpack.c.bf16 %v934_v20, %v932_v18  ;;  %v816_v20 = vmul.f32 %v4135_v37, %v677_v4 }
  0xf9   : > { %v483_v38 = vunpack.c.h.bf16 %v395_v28 }
  0xfa   : > { %v938_v44 = vadd.f32 %v810_v34, %v478_v30  ;;  %v3323_v30 = vld [vmem:[#allocation8 + $0x10] ss:$8 sps:$4 sm:$0xff]  }
  0xfb   : > { %1288 = vmatmul.mubr.bf16.gmra.mrb[16].mxu0 %v1032_v39  ;;  %v929_v39 = vadd.f32 %v801_v29, %v469_v26  ;;  %v674_v26 = vunpack.c.h.bf16 %v587_v16  ;;  %v476_v29 = vunpack.c.l.bf16 %v392_v63  ;;  %v591_v63 = vld [vmem:[%s4080_s20 + $0xd0] sm:$0xff] }
  0xfc   : > { %1295 = vmatprep.mubr.bf16.mxu0 %v1035_v43  ;;  %v668_v43 = vunpack.c.h.bf16 %v584_v33  ;;  %v808_v33 = vmul.f32 %v4135_v37, %v669_v21  ;;  %v818_v21 = vmul.f32 %v4135_v37, %v679_v5  ;;  %v681_v34 = vunpack.c.l.bf16 %v591_v63  ;;  %v403_v5 = vld [vmem:[%s4072_s18 + $0xf8] sm:$0xff] }
  0xfd   : > { %v1041_v51 = vpack.c.bf16 %v931_v40, %v929_v39  ;;  %v813_v39 = vmul.f32 %v4119_v19, %v674_v26 }
  0xfe   : > { %v807_v54 = vmul.f32 %v4119_v19, %v668_v43  ;;  %v936_v43 = vadd.f32 %v808_v33, %v476_v29  ;;  %v3321_v29 = vld [vmem:[#allocation8 + $0x14] ss:$8 sps:$4 sm:$0xff]  }
 0x100   : > { %v935_v62 = vadd.f32 %v807_v54, %v475_v52  ;;  %v397_v52 = vld [vmem:[%s4072_s18 + $0xc8] sm:$0xff]  ;;  %v482_v54 = vunpack.c.l.bf16 %v395_v28  ;;  %v1044_v55 = vpack.c.bf16 %v938_v44, %v936_v43  ;;  %v488_v44 = vunpack.c.l.bf16 %v398_v10 }
 0x101   : > { %v487_v60 = vunpack.c.h.bf16 %v397_v52  ;;  %v486_v16 = vunpack.c.l.bf16 %v397_v52  ;;  %v594_v28 = vld [vmem:[%s4080_s20 + $0xe8] sm:$0xff] }
 0x102   : > { %v942_v3 = vadd.f32 %v814_v57, %v482_v54  ;;  %v3324_v43 = vld [vmem:[#allocation8 + $0x24] ss:$8 sps:$4 sm:$0xff]   ;;  %v3327_v57 = vld [vmem:[#allocation8 + $0x34] ss:$8 sps:$4 sm:$0xff]  }
 0x103   : > { %1296 = vmatmul.mubr.bf16.gmra.mrb[20].mxu0 %v1034_v61  ;;  %v933_v61 = vadd.f32 %v805_v53, %v473_v50  ;;  %v678_v50 = vunpack.c.h.bf16 %v589_v41  ;;  %v480_v53 = vunpack.c.l.bf16 %v394_v25  ;;  %v946_v33 = vadd.f32 %v818_v21, %v486_v16  ;;  %v597_v21 = vld [vmem:[%s4080_s20 + $0x100] sm:$0xff] }
 0x104   : > { %1303 = vmatprep.mubr.bf16.mxu0 %v1037_v2  ;;  %v672_v2 = vunpack.c.h.bf16 %v586_v56  ;;  %v812_v56 = vmul.f32 %v4135_v37, %v673_v45  ;;  %v688_v41 = vunpack.c.h.bf16 %v594_v28 }
 0x105   : > { %v1043_v12 = vpack.c.bf16 %v935_v62, %v933_v61  ;;  %v817_v61 = vmul.f32 %v4119_v19, %v678_v50 }
 0x106   : > { %v811_v15 = vmul.f32 %v4119_v19, %v672_v2  ;;  %v940_v2 = vadd.f32 %v812_v56, %v480_v53  ;;  %v827_v54 = vmul.f32 %v4119_v19, %v688_v41  ;;  %v596_v56 = vld [vmem:[%s4080_s20 + $0xf8] sm:$0xff] }
 0x107   : > { %v692_v4 = vunpack.c.h.bf16 %v596_v56 }
 0x108   : > { %v939_v24 = vadd.f32 %v811_v15, %v479_v13  ;;  %v399_v13 = vld [vmem:[%s4072_s18 + $0xd8] sm:$0xff]  ;;  %v484_v15 = vunpack.c.l.bf16 %v396_v49  ;;  %v1046_v18 = vpack.c.bf16 %v942_v3, %v940_v2  ;;  %v402_v2 = vld [vmem:[%s4072_s18 + $0xf0] sm:$0xff] }
 0x109   : > { %v490_v45 = vunpack.c.l.bf16 %v399_v13 }
 0x10b   : > { %1304 = vmatmul.mubr.bf16.gmra.mrb[24].mxu0 %v1036_v23  ;;  %v937_v23 = vadd.f32 %v809_v14, %v477_v11  ;;  %v682_v11 = vunpack.c.h.bf16 %v591_v63  ;;  %v3318_v14 = vld [vmem:[#allocation8 + $0x4] ss:$8 sps:$4 sm:$0xff]  }
 0x10c   : > { %1311 = vmatprep.mubr.bf16.mxu0 %v1039_v27  ;;  %v676_v27 = vunpack.c.h.bf16 %v588_v17  ;;  %v3320_v17 = vld [vmem:[#allocation8] ss:$8 sps:$4 sm:$0xff]   ;;  %2036 = vmatprep.subr.bf16.mxu1 %v3318_v14 }
 0x10d   : > { %v1045_v36 = vpack.c.bf16 %v939_v24, %v937_v23  ;;  %v491_v24 = vunpack.c.h.bf16 %v399_v13  ;;  %v821_v25 = vmul.f32 %v4119_v19, %v682_v11  ;;  %2037 = vmatpush1.bf16.msra.mxu1 %v3320_v17  ;;  %v3332_v11 = vld [vmem:[#allocation8 + $0x40] ss:$8 sps:$4 sm:$0xff]   ;;  %v499_v17 = vunpack.c.h.bf16 %v403_v5 }
 0x10e   : > { %v815_v40 = vmul.f32 %v4119_v19, %v676_v27  ;;  %v593_v27 = vld [vmem:[%s4080_s20 + $0xe0] sm:$0xff]  ;;  %2038 = vmatprep.subr.bf16.mxu1 %v3321_v29 }
 0x110   : > { %v943_v48 = vadd.f32 %v815_v40, %v483_v38  ;;  %v686_v40 = vunpack.c.h.bf16 %v593_v27 }
 0x111   : > { %2039 = vmatpush1.bf16.msra.mxu1 %v3323_v30 }
 0x112   : > { %2040 = vmatprep.subr.bf16.mxu1 %v3324_v43  ;;  %v825_v53 = vmul.f32 %v4119_v19, %v686_v40  ;;  %v3338_v40 = vld [vmem:[#allocation8 + $0x60] ss:$8 sps:$4 sm:$0xff]  }
 0x113   : > { %1312 = vmatmul.mubr.bf16.gmra.mrb[28].mxu0 %v1038_v47  ;;  %v941_v47 = vadd.f32 %v813_v39, %v481_v35  ;;  %v683_v35 = vunpack.c.l.bf16 %v592_v1  ;;  %v400_v39 = vld [vmem:[%s4072_s18 + $0xe0] sm:$0xff] }
 0x114   : > { %1319 = vmatprep.mubr.bf16.mxu0 %v1041_v51  ;;  %v680_v51 = vunpack.c.h.bf16 %v590_v42  ;;  %v401_v42 = vld [vmem:[%s4072_s18 + $0xe8] sm:$0xff]  ;;  %v493_v50 = vunpack.c.h.bf16 %v400_v39 }
 0x115   : > { %v1047_v59 = vpack.c.bf16 %v943_v48, %v941_v47  ;;  %v820_v48 = vmul.f32 %v4135_v37, %v681_v34  ;;  %v822_v49 = vmul.f32 %v4135_v37, %v683_v35  ;;  %v495_v52 = vunpack.c.h.bf16 %v401_v42  ;;  %2041 = vmatpush1.bf16.msra.mxu1 %v3326_v46  ;;  %v405_v35 = vld [vmem:[%s4072_s18 + $0x108] sm:$0xff] }
 0x116   : > { %v819_v62 = vmul.f32 %v4119_v19, %v680_v51  ;;  %2042 = vmatprep.subr.bf16.mxu1 %v3327_v57  ;;  %v953_v63 = vadd.f32 %v825_v53, %v493_v50  ;;  %v494_v10 = vunpack.c.l.bf16 %v401_v42  ;;  %v503_v46 = vunpack.c.h.bf16 %v405_v35  ;;  %v600_v50 = vld [vmem:[%s4080_s20 + $0x118] sm:$0xff] }
 0x118   : > { %v947_v9 = vadd.f32 %v819_v62, %v487_v60  ;;  %v950_v60 = vadd.f32 %v822_v49, %v490_v45  ;;  %v687_v62 = vunpack.c.l.bf16 %v594_v28  ;;  %v691_v28 = vunpack.c.l.bf16 %v596_v56  ;;  %v599_v49 = vld [vmem:[%s4080_s20 + $0x110] sm:$0xff] }
 0x11a   : > { %v826_v14 = vmul.f32 %v4135_v37, %v687_v62  ;;  %v830_v43 = vmul.f32 %v4135_v37, %v691_v28  ;;  %v407_v62 = vld [vmem:[%s4072_s18 + $0x118] sm:$0xff] }
 0x11b   : > { %1320 = vmatmul.mubr.bf16.gmra.mrb[32].mxu0 %v1040_v7  ;;  %v945_v7 = vadd.f32 %v817_v61, %v485_v58  ;;  %v3329_v58 = vld [vmem:[#allocation8 + $0x30] ss:$8 sps:$4 sm:$0xff]   ;;  %v685_v61 = vunpack.c.l.bf16 %v593_v27 }
 0x11c   : > { %1327 = vmatprep.mubr.bf16.mxu0 %v1043_v12  ;;  %v684_v12 = vunpack.c.h.bf16 %v592_v1  ;;  %v955_v1 = vadd.f32 %v827_v54, %v495_v52  ;;  %2043 = vmatpush1.bf16.msra.mxu1 %v3329_v58  ;;  %v3341_v52 = vld [vmem:[#allocation8 + $0x70] ss:$8 sps:$4 sm:$0xff]  }
 0x11d   : > { %v1049_v23 = vpack.c.bf16 %v947_v9, %v945_v7  ;;  %v3330_v7 = vld [vmem:[#allocation8 + $0x44] ss:$8 sps:$4 sm:$0xff]   ;;  %v492_v9 = vunpack.c.l.bf16 %v400_v39  ;;  %v824_v13 = vmul.f32 %v4135_v37, %v685_v61  ;;  %v498_v39 = vunpack.c.l.bf16 %v403_v5 }
 0x11e   : > { %v823_v26 = vmul.f32 %v4119_v19, %v684_v12  ;;  %2044 = vmatprep.subr.bf16.mxu1 %v3330_v7  ;;  %v1053_v16 = vpack.c.bf16 %v955_v1, %v953_v63  ;;  %v700_v61 = vunpack.c.h.bf16 %v600_v50  ;;  %v502_v1 = vunpack.c.l.bf16 %v405_v35 }
 0x11f   : > { %v958_v54 = vadd.f32 %v830_v43, %v498_v39 }
 0x120   : > { %v951_v38 = vadd.f32 %v823_v26, %v491_v24  ;;  %2045 = vmatpush1.bf16.msra.mxu1 %v3332_v11  ;;  %v3335_v24 = vld [vmem:[#allocation8 + $0x50] ss:$8 sps:$4 sm:$0xff]   ;;  %v954_v26 = vadd.f32 %v826_v14, %v494_v10  ;;  %v839_v11 = vmul.f32 %v4119_v19, %v700_v61 }
 0x123   : > { %1328 = vmatmul.mubr.bf16.gmra.mrb[36].mxu0 %v1042_v32  ;;  %v944_v32 = vadd.f32 %v816_v20, %v484_v15  ;;  %v497_v15 = vunpack.c.h.bf16 %v402_v2  ;;  %v831_v20 = vmul.f32 %v4119_v19, %v692_v4 }
 0x124   : > { %1335 = vmatprep.mubr.bf16.mxu0 %v1045_v36  ;;  %v949_v36 = vadd.f32 %v821_v25, %v489_v22  ;;  %v598_v22 = vld [vmem:[%s4080_s20 + $0x108] sm:$0xff]  ;;  %v952_v25 = vadd.f32 %v824_v13, %v492_v9  ;;  %v507_v9 = vunpack.c.h.bf16 %v407_v62 }
 0x125   : > { %v1048_v47 = vpack.c.bf16 %v946_v33, %v944_v32  ;;  %v959_v30 = vadd.f32 %v831_v20, %v499_v17  ;;  %v404_v32 = vld [vmem:[%s4072_s18 + $0x100] sm:$0xff]  ;;  %v694_v33 = vunpack.c.h.bf16 %v597_v21  ;;  %v696_v34 = vunpack.c.h.bf16 %v598_v22  ;;  %v602_v13 = vld [vmem:[%s4080_s20 + $0x128] sm:$0xff] }
 0x126   : > { %v1051_v51 = vpack.c.bf16 %v951_v38, %v949_v36  ;;  %v3336_v36 = vld [vmem:[#allocation8 + $0x64] ss:$8 sps:$4 sm:$0xff]   ;;  %v496_v38 = vunpack.c.l.bf16 %v402_v2  ;;  %v1052_v41 = vpack.c.bf16 %v954_v26, %v952_v25  ;;  %v695_v56 = vunpack.c.l.bf16 %v598_v22 }
 0x127   : > { %v500_v63 = vunpack.c.l.bf16 %v404_v32  ;;  %v699_v17 = vunpack.c.l.bf16 %v600_v50  ;;  %v967_v20 = vadd.f32 %v839_v11, %v507_v9  ;;  %v506_v26 = vunpack.c.l.bf16 %v407_v62  ;;  %v413_v9 = vld [vmem:[%s4072_s18 + $0x148] sm:$0xff] }
 0x128   : > { %v834_v4 = vmul.f32 %v4135_v37, %v695_v56 }
 0x12b   : > { %1336 = vmatmul.mubr.bf16.gmra.mrb[40].mxu0 %v1044_v55  ;;  %v595_v55 = vld [vmem:[%s4080_s20 + $0xf0] sm:$0xff] }
 0x12c   : > { %1343 = vmatprep.mubr.bf16.mxu0 %v1047_v59  ;;  %v948_v59 = vadd.f32 %v820_v48, %v488_v44  ;;  %v690_v3 = vunpack.c.h.bf16 %v595_v55  ;;  %v689_v27 = vunpack.c.l.bf16 %v595_v55  ;;  %v501_v44 = vunpack.c.h.bf16 %v404_v32 }
 0x12d   : > { %v835_v48 = vmul.f32 %v4119_v19, %v696_v34  ;;  %v693_v55 = vunpack.c.l.bf16 %v597_v21  ;;  %v408_v21 = vld [vmem:[%s4072_s18 + $0x120] sm:$0xff] }
 0x12e   : > { %v1050_v12 = vpack.c.bf16 %v950_v60, %v948_v59  ;;  %v828_v42 = vmul.f32 %v4135_v37, %v689_v27  ;;  %v406_v59 = vld [vmem:[%s4072_s18 + $0x110] sm:$0xff]  ;;  %v698_v60 = vunpack.c.h.bf16 %v599_v49 }
 0x12f   : > { %v963_v58 = vadd.f32 %v835_v48, %v503_v46  ;;  %v505_v5 = vunpack.c.h.bf16 %v406_v59  ;;  %v504_v25 = vunpack.c.l.bf16 %v406_v59  ;;  %v411_v48 = vld [vmem:[%s4072_s18 + $0x138] sm:$0xff]  ;;  %v605_v59 = vld [vmem:[%s4080_s20 + $0x140] sm:$0xff] }
 0x130   : > { %v956_v53 = vadd.f32 %v828_v42, %v496_v38  ;;  %v837_v10 = vmul.f32 %v4119_v19, %v698_v60  ;;  %v604_v38 = vld [vmem:[%s4080_s20 + $0x138] sm:$0xff]  ;;  %v703_v42 = vunpack.c.l.bf16 %v602_v13  ;;  %v515_v56 = vunpack.c.h.bf16 %v411_v48  ;;  %v606_v60 = vld [vmem:[%s4080_s20 + $0x148] sm:$0xff] }
 0x131   : > { %v514_v11 = vunpack.c.l.bf16 %v411_v48 }
 0x132   : > { %v1054_v2 = vpack.c.bf16 %v958_v54, %v956_v53  ;;  %v842_v53 = vmul.f32 %v4135_v37, %v703_v42 }
 0x133   : > { %1344 = vmatmul.mubr.bf16.gmra.mrb[44].mxu0 %v1046_v18  ;;  %v829_v18 = vmul.f32 %v4119_v19, %v690_v3  ;;  %v832_v3 = vmul.f32 %v4135_v37, %v693_v55 }
 0x134   : > { %1351 = vmatprep.mubr.bf16.mxu0 %v1049_v23  ;;  %v3333_v23 = vld [vmem:[#allocation8 + $0x54] ss:$8 sps:$4 sm:$0xff]  }
 0x135   : > { %2046 = vmatprep.subr.bf16.mxu1 %v3333_v23  ;;  %v957_v29 = vadd.f32 %v829_v18, %v497_v15  ;;  %v960_v14 = vadd.f32 %v832_v3, %v500_v63  ;;  %v962_v15 = vadd.f32 %v834_v4, %v502_v1  ;;  %v965_v18 = vadd.f32 %v837_v10, %v505_v5  ;;  %v412_v4 = vld [vmem:[%s4072_s18 + $0x140] sm:$0xff] }
 0x136   : > { %2047 = vmatpush1.bf16.msra.mxu1 %v3335_v24  ;;  %v704_v23 = vunpack.c.h.bf16 %v602_v13  ;;  %v409_v24 = vld [vmem:[%s4072_s18 + $0x128] sm:$0xff]  ;;  %v707_v1 = vunpack.c.l.bf16 %v604_v38  ;;  %v710_v5 = vunpack.c.h.bf16 %v605_v59 }
 0x137   : > { %2048 = vmatprep.subr.bf16.mxu1 %v3336_v36  ;;  %v1055_v45 = vpack.c.bf16 %v959_v30, %v957_v29  ;;  %v1056_v27 = vpack.c.bf16 %v962_v15, %v960_v14  ;;  %v838_v29 = vmul.f32 %v4135_v37, %v699_v17  ;;  %v509_v30 = vunpack.c.h.bf16 %v408_v21  ;;  %v603_v36 = vld [vmem:[%s4080_s20 + $0x130] sm:$0xff] }
 0x138   : > { %v1059_v32 = vpack.c.bf16 %v967_v20, %v965_v18  ;;  %v843_v35 = vmul.f32 %v4119_v19, %v704_v23  ;;  %v706_v46 = vunpack.c.h.bf16 %v603_v36  ;;  %v510_v50 = vunpack.c.l.bf16 %v409_v24 }
 0x139   : > { %v705_v63 = vunpack.c.l.bf16 %v603_v36  ;;  %v846_v14 = vmul.f32 %v4135_v37, %v707_v1  ;;  %v517_v15 = vunpack.c.h.bf16 %v412_v4  ;;  %v519_v17 = vunpack.c.h.bf16 %v413_v9 }
 0x13a   : > { %2049 = vmatpush1.bf16.msra.mxu1 %v3338_v40  ;;  %v966_v40 = vadd.f32 %v838_v29, %v506_v26  ;;  %v970_v62 = vadd.f32 %v842_v53, %v510_v50  ;;  %v849_v18 = vmul.f32 %v4119_v19, %v710_v5  ;;  %v711_v26 = vunpack.c.l.bf16 %v606_v60  ;;  %v414_v29 = vld [vmem:[%s4072_s18 + $0x150] sm:$0xff]  ;;  %v416_v53 = vld [vmem:[%s4072_s18 + $0x160] sm:$0xff]  ;;  %v612_v5 = vld [vmem:[%s4080_s20 + $0x178] sm:$0xff] }
 0x13b   : > { %1352 = vmatmul.mubr.bf16.gmra.mrb[48].mxu0 %v1048_v47  ;;  %v833_v47 = vmul.f32 %v4119_v19, %v694_v33  ;;  %v511_v33 = vunpack.c.h.bf16 %v409_v24  ;;  %v844_v13 = vmul.f32 %v4135_v37, %v705_v63  ;;  %v974_v24 = vadd.f32 %v846_v14, %v514_v11  ;;  %v418_v14 = vld [vmem:[%s4072_s18 + $0x170] sm:$0xff] }
 0x13c   : > { %1359 = vmatprep.mubr.bf16.mxu0 %v1051_v51  ;;  %v3339_v51 = vld [vmem:[#allocation8 + $0x74] ss:$8 sps:$4 sm:$0xff]  }
 0x13d   : > { %2050 = vmatprep.subr.bf16.mxu1 %v3339_v51  ;;  %v961_v57 = vadd.f32 %v833_v47, %v501_v44  ;;  %v971_v44 = vadd.f32 %v843_v35, %v511_v33  ;;  %v708_v47 = vunpack.c.h.bf16 %v604_v38  ;;  %v415_v33 = vld [vmem:[%s4072_s18 + $0x158] sm:$0xff]  ;;  %v518_v35 = vunpack.c.l.bf16 %v413_v9 }
 0x13e   : > { %2051 = vmatpush1.bf16.msra.mxu1 %v3341_v52  ;;  %v523_v42 = vunpack.c.h.bf16 %v415_v33 }
 0x13f   : > { %v1057_v7 = vpack.c.bf16 %v963_v58, %v961_v57  ;;  %v845_v57 = vmul.f32 %v4119_v19, %v706_v46  ;;  %v847_v58 = vmul.f32 %v4119_v19, %v708_v47  ;;  %v610_v46 = vld [vmem:[%s4080_s20 + $0x168] sm:$0xff] }
 0x140   : > { %v719_v11 = vunpack.c.l.bf16 %v610_v46 }
 0x141   : > { %v975_v3 = vadd.f32 %v847_v58, %v515_v56  ;;  %v417_v56 = vld [vmem:[%s4072_s18 + $0x168] sm:$0xff]  ;;  %v522_v58 = vunpack.c.l.bf16 %v415_v33 }
 0x142   : > { %v527_v1 = vunpack.c.h.bf16 %v417_v56 }
 0x143   : > { %1360 = vmatmul.mubr.bf16.gmra.mrb[52].mxu0 %v1050_v12  ;;  %v601_v12 = vld [vmem:[%s4080_s20 + $0x120] sm:$0xff] }
 0x144   : > { %1367 = vmatprep.mubr.bf16.mxu0 %v1053_v16  ;;  %v697_v16 = vunpack.c.l.bf16 %v599_v49  ;;  %v702_v22 = vunpack.c.h.bf16 %v601_v12  ;;  %v508_v49 = vunpack.c.l.bf16 %v408_v21  ;;  %v607_v21 = vld [vmem:[%s4080_s20 + $0x150] sm:$0xff] }
 0x146   : > { %v836_v28 = vmul.f32 %v4135_v37, %v697_v16  ;;  %v841_v34 = vmul.f32 %v4119_v19, %v702_v22  ;;  %v608_v22 = vld [vmem:[%s4080_s20 + $0x158] sm:$0xff] }
 0x147   : > { %v715_v50 = vunpack.c.l.bf16 %v608_v22 }
 0x148   : > { %v964_v39 = vadd.f32 %v836_v28, %v504_v25  ;;  %v969_v43 = vadd.f32 %v841_v34, %v509_v30  ;;  %v709_v25 = vunpack.c.l.bf16 %v605_v59  ;;  %v714_v30 = vunpack.c.h.bf16 %v607_v21 }
 0x149   : > { %v516_v34 = vunpack.c.l.bf16 %v412_v4  ;;  %v611_v4 = vld [vmem:[%s4080_s20 + $0x170] sm:$0xff] }
 0x14a   : > { %v1058_v51 = vpack.c.bf16 %v966_v40, %v964_v39  ;;  %v1061_v55 = vpack.c.bf16 %v971_v44, %v969_v43  ;;  %v848_v38 = vmul.f32 %v4135_v37, %v709_v25  ;;  %v850_v39 = vmul.f32 %v4135_v37, %v711_v26 }
 0x14b   : > { %1368 = vmatmul.mubr.bf16.gmra.mrb[56].mxu0 %v1052_v41  ;;  %v701_v41 = vunpack.c.l.bf16 %v601_v12  ;;  %v521_v40 = vunpack.c.h.bf16 %v414_v29  ;;  %v853_v43 = vmul.f32 %v4119_v19, %v714_v30  ;;  %v614_v30 = vld [vmem:[%s4080_s20 + $0x188] sm:$0xff] }
 0x14c   : > { %1375 = vmatprep.mubr.bf16.mxu0 %v1055_v45  ;;  %v410_v45 = vld [vmem:[%s4072_s18 + $0x130] sm:$0xff]  ;;  %v976_v47 = vadd.f32 %v848_v38, %v516_v34  ;;  %v978_v48 = vadd.f32 %v850_v39, %v518_v35  ;;  %v721_v34 = vunpack.c.l.bf16 %v611_v4  ;;  %v723_v35 = vunpack.c.l.bf16 %v612_v5  ;;  %v420_v39 = vld [vmem:[%s4072_s18 + $0x180] sm:$0xff] }
 0x14d   : > { %v840_v52 = vmul.f32 %v4135_v37, %v701_v41  ;;  %v513_v54 = vunpack.c.h.bf16 %v410_v45  ;;  %v512_v10 = vunpack.c.l.bf16 %v410_v45  ;;  %v609_v45 = vld [vmem:[%s4080_s20 + $0x160] sm:$0xff] }
 0x14e   : > { %v1064_v59 = vpack.c.bf16 %v978_v48, %v976_v47  ;;  %v862_v47 = vmul.f32 %v4135_v37, %v723_v35  ;;  %v533_v48 = vunpack.c.h.bf16 %v420_v39 }
 0x14f   : > { %v968_v61 = vadd.f32 %v840_v52, %v508_v49  ;;  %v972_v23 = vadd.f32 %v844_v13, %v512_v10  ;;  %v713_v49 = vunpack.c.l.bf16 %v607_v21  ;;  %v717_v10 = vunpack.c.l.bf16 %v609_v45 }
 0x151   : > { %v1060_v12 = vpack.c.bf16 %v970_v62, %v968_v61  ;;  %v1062_v36 = vpack.c.bf16 %v974_v24, %v972_v23  ;;  %v854_v61 = vmul.f32 %v4135_v37, %v715_v50  ;;  %v525_v62 = vunpack.c.h.bf16 %v416_v53 }
 0x152   : > { %v858_v23 = vmul.f32 %v4135_v37, %v719_v11  ;;  %v529_v24 = vunpack.c.h.bf16 %v418_v14 }
 0x153   : > { %1376 = vmatmul.mubr.bf16.gmra.mrb[60].mxu0 %v1054_v2  ;;  %v973_v2 = vadd.f32 %v845_v57, %v513_v54  ;;  %v718_v54 = vunpack.c.h.bf16 %v609_v45  ;;  %v520_v57 = vunpack.c.l.bf16 %v414_v29  ;;  %v982_v9 = vadd.f32 %v854_v61, %v522_v58  ;;  %v613_v29 = vld [vmem:[%s4080_s20 + $0x180] sm:$0xff]  ;;  %v422_v61 = vld [vmem:[%s4072_s18 + $0x190] sm:$0xff] }
 0x154   : > { %1383 = vmatprep.mubr.bf16.mxu0 %v1057_v7  ;;  %v712_v7 = vunpack.c.h.bf16 %v606_v60  ;;  %v852_v60 = vmul.f32 %v4135_v37, %v713_v49 }
 0x155   : > { %v1063_v16 = vpack.c.bf16 %v975_v3, %v973_v2  ;;  %v857_v2 = vmul.f32 %v4119_v19, %v718_v54  ;;  %v616_v54 = vld [vmem:[%s4080_s20 + $0x198] sm:$0xff] }
 0x156   : > { %v851_v20 = vmul.f32 %v4119_v19, %v712_v7  ;;  %v980_v7 = vadd.f32 %v852_v60, %v520_v57 }
 0x158   : > { %v979_v28 = vadd.f32 %v851_v20, %v519_v17  ;;  %v419_v17 = vld [vmem:[%s4072_s18 + $0x178] sm:$0xff]  ;;  %v526_v20 = vunpack.c.l.bf16 %v417_v56  ;;  %v1066_v21 = vpack.c.bf16 %v982_v9, %v980_v7  ;;  %v727_v56 = vunpack.c.l.bf16 %v614_v30 }
 0x159   : > { %v531_v26 = vunpack.c.h.bf16 %v419_v17  ;;  %v537_v9 = vunpack.c.h.bf16 %v422_v61 }
 0x15a   : > { %v986_v33 = vadd.f32 %v858_v23, %v526_v20  ;;  %v731_v20 = vunpack.c.l.bf16 %v616_v54 }
 0x15b   : > { %1384 = vmatmul.mubr.bf16.gmra.mrb[64].mxu0 %v1056_v27  ;;  %v977_v27 = vadd.f32 %v849_v18, %v517_v15  ;;  %v722_v15 = vunpack.c.h.bf16 %v611_v4  ;;  %v524_v18 = vunpack.c.l.bf16 %v416_v53  ;;  %v615_v53 = vld [vmem:[%s4080_s20 + $0x190] sm:$0xff] }
 0x15c   : > { %1391 = vmatprep.mubr.bf16.mxu0 %v1059_v32  ;;  %v716_v32 = vunpack.c.h.bf16 %v608_v22  ;;  %v856_v22 = vmul.f32 %v4135_v37, %v717_v10 }
 0x15d   : > { %v1065_v41 = vpack.c.bf16 %v979_v28, %v977_v27  ;;  %v861_v27 = vmul.f32 %v4119_v19, %v722_v15  ;;  %v618_v15 = vld [vmem:[%s4080_s20 + $0x1a8] sm:$0xff] }
 0x15e   : > { %v855_v44 = vmul.f32 %v4119_v19, %v716_v32  ;;  %v984_v32 = vadd.f32 %v856_v22, %v524_v18  ;;  %v729_v18 = vunpack.c.l.bf16 %v615_v53  ;;  %v736_v22 = vunpack.c.h.bf16 %v618_v15 }
 0x160   : > { %v983_v52 = vadd.f32 %v855_v44, %v523_v42  ;;  %v421_v42 = vld [vmem:[%s4072_s18 + $0x188] sm:$0xff]  ;;  %v530_v44 = vunpack.c.l.bf16 %v419_v17  ;;  %v1068_v45 = vpack.c.bf16 %v986_v33, %v984_v32  ;;  %v870_v32 = vmul.f32 %v4135_v37, %v731_v20 }
 0x161   : > { %v535_v50 = vunpack.c.h.bf16 %v421_v42 }
 0x162   : > { %v990_v58 = vadd.f32 %v862_v47, %v530_v44 }
 0x163   : > { %1392 = vmatmul.mubr.bf16.gmra.mrb[68].mxu0 %v1058_v51  ;;  %v981_v51 = vadd.f32 %v853_v43, %v521_v40  ;;  %v726_v40 = vunpack.c.h.bf16 %v613_v29  ;;  %v528_v43 = vunpack.c.l.bf16 %v418_v14  ;;  %v617_v14 = vld [vmem:[%s4080_s20 + $0x1a0] sm:$0xff] }
 0x164   : > { %1399 = vmatprep.mubr.bf16.mxu0 %v1061_v55  ;;  %v720_v55 = vunpack.c.h.bf16 %v610_v46  ;;  %v860_v46 = vmul.f32 %v4135_v37, %v721_v34 }
 0x165   : > { %v1067_v63 = vpack.c.bf16 %v983_v52, %v981_v51  ;;  %v865_v51 = vmul.f32 %v4119_v19, %v726_v40  ;;  %v735_v40 = vunpack.c.l.bf16 %v618_v15 }
 0x166   : > { %v859_v3 = vmul.f32 %v4119_v19, %v720_v55  ;;  %v725_v55 = vunpack.c.l.bf16 %v613_v29  ;;  %v988_v57 = vadd.f32 %v860_v46, %v528_v43 }
 0x168   : > { %v987_v13 = vadd.f32 %v859_v3, %v527_v1  ;;  %v423_v1 = vld [vmem:[%s4072_s18 + $0x198] sm:$0xff]  ;;  %v534_v3 = vunpack.c.l.bf16 %v421_v42  ;;  %v864_v4 = vmul.f32 %v4135_v37, %v725_v55  ;;  %v1070_v7 = vpack.c.bf16 %v990_v58, %v988_v57 }
 0x169   : > { %v539_v11 = vunpack.c.h.bf16 %v423_v1  ;;  %v538_v29 = vunpack.c.l.bf16 %v423_v1  ;;  %v620_v42 = vld [vmem:[%s4080_s20 + $0x1b8] sm:$0xff] }
 0x16b   : > { %1400 = vmatmul.mubr.bf16.gmra.mrb[72].mxu0 %v1060_v12  ;;  %v985_v12 = vadd.f32 %v857_v2, %v525_v62  ;;  %v730_v62 = vunpack.c.h.bf16 %v615_v53  ;;  %v532_v2 = vunpack.c.l.bf16 %v420_v39  ;;  %v733_v39 = vunpack.c.l.bf16 %v617_v14  ;;  %v426_v53 = vld [vmem:[%s4072_s18 + $0x1b0] sm:$0xff] }
 0x16c   : > { %1407 = vmatprep.mubr.bf16.mxu0 %v1063_v16  ;;  %v724_v16 = vunpack.c.h.bf16 %v612_v5  ;;  %v866_v5 = vmul.f32 %v4135_v37, %v727_v56  ;;  %v998_v44 = vadd.f32 %v870_v32, %v538_v29  ;;  %v545_v57 = vunpack.c.h.bf16 %v426_v53  ;;  %v4369_v32 = vld [vmem:[%s4764_s4] ss:$0 sm:$0xff] }
 0x16d   : > { %v1069_v25 = vpack.c.bf16 %v987_v13, %v985_v12  ;;  %v869_v12 = vmul.f32 %v4119_v19, %v730_v62  ;;  %v622_v62 = vld [vmem:[%s4080_s20 + $0x1c8] sm:$0xff] }
 0x16e   : > { %v863_v28 = vmul.f32 %v4119_v19, %v724_v16  ;;  %v992_v16 = vadd.f32 %v864_v4, %v532_v2  ;;  %v994_v17 = vadd.f32 %v866_v5, %v534_v3  ;;  %v739_v3 = vunpack.c.l.bf16 %v620_v42 }
 0x16f   : > { %v997_v23 = vadd.f32 %v869_v12, %v537_v9  ;;  %v744_v5 = vunpack.c.h.bf16 %v622_v62 }
 0x170   : > { %v991_v38 = vadd.f32 %v863_v28, %v531_v26  ;;  %v425_v26 = vld [vmem:[%s4072_s18 + $0x1a8] sm:$0xff]  ;;  %v1072_v28 = vpack.c.bf16 %v994_v17, %v992_v16  ;;  %v878_v16 = vmul.f32 %v4135_v37, %v739_v3 }
 0x171   : > { %v543_v34 = vunpack.c.h.bf16 %v425_v26 }
 0x173   : > { %1408 = vmatmul.mubr.bf16.gmra.mrb[76].mxu0 %v1062_v36  ;;  %v989_v36 = vadd.f32 %v861_v27, %v529_v24  ;;  %v536_v27 = vunpack.c.l.bf16 %v422_v61  ;;  %v621_v61 = vld [vmem:[%s4080_s20 + $0x1c0] sm:$0xff] }
 0x174   : > { %1415 = vmatprep.mubr.bf16.mxu0 %v1065_v41  ;;  %v728_v41 = vunpack.c.h.bf16 %v614_v30  ;;  %v868_v30 = vmul.f32 %v4135_v37, %v729_v18  ;;  %v742_v4 = vunpack.c.h.bf16 %v621_v61 }
 0x175   : > { %v1071_v49 = vpack.c.bf16 %v991_v38, %v989_v36  ;;  %v875_v36 = vmul.f32 %v4119_v19, %v736_v22 }
 0x176   : > { %v867_v52 = vmul.f32 %v4119_v19, %v728_v41  ;;  %v619_v41 = vld [vmem:[%s4080_s20 + $0x1b0] sm:$0xff]  ;;  %v996_v43 = vadd.f32 %v868_v30, %v536_v27  ;;  %v881_v20 = vmul.f32 %v4119_v19, %v742_v4  ;;  %v433_v4 = vld [vmem:[%s4072_s18 + $0x1e8] sm:$0xff] }
 0x177   : > { %v1003_v46 = vadd.f32 %v875_v36, %v543_v34  ;;  %v738_v47 = vunpack.c.h.bf16 %v619_v41  ;;  %v737_v2 = vunpack.c.l.bf16 %v619_v41  ;;  %v431_v41 = vld [vmem:[%s4072_s18 + $0x1d8] sm:$0xff] }
 0x178   : > { %v995_v60 = vadd.f32 %v867_v52, %v535_v50  ;;  %v542_v50 = vunpack.c.l.bf16 %v425_v26  ;;  %v874_v52 = vmul.f32 %v4135_v37, %v735_v40  ;;  %v1074_v55 = vpack.c.bf16 %v998_v44, %v996_v43  ;;  %v624_v26 = vld [vmem:[%s4080_s20 + $0x1d8] sm:$0xff]  ;;  %v430_v40 = vld [vmem:[%s4072_s18 + $0x1d0] sm:$0xff] }
 0x179   : > { %v876_v15 = vmul.f32 %v4135_v37, %v737_v2  ;;  %v748_v34 = vunpack.c.h.bf16 %v624_v26 }
 0x17a   : > { %v1002_v1 = vadd.f32 %v874_v52, %v542_v50  ;;  %v625_v52 = vld [vmem:[%s4080_s20 + $0x1e0] sm:$0xff] }
 0x17b   : > { %1416 = vmatmul.mubr.bf16.gmra.mrb[80].mxu0 %v1064_v59  ;;  %v993_v59 = vadd.f32 %v865_v51, %v533_v48  ;;  %v740_v48 = vunpack.c.h.bf16 %v620_v42  ;;  %v872_v51 = vmul.f32 %v4135_v37, %v733_v39 }
 0x17c   : > { %1423 = vmatprep.mubr.bf16.mxu0 %v1067_v63  ;;  %v732_v63 = vunpack.c.h.bf16 %v616_v54  ;;  %v427_v54 = vld [vmem:[%s4072_s18 + $0x1b8] sm:$0xff] }
 0x17d   : > { %v1073_v10 = vpack.c.bf16 %v995_v60, %v993_v59  ;;  %v547_v58 = vunpack.c.h.bf16 %v427_v54  ;;  %v877_v59 = vmul.f32 %v4119_v19, %v738_v47  ;;  %v879_v60 = vmul.f32 %v4119_v19, %v740_v48 }
 0x17e   : > { %v871_v13 = vmul.f32 %v4119_v19, %v732_v63  ;;  %v553_v48 = vunpack.c.h.bf16 %v430_v40 }
 0x17f   : > { %v1007_v9 = vadd.f32 %v879_v60, %v547_v58  ;;  %v747_v60 = vunpack.c.l.bf16 %v624_v26  ;;  %v628_v26 = vld [vmem:[%s4080_s20 + $0x1f8] sm:$0xff] }
 0x180   : > { %v999_v24 = vadd.f32 %v871_v13, %v539_v11  ;;  %v429_v11 = vld [vmem:[%s4072_s18 + $0x1c8] sm:$0xff]  ;;  %v544_v13 = vunpack.c.l.bf16 %v426_v53 }
 0x181   : > { %v551_v18 = vunpack.c.h.bf16 %v429_v11  ;;  %v550_v36 = vunpack.c.l.bf16 %v429_v11  ;;  %v626_v53 = vld [vmem:[%s4080_s20 + $0x1e8] sm:$0xff] }
 0x182   : > { %v1075_v38 = vpack.c.bf16 %v999_v24, %v997_v23  ;;  %v741_v23 = vunpack.c.l.bf16 %v621_v61  ;;  %v743_v24 = vunpack.c.l.bf16 %v622_v62  ;;  %v1004_v27 = vadd.f32 %v876_v15, %v544_v13  ;;  %v4382_v62 = vld [vmem:[%s4072_s18 + $0x1e0] sm:$0xff] }
 0x183   : > { %1424 = vmatmul.mubr.bf16.gmra.mrb[84].mxu0 %v1066_v21  ;;  %v734_v21 = vunpack.c.h.bf16 %v617_v14  ;;  %v546_v14 = vunpack.c.l.bf16 %v427_v54  ;;  %v557_v13 = vunpack.c.h.bf16 %v4382_v62 }
 0x184   : > { %1431 = vmatprep.mubr.bf16.mxu0 %v1069_v25  ;;  %v424_v25 = vld [vmem:[%s4072_s18 + $0x1a0] sm:$0xff]  ;;  %v882_v39 = vmul.f32 %v4135_v37, %v743_v24 }
 0x185   : > { %v541_v33 = vunpack.c.h.bf16 %v424_v25  ;;  %v873_v35 = vmul.f32 %v4119_v19, %v734_v21  ;;  %v883_v21 = vmul.f32 %v4119_v19, %v744_v5 }
 0x186   : > { %v1010_v58 = vadd.f32 %v882_v39, %v550_v36  ;;  %v4395_v36 = vld [vmem:[%s4072_s18 + $0x1f0] sm:$0xff]  ;;  %v756_v39 = vunpack.c.h.bf16 %v628_v26 }
 0x187   : > { %v1011_v30 = vadd.f32 %v883_v21, %v551_v18 }
 0x18b   : > { %1432 = vmatmul.mubr.bf16.gmra.mrb[88].mxu0 %v1068_v45  ;;  %v1001_v45 = vadd.f32 %v873_v35, %v541_v33 }
 0x18c   : > { %1439 = vmatprep.mubr.bf16.mxu0 %v1071_v49  ;;  %v540_v49 = vunpack.c.l.bf16 %v424_v25  ;;  %v623_v25 = vld [vmem:[%s4080_s20 + $0x1d0] sm:$0xff] }
 0x18d   : > { %v1077_v56 = vpack.c.bf16 %v1003_v46, %v1001_v45  ;;  %v746_v33 = vunpack.c.h.bf16 %v623_v25 }
 0x18e   : > { %v1000_v63 = vadd.f32 %v872_v51, %v540_v49  ;;  %v555_v49 = vunpack.c.h.bf16 %v431_v41  ;;  %v887_v51 = vmul.f32 %v4119_v19, %v748_v34 }
 0x18f   : > { %v885_v50 = vmul.f32 %v4119_v19, %v746_v33 }
 0x190   : > { %v1076_v12 = vpack.c.bf16 %v1002_v1, %v1000_v63  ;;  %v750_v63 = vunpack.c.h.bf16 %v625_v52  ;;  %v752_v1 = vunpack.c.h.bf16 %v626_v53  ;;  %v1015_v3 = vadd.f32 %v887_v51, %v555_v49 }
 0x191   : > { %v1013_v2 = vadd.f32 %v885_v50, %v553_v48 }
 0x192   : > { %v891_v18 = vmul.f32 %v4119_v19, %v752_v1 }
 0x193   : > { %1440 = vmatmul.mubr.bf16.gmra.mrb[92].mxu0 %v1070_v7  ;;  %v1005_v7 = vadd.f32 %v877_v59, %v545_v57  ;;  %v745_v59 = vunpack.c.l.bf16 %v623_v25  ;;  %v1083_v21 = vpack.c.bf16 %v1015_v3, %v1013_v2  ;;  %v627_v25 = vld [vmem:[%s4080_s20 + $0x1f0] sm:$0xff]  ;;  %v755_v3 = vunpack.c.l.bf16 %v628_v26  ;;  %s3719_s20 = sshll.u32 %s3804_s23, 4  ;;  %s3720_s20 = int_to_ptr.vmem [resolvable:$false] %s3719_s20 }
 0x194   : > { %1447 = vmatprep.mubr.bf16.mxu0 %v1073_v10  ;;  %v428_v10 = vld [vmem:[%s4072_s18 + $0x1c0] sm:$0xff]  ;;  %v753_v2 = vunpack.c.l.bf16 %v627_v25  ;;  %s3721_s30 = scalar_lea.vmem %s3720_s20, 16384  ;;  %p3722_p4 = scmp.lt.s32.totalorder %s4714_s0, %s3720_s20 }
 0x195   : > { %v549_v17 = vunpack.c.h.bf16 %v428_v10  ;;  %v1079_v22 = vpack.c.bf16 %v1007_v9, %v1005_v7  ;;  %v548_v35 = vunpack.c.l.bf16 %v428_v10  ;;  %v552_v7 = vunpack.c.l.bf16 %v430_v40  ;;  %p3723_p7 = scmp.lt.s32.totalorder %s3721_s30, %s3715_s9 }
 0x196   : > { %v554_v10 = vunpack.c.l.bf16 %v431_v41  ;;  %v884_v11 = vmul.f32 %v4135_v37, %v745_v59  ;;  %v556_v41 = vunpack.c.l.bf16 %v4382_v62 }
 0x197   : > { %v1009_v29 = vadd.f32 %v881_v20, %v549_v17  ;;  %v889_v17 = vmul.f32 %v4119_v19, %v750_v63  ;;  %p3724_p3 = por %p3723_p7, %p3722_p4 }
 0x199   : > { %v1081_v46 = vpack.c.bf16 %v1011_v30, %v1009_v29  ;;  %v749_v29 = vunpack.c.l.bf16 %v625_v52  ;;  %v751_v30 = vunpack.c.l.bf16 %v626_v53  ;;  %v1017_v34 = vadd.f32 %v889_v17, %v557_v13  ;;  %p3725_p5 = pnand %p3724_p3, %p3718_p10 }
 0x19a   : > { %v561_v53 = vunpack.c.h.bf16 %v4395_v36  ;;  %v894_v17 = vmul.f32 %v4135_v37, %v755_v3 }
 0x19b   : > { %1448 = vmatmul.mubr.bf16.gmra.mrb[96].mxu0 %v1072_v28  ;;  %v1006_v28 = vadd.f32 %v878_v16, %v546_v14  ;;  %v559_v16 = vunpack.c.h.bf16 %v433_v4 }
 0x19c   : > { %1455 = vmatprep.mubr.bf16.mxu0 %v1075_v38  ;;  %v880_v38 = vmul.f32 %v4135_v37, %v741_v23 }
 0x19d   : > { %v1078_v45 = vpack.c.bf16 %v1006_v28, %v1004_v27  ;;  %v1012_v27 = vadd.f32 %v884_v11, %v552_v7  ;;  %v560_v11 = vunpack.c.l.bf16 %v4395_v36 }
 0x19e   : > { %v1008_v57 = vadd.f32 %v880_v38, %v548_v35  ;;  %v1019_v35 = vadd.f32 %v891_v18, %v559_v16  ;;  %v754_v38 = vunpack.c.h.bf16 %v627_v25  ;;  %v892_v16 = vmul.f32 %v4135_v37, %v753_v2 }
 0x1a0   : > { %v1080_v5 = vpack.c.bf16 %v1010_v58, %v1008_v57  ;;  %v1085_v52 = vpack.c.bf16 %v1019_v35, %v1017_v34  ;;  %v893_v57 = vmul.f32 %v4119_v19, %v754_v38  ;;  %v895_v58 = vmul.f32 %v4119_v19, %v756_v39 }
 0x1a3   : > { %1456 = vmatmul.mubr.bf16.gmra.mrb[100].mxu0 %v1074_v55 }
 0x1a4   : > { %1463 = vmatprep.mubr.bf16.mxu0 %v1077_v56 }
 0x1ab   : > { %1464 = vmatmul.mubr.bf16.gmra.mrb[104].mxu0 %v1076_v12  ;;  %v886_v12 = vmul.f32 %v4135_v37, %v747_v60 }
 0x1ac   : > { %1471 = vmatprep.mubr.bf16.mxu0 %v1079_v22 }
 0x1ad   : > { %v1014_v28 = vadd.f32 %v886_v12, %v554_v10 }
 0x1ae   : > { %v1257_v42 = vpop.f32.mrb[0].mxu0 }
 0x1af   : > { %v1258_v43 = vadd.f32 %v4369_v32, %v1257_v42  ;;  %v1259_v44 = vpop.f32.mrb[1].mxu0  ;;  %v435_v42 = vld [vmem:[%s4072_s18 + $0x1f8] sm:$0xff]  ;;  %v1082_v51 = vpack.c.bf16 %v1014_v28, %v1012_v27  ;;  %v1020_v27 = vadd.f32 %v892_v16, %v560_v11  ;;  %s4712_s18 = scalar_lea.hbm %s4767_s7, %s3222_s10 }
 0x1b0   : > { %v1260_v47 = vpop.f32.mrb[2].mxu0 }
 0x1b1   : > { %v3003_v54 = vmul.f32 -1.442695, %v1258_v43  ;;  %v1261_v55 = vadd.f32 %v4369_v32, %v1260_v47  ;;  %v1262_v56 = vpop.f32.mrb[3].mxu0  ;;  %v890_v47 = vmul.f32 %v4135_v37, %v751_v30 }
 0x1b2   : > { %v563_v56 = vunpack.c.h.bf16 %v435_v42 }
 0x1b3   : > { %3342 = vpow2.f32 %v3003_v54  ;;  %v3004_v61 = vmul.f32 -1.442695, %v1261_v55  ;;  %1472 = vmatmul.mubr.bf16.gmra.mrb[108].mxu0 %v1078_v45  ;;  %v558_v45 = vunpack.c.l.bf16 %v433_v4  ;;  %v1021_v4 = vadd.f32 %v893_v57, %v561_v53 }
 0x1b4   : > { %1479 = vmatprep.mubr.bf16.mxu0 %v1081_v46  ;;  %v888_v46 = vmul.f32 %v4135_v37, %v749_v29 }
 0x1b5   : > { %3344 = vpow2.f32 %v3004_v61  ;;  %v1018_v63 = vadd.f32 %v890_v47, %v558_v45 }
 0x1b6   : > { %v1265_v9 = vpop.f32.mrb[4].mxu0  ;;  %v1016_v62 = vadd.f32 %v888_v46, %v556_v41 }
 0x1b7   : > { %v1266_v14 = vadd.f32 %v4369_v32, %v1265_v9  ;;  %v1267_v15 = vpop.f32.mrb[5].mxu0 }
 0x1b8   : > { %v1268_v20 = vpop.f32.mrb[6].mxu0  ;;  %v1084_v10 = vpack.c.bf16 %v1018_v63, %v1016_v62  ;;  %v562_v15 = vunpack.c.l.bf16 %v435_v42 }
 0x1b9   : > { %v3005_v22 = vmul.f32 -1.442695, %v1266_v14  ;;  %v1269_v23 = vadd.f32 %v4369_v32, %v1268_v20  ;;  %v1270_v24 = vpop.f32.mrb[7].mxu0 }
 0x1ba   : > { %v1022_v28 = vadd.f32 %v894_v17, %v562_v15 }
 0x1bb   : > { %3346 = vpow2.f32 %v3005_v22  ;;  %v3006_v33 = vmul.f32 -1.442695, %v1269_v23  ;;  %1480 = vmatmul.mubr.bf16.gmra.mrb[112].mxu0 %v1080_v5  ;;  %v1023_v5 = vadd.f32 %v895_v58, %v563_v56 }
 0x1bc   : > { %1487 = vmatprep.mubr.bf16.mxu0 %v1083_v21  ;;  %v1086_v39 = vpack.c.bf16 %v1022_v28, %v1020_v27 }
 0x1bd   : > { %v3343_v40 = vpop.eup %3342  ;;  %3348 = vpow2.f32 %v3006_v33  ;;  %v1087_v21 = vpack.c.bf16 %v1023_v5, %v1021_v4 }
 0x1be   : > { %v1704_v43 = vadd.f32 1.0, %v3343_v40  ;;  %v1273_v44 = vpop.f32.mrb[8].mxu0 }
 0x1bf   : > { %v3345_v48 = vpop.eup %3344  ;;  %v1274_v49 = vadd.f32 %v4369_v32, %v1273_v44  ;;  %v1275_v50 = vpop.f32.mrb[9].mxu0 }
 0x1c0   : > { %v1705_v54 = vadd.f32 1.0, %v3345_v48  ;;  %v1276_v55 = vpop.f32.mrb[10].mxu0  ;;  %3350 = vrcp.f32 %v1704_v43 }
 0x1c1   : > { %v3007_v59 = vmul.f32 -1.442695, %v1274_v49  ;;  %v1277_v60 = vadd.f32 %v4369_v32, %v1276_v55  ;;  %v1278_v61 = vpop.f32.mrb[11].mxu0 }
 0x1c2   : > { %3352 = vrcp.f32 %v1705_v54 }
 0x1c3   : > { %3354 = vpow2.f32 %v3007_v59  ;;  %v3008_v1 = vmul.f32 -1.442695, %v1277_v60  ;;  %1488 = vmatmul.mubr.bf16.gmra.mrb[116].mxu0 %v1082_v51 }
 0x1c4   : > { %1495 = vmatprep.mubr.bf16.mxu0 %v1085_v52 }
 0x1c5   : > { %v3347_v7 = vpop.eup %3346  ;;  %3356 = vpow2.f32 %v3008_v1 }
 0x1c6   : > { %v1706_v9 = vadd.f32 1.0, %v3347_v7  ;;  %v1281_v19 = vpop.f32.mrb[12].mxu0 }
 0x1c7   : > { %v3349_v12 = vpop.eup %3348  ;;  %v1282_v13 = vadd.f32 %v4369_v32, %v1281_v19  ;;  %v1283_v14 = vpop.f32.mrb[13].mxu0 }
 0x1c8   : > { %v1707_v18 = vadd.f32 1.0, %v3349_v12  ;;  %v1284_v20 = vpop.f32.mrb[14].mxu0  ;;  %3358 = vrcp.f32 %v1706_v9 }
 0x1c9   : > { %v3009_v22 = vmul.f32 -1.442695, %v1282_v13  ;;  %v1285_v23 = vadd.f32 %v4369_v32, %v1284_v20  ;;  %v1286_v24 = vpop.f32.mrb[15].mxu0 }
 0x1ca   : > { %3360 = vrcp.f32 %v1707_v18  ;;  %v3351_v25 = vpop.eup %3350 }
 0x1cb   : > { %3362 = vpow2.f32 %v3009_v22  ;;  %v3010_v26 = vmul.f32 -1.442695, %v1285_v23  ;;  %1496 = vmatmul.mubr.bf16.gmra.mrb[120].mxu0 %v1084_v10 }
 0x1cc   : > { %v3353_v29 = vpop.eup %3352  ;;  %1503 = vmatprep.mubr.bf16.mxu0 %v1087_v21 }
 0x1cd   : > { %v3355_v30 = vpop.eup %3354  ;;  %3364 = vpow2.f32 %v3010_v26  ;;  %v1896_v37 = vpack.c.bf16 %v3353_v29, %v3351_v25 }
 0x1ce   : > { %v1708_v33 = vadd.f32 1.0, %v3355_v30  ;;  %v1289_v34 = vpop.f32.mrb[16].mxu0 }
 0x1cf   : > { %v3357_v35 = vpop.eup %3356  ;;  %v1290_v36 = vadd.f32 %v4369_v32, %v1289_v34  ;;  %v1291_v38 = vpop.f32.mrb[17].mxu0  ;;  %2069 = vmatmul.mubr.bf16.vlgmr.msra.gmra.mrb[0].mxu1 %v1896_v37 }
 0x1d0   : > { %v1709_v40 = vadd.f32 1.0, %v3357_v35  ;;  %v1292_v41 = vpop.f32.mrb[18].mxu0  ;;  %2078 = vmatprep.mubr.bf16.mxu1 %v3803_v0  ;;  %3366 = vrcp.f32 %v1708_v33 }
 0x1d1   : > { %v3011_v42 = vmul.f32 -1.442695, %v1290_v36  ;;  %v1293_v43 = vadd.f32 %v4369_v32, %v1292_v41  ;;  %v1294_v44 = vpop.f32.mrb[19].mxu0 }
 0x1d2   : > { %3368 = vrcp.f32 %v1709_v40  ;;  %v3359_v45 = vpop.eup %3358 }
 0x1d3   : > { %3370 = vpow2.f32 %v3011_v42  ;;  %v3012_v46 = vmul.f32 -1.442695, %v1293_v43  ;;  %1504 = vmatmul.mubr.bf16.gmra.mrb[124].mxu0 %v1086_v39 }
 0x1d4   : > { %v3361_v47 = vpop.eup %3360 }
 0x1d5   : > { %v3363_v48 = vpop.eup %3362  ;;  %3372 = vpow2.f32 %v3012_v46  ;;  %v1897_v49 = vpack.c.bf16 %v3361_v47, %v3359_v45 }
 0x1d6   : > { %v1710_v50 = vadd.f32 1.0, %v3363_v48  ;;  %v1297_v51 = vpop.f32.mrb[20].mxu0 }
 0x1d7   : > { %v3365_v52 = vpop.eup %3364  ;;  %v1298_v53 = vadd.f32 %v4369_v32, %v1297_v51  ;;  %v1299_v54 = vpop.f32.mrb[21].mxu0  ;;  %2079 = vmatmul.mubr.bf16.gmra.mrb[4].mxu1 %v1897_v49 }
 0x1d8   : > { %v1711_v55 = vadd.f32 1.0, %v3365_v52  ;;  %v1300_v56 = vpop.f32.mrb[22].mxu0  ;;  %2088 = vmatprep.mubr.bf16.mxu1 %v3803_v0  ;;  %3374 = vrcp.f32 %v1710_v50 }
 0x1d9   : > { %v3013_v57 = vmul.f32 -1.442695, %v1298_v53  ;;  %v1301_v58 = vadd.f32 %v4369_v32, %v1300_v56  ;;  %v1302_v59 = vpop.f32.mrb[23].mxu0 }
 0x1da   : > { %3376 = vrcp.f32 %v1711_v55  ;;  %v3367_v60 = vpop.eup %3366 }
 0x1db   : > { %3378 = vpow2.f32 %v3013_v57  ;;  %v3014_v61 = vmul.f32 -1.442695, %v1301_v58 }
 0x1dc   : > { %v3369_v62 = vpop.eup %3368 }
 0x1dd   : > { %v3371_v63 = vpop.eup %3370  ;;  %3380 = vpow2.f32 %v3014_v61  ;;  %v1898_v1 = vpack.c.bf16 %v3369_v62, %v3367_v60 }
 0x1de   : > { %v1712_v2 = vadd.f32 1.0, %v3371_v63  ;;  %v1305_v3 = vpop.f32.mrb[24].mxu0 }
 0x1df   : > { %v3373_v4 = vpop.eup %3372  ;;  %v1306_v5 = vadd.f32 %v4369_v32, %v1305_v3  ;;  %v1307_v7 = vpop.f32.mrb[25].mxu0  ;;  %2089 = vmatmul.mubr.bf16.gmra.mrb[8].mxu1 %v1898_v1 }
 0x1e0   : > { %v1713_v9 = vadd.f32 1.0, %v3373_v4  ;;  %v1308_v19 = vpop.f32.mrb[26].mxu0  ;;  %2098 = vmatprep.mubr.bf16.mxu1 %v3803_v0  ;;  %3382 = vrcp.f32 %v1712_v2 }
 0x1e1   : > { %v3015_v10 = vmul.f32 -1.442695, %v1306_v5  ;;  %v1309_v11 = vadd.f32 %v4369_v32, %v1308_v19  ;;  %v1310_v12 = vpop.f32.mrb[27].mxu0 }
 0x1e2   : > { %3384 = vrcp.f32 %v1713_v9  ;;  %v3375_v13 = vpop.eup %3374 }
 0x1e3   : > { %3386 = vpow2.f32 %v3015_v10  ;;  %v3016_v14 = vmul.f32 -1.442695, %v1309_v11 }
 0x1e4   : > { %v3377_v15 = vpop.eup %3376 }
 0x1e5   : > { %v3379_v16 = vpop.eup %3378  ;;  %3388 = vpow2.f32 %v3016_v14  ;;  %v1899_v17 = vpack.c.bf16 %v3377_v15, %v3375_v13 }
 0x1e6   : > { %v1714_v18 = vadd.f32 1.0, %v3379_v16  ;;  %v1313_v20 = vpop.f32.mrb[28].mxu0 }
 0x1e7   : > { %v3381_v21 = vpop.eup %3380  ;;  %v1314_v22 = vadd.f32 %v4369_v32, %v1313_v20  ;;  %v1315_v23 = vpop.f32.mrb[29].mxu0  ;;  %2099 = vmatmul.mubr.bf16.gmra.mrb[12].mxu1 %v1899_v17 }
 0x1e8   : > { %v1715_v24 = vadd.f32 1.0, %v3381_v21  ;;  %v1316_v25 = vpop.f32.mrb[30].mxu0  ;;  %2108 = vmatprep.mubr.bf16.mxu1 %v3803_v0  ;;  %3390 = vrcp.f32 %v1714_v18 }
 0x1e9   : > { %v3017_v26 = vmul.f32 -1.442695, %v1314_v22  ;;  %v1317_v27 = vadd.f32 %v4369_v32, %v1316_v25  ;;  %v1318_v28 = vpop.f32.mrb[31].mxu0 }
 0x1ea   : > { %3392 = vrcp.f32 %v1715_v24  ;;  %v3383_v29 = vpop.eup %3382 }
 0x1eb   : > { %3394 = vpow2.f32 %v3017_v26  ;;  %v3018_v30 = vmul.f32 -1.442695, %v1317_v27 }
 0x1ec   : > { %v3385_v37 = vpop.eup %3384 }
 0x1ed   : > { %v3387_v33 = vpop.eup %3386  ;;  %3396 = vpow2.f32 %v3018_v30  ;;  %v1900_v34 = vpack.c.bf16 %v3385_v37, %v3383_v29 }
 0x1ee   : > { %v1716_v35 = vadd.f32 1.0, %v3387_v33  ;;  %v1321_v36 = vpop.f32.mrb[32].mxu0 }
 0x1ef   : > { %v3389_v38 = vpop.eup %3388  ;;  %v1322_v39 = vadd.f32 %v4369_v32, %v1321_v36  ;;  %v1323_v40 = vpop.f32.mrb[33].mxu0  ;;  %2109 = vmatmul.mubr.bf16.gmra.mrb[16].mxu1 %v1900_v34 }
 0x1f0   : > { %v1717_v41 = vadd.f32 1.0, %v3389_v38  ;;  %v1324_v42 = vpop.f32.mrb[34].mxu0  ;;  %2118 = vmatprep.mubr.bf16.mxu1 %v3803_v0  ;;  %3398 = vrcp.f32 %v1716_v35 }
 0x1f1   : > { %v3019_v43 = vmul.f32 -1.442695, %v1322_v39  ;;  %v1325_v44 = vadd.f32 %v4369_v32, %v1324_v42  ;;  %v1326_v45 = vpop.f32.mrb[35].mxu0 }
 0x1f2   : > { %3400 = vrcp.f32 %v1717_v41  ;;  %v3391_v46 = vpop.eup %3390 }
 0x1f3   : > { %3402 = vpow2.f32 %v3019_v43  ;;  %v3020_v47 = vmul.f32 -1.442695, %v1325_v44 }
 0x1f4   : > { %v3393_v48 = vpop.eup %3392 }
 0x1f5   : > { %v3395_v49 = vpop.eup %3394  ;;  %3404 = vpow2.f32 %v3020_v47  ;;  %v1901_v50 = vpack.c.bf16 %v3393_v48, %v3391_v46 }
 0x1f6   : > { %v1718_v51 = vadd.f32 1.0, %v3395_v49  ;;  %v1329_v52 = vpop.f32.mrb[36].mxu0 }
 0x1f7   : > { %v3397_v53 = vpop.eup %3396  ;;  %v1330_v54 = vadd.f32 %v4369_v32, %v1329_v52  ;;  %v1331_v55 = vpop.f32.mrb[37].mxu0  ;;  %2119 = vmatmul.mubr.bf16.gmra.mrb[20].mxu1 %v1901_v50 }
 0x1f8   : > { %v1719_v56 = vadd.f32 1.0, %v3397_v53  ;;  %v1332_v57 = vpop.f32.mrb[38].mxu0  ;;  %2128 = vmatprep.mubr.bf16.mxu1 %v3803_v0  ;;  %3406 = vrcp.f32 %v1718_v51 }
 0x1f9   : > { %v3021_v58 = vmul.f32 -1.442695, %v1330_v54  ;;  %v1333_v59 = vadd.f32 %v4369_v32, %v1332_v57  ;;  %v1334_v60 = vpop.f32.mrb[39].mxu0 }
 0x1fa   : > { %3408 = vrcp.f32 %v1719_v56  ;;  %v3399_v61 = vpop.eup %3398 }
 0x1fb   : > { %3410 = vpow2.f32 %v3021_v58  ;;  %v3022_v62 = vmul.f32 -1.442695, %v1333_v59 }
 0x1fc   : > { %v3401_v63 = vpop.eup %3400 }
 0x1fd   : > { %v3403_v1 = vpop.eup %3402  ;;  %3412 = vpow2.f32 %v3022_v62  ;;  %v1902_v2 = vpack.c.bf16 %v3401_v63, %v3399_v61 }
 0x1fe   : > { %v1720_v3 = vadd.f32 1.0, %v3403_v1  ;;  %v1337_v4 = vpop.f32.mrb[40].mxu0 }
 0x1ff   : > { %v3405_v5 = vpop.eup %3404  ;;  %v1338_v7 = vadd.f32 %v4369_v32, %v1337_v4  ;;  %v1339_v9 = vpop.f32.mrb[41].mxu0  ;;  %2129 = vmatmul.mubr.bf16.gmra.mrb[24].mxu1 %v1902_v2 }
 0x200   : > { %v1721_v19 = vadd.f32 1.0, %v3405_v5  ;;  %v1340_v10 = vpop.f32.mrb[42].mxu0  ;;  %2138 = vmatprep.mubr.bf16.mxu1 %v3803_v0  ;;  %3414 = vrcp.f32 %v1720_v3 }
 0x201   : > { %v3023_v11 = vmul.f32 -1.442695, %v1338_v7  ;;  %v1341_v12 = vadd.f32 %v4369_v32, %v1340_v10  ;;  %v1342_v13 = vpop.f32.mrb[43].mxu0 }
 0x202   : > { %3416 = vrcp.f32 %v1721_v19  ;;  %v3407_v14 = vpop.eup %3406 }
 0x203   : > { %3418 = vpow2.f32 %v3023_v11  ;;  %v3024_v15 = vmul.f32 -1.442695, %v1341_v12 }
 0x204   : > { %v3409_v16 = vpop.eup %3408 }
 0x205   : > { %v3411_v17 = vpop.eup %3410  ;;  %3420 = vpow2.f32 %v3024_v15  ;;  %v1903_v18 = vpack.c.bf16 %v3409_v16, %v3407_v14 }
 0x206   : > { %v1722_v20 = vadd.f32 1.0, %v3411_v17  ;;  %v1345_v21 = vpop.f32.mrb[44].mxu0 }
 0x207   : > { %v3413_v22 = vpop.eup %3412  ;;  %v1346_v23 = vadd.f32 %v4369_v32, %v1345_v21  ;;  %v1347_v24 = vpop.f32.mrb[45].mxu0  ;;  %2139 = vmatmul.mubr.bf16.gmra.mrb[28].mxu1 %v1903_v18 }
 0x208   : > { %v1723_v25 = vadd.f32 1.0, %v3413_v22  ;;  %v1348_v26 = vpop.f32.mrb[46].mxu0  ;;  %2148 = vmatprep.mubr.bf16.mxu1 %v3803_v0  ;;  %3422 = vrcp.f32 %v1722_v20 }
 0x209   : > { %v3025_v27 = vmul.f32 -1.442695, %v1346_v23  ;;  %v1349_v28 = vadd.f32 %v4369_v32, %v1348_v26  ;;  %v1350_v29 = vpop.f32.mrb[47].mxu0 }
 0x20a   : > { %3424 = vrcp.f32 %v1723_v25  ;;  %v3415_v30 = vpop.eup %3414 }
 0x20b   : > { %3426 = vpow2.f32 %v3025_v27  ;;  %v3026_v37 = vmul.f32 -1.442695, %v1349_v28 }
 0x20c   : > { %v3417_v33 = vpop.eup %3416 }
 0x20d   : > { %v3419_v34 = vpop.eup %3418  ;;  %3428 = vpow2.f32 %v3026_v37  ;;  %v1904_v35 = vpack.c.bf16 %v3417_v33, %v3415_v30 }
 0x20e   : > { %v1724_v36 = vadd.f32 1.0, %v3419_v34  ;;  %v1353_v38 = vpop.f32.mrb[48].mxu0 }
 0x20f   : > { %v3421_v39 = vpop.eup %3420  ;;  %v1354_v40 = vadd.f32 %v4369_v32, %v1353_v38  ;;  %v1355_v41 = vpop.f32.mrb[49].mxu0  ;;  %2149 = vmatmul.mubr.bf16.gmra.mrb[32].mxu1 %v1904_v35 }
 0x210   : > { %v1725_v42 = vadd.f32 1.0, %v3421_v39  ;;  %v1356_v43 = vpop.f32.mrb[50].mxu0  ;;  %2158 = vmatprep.mubr.bf16.mxu1 %v3803_v0  ;;  %3430 = vrcp.f32 %v1724_v36 }
 0x211   : > { %v3027_v44 = vmul.f32 -1.442695, %v1354_v40  ;;  %v1357_v45 = vadd.f32 %v4369_v32, %v1356_v43  ;;  %v1358_v46 = vpop.f32.mrb[51].mxu0 }
 0x212   : > { %3432 = vrcp.f32 %v1725_v42  ;;  %v3423_v47 = vpop.eup %3422 }
 0x213   : > { %3434 = vpow2.f32 %v3027_v44  ;;  %v3028_v48 = vmul.f32 -1.442695, %v1357_v45 }
 0x214   : > { %v3425_v49 = vpop.eup %3424 }
 0x215   : > { %v3427_v50 = vpop.eup %3426  ;;  %3436 = vpow2.f32 %v3028_v48  ;;  %v1905_v51 = vpack.c.bf16 %v3425_v49, %v3423_v47 }
 0x216   : > { %v1726_v52 = vadd.f32 1.0, %v3427_v50  ;;  %v1361_v53 = vpop.f32.mrb[52].mxu0 }
 0x217   : > { %v3429_v54 = vpop.eup %3428  ;;  %v1362_v55 = vadd.f32 %v4369_v32, %v1361_v53  ;;  %v1363_v56 = vpop.f32.mrb[53].mxu0  ;;  %2159 = vmatmul.mubr.bf16.gmra.mrb[36].mxu1 %v1905_v51 }
 0x218   : > { %v1727_v57 = vadd.f32 1.0, %v3429_v54  ;;  %v1364_v58 = vpop.f32.mrb[54].mxu0  ;;  %2168 = vmatprep.mubr.bf16.mxu1 %v3803_v0  ;;  %3438 = vrcp.f32 %v1726_v52 }
 0x219   : > { %v3029_v59 = vmul.f32 -1.442695, %v1362_v55  ;;  %v1365_v60 = vadd.f32 %v4369_v32, %v1364_v58  ;;  %v1366_v61 = vpop.f32.mrb[55].mxu0 }
 0x21a   : > { %3440 = vrcp.f32 %v1727_v57  ;;  %v3431_v62 = vpop.eup %3430 }
 0x21b   : > { %3442 = vpow2.f32 %v3029_v59  ;;  %v3030_v63 = vmul.f32 -1.442695, %v1365_v60 }
 0x21c   : > { %v3433_v1 = vpop.eup %3432 }
 0x21d   : > { %v3435_v2 = vpop.eup %3434  ;;  %3444 = vpow2.f32 %v3030_v63  ;;  %v1906_v3 = vpack.c.bf16 %v3433_v1, %v3431_v62 }
 0x21e   : > { %v1728_v4 = vadd.f32 1.0, %v3435_v2  ;;  %v1369_v5 = vpop.f32.mrb[56].mxu0 }
 0x21f   : > { %v3437_v7 = vpop.eup %3436  ;;  %v1370_v9 = vadd.f32 %v4369_v32, %v1369_v5  ;;  %v1371_v19 = vpop.f32.mrb[57].mxu0  ;;  %2169 = vmatmul.mubr.bf16.gmra.mrb[40].mxu1 %v1906_v3 }
 0x220   : > { %v1729_v10 = vadd.f32 1.0, %v3437_v7  ;;  %v1372_v11 = vpop.f32.mrb[58].mxu0  ;;  %2178 = vmatprep.mubr.bf16.mxu1 %v3803_v0  ;;  %3446 = vrcp.f32 %v1728_v4 }
 0x221   : > { %v3031_v12 = vmul.f32 -1.442695, %v1370_v9  ;;  %v1373_v13 = vadd.f32 %v4369_v32, %v1372_v11  ;;  %v1374_v14 = vpop.f32.mrb[59].mxu0 }
 0x222   : > { %3448 = vrcp.f32 %v1729_v10  ;;  %v3439_v15 = vpop.eup %3438 }
 0x223   : > { %3450 = vpow2.f32 %v3031_v12  ;;  %v3032_v16 = vmul.f32 -1.442695, %v1373_v13 }
 0x224   : > { %v3441_v17 = vpop.eup %3440 }
 0x225   : > { %v3443_v18 = vpop.eup %3442  ;;  %3452 = vpow2.f32 %v3032_v16  ;;  %v1907_v20 = vpack.c.bf16 %v3441_v17, %v3439_v15 }
 0x226   : > { %v1730_v21 = vadd.f32 1.0, %v3443_v18  ;;  %v1377_v22 = vpop.f32.mrb[60].mxu0 }
 0x227   : > { %v3445_v23 = vpop.eup %3444  ;;  %v1378_v24 = vadd.f32 %v4369_v32, %v1377_v22  ;;  %v1379_v25 = vpop.f32.mrb[61].mxu0  ;;  %2179 = vmatmul.mubr.bf16.gmra.mrb[44].mxu1 %v1907_v20 }
 0x228   : > { %v1731_v26 = vadd.f32 1.0, %v3445_v23  ;;  %v1380_v27 = vpop.f32.mrb[62].mxu0  ;;  %2188 = vmatprep.mubr.bf16.mxu1 %v3803_v0  ;;  %3454 = vrcp.f32 %v1730_v21 }
 0x229   : > { %v3033_v28 = vmul.f32 -1.442695, %v1378_v24  ;;  %v1381_v29 = vadd.f32 %v4369_v32, %v1380_v27  ;;  %v1382_v30 = vpop.f32.mrb[63].mxu0 }
 0x22a   : > { %3456 = vrcp.f32 %v1731_v26  ;;  %v3447_v37 = vpop.eup %3446 }
 0x22b   : > { %3458 = vpow2.f32 %v3033_v28  ;;  %v3034_v33 = vmul.f32 -1.442695, %v1381_v29 }
 0x22c   : > { %v3449_v34 = vpop.eup %3448 }
 0x22d   : > { %v3451_v35 = vpop.eup %3450  ;;  %3460 = vpow2.f32 %v3034_v33  ;;  %v1908_v36 = vpack.c.bf16 %v3449_v34, %v3447_v37 }
 0x22e   : > { %v1732_v38 = vadd.f32 1.0, %v3451_v35  ;;  %v1385_v39 = vpop.f32.mrb[64].mxu0 }
 0x22f   : > { %v3453_v40 = vpop.eup %3452  ;;  %v1386_v41 = vadd.f32 %v4369_v32, %v1385_v39  ;;  %v1387_v42 = vpop.f32.mrb[65].mxu0  ;;  %2189 = vmatmul.mubr.bf16.gmra.mrb[48].mxu1 %v1908_v36 }
 0x230   : > { %v1733_v43 = vadd.f32 1.0, %v3453_v40  ;;  %v1388_v44 = vpop.f32.mrb[66].mxu0  ;;  %2198 = vmatprep.mubr.bf16.mxu1 %v3803_v0  ;;  %3462 = vrcp.f32 %v1732_v38 }
 0x231   : > { %v3035_v45 = vmul.f32 -1.442695, %v1386_v41  ;;  %v1389_v46 = vadd.f32 %v4369_v32, %v1388_v44  ;;  %v1390_v47 = vpop.f32.mrb[67].mxu0 }
 0x232   : > { %3464 = vrcp.f32 %v1733_v43  ;;  %v3455_v48 = vpop.eup %3454 }
 0x233   : > { %3466 = vpow2.f32 %v3035_v45  ;;  %v3036_v49 = vmul.f32 -1.442695, %v1389_v46 }
 0x234   : > { %v3457_v50 = vpop.eup %3456 }
 0x235   : > { %v3459_v51 = vpop.eup %3458  ;;  %3468 = vpow2.f32 %v3036_v49  ;;  %v1909_v52 = vpack.c.bf16 %v3457_v50, %v3455_v48 }
 0x236   : > { %v1734_v53 = vadd.f32 1.0, %v3459_v51  ;;  %v1393_v54 = vpop.f32.mrb[68].mxu0 }
 0x237   : > { %v3461_v55 = vpop.eup %3460  ;;  %v1394_v56 = vadd.f32 %v4369_v32, %v1393_v54  ;;  %v1395_v57 = vpop.f32.mrb[69].mxu0  ;;  %2199 = vmatmul.mubr.bf16.gmra.mrb[52].mxu1 %v1909_v52 }
 0x238   : > { %v1735_v58 = vadd.f32 1.0, %v3461_v55  ;;  %v1396_v59 = vpop.f32.mrb[70].mxu0  ;;  %2208 = vmatprep.mubr.bf16.mxu1 %v3803_v0  ;;  %3470 = vrcp.f32 %v1734_v53 }
 0x239   : > { %v3037_v60 = vmul.f32 -1.442695, %v1394_v56  ;;  %v1397_v61 = vadd.f32 %v4369_v32, %v1396_v59  ;;  %v1398_v62 = vpop.f32.mrb[71].mxu0 }
 0x23a   : > { %3472 = vrcp.f32 %v1735_v58  ;;  %v3463_v63 = vpop.eup %3462 }
 0x23b   : > { %3474 = vpow2.f32 %v3037_v60  ;;  %v3038_v1 = vmul.f32 -1.442695, %v1397_v61 }
 0x23c   : > { %v3465_v2 = vpop.eup %3464 }
 0x23d   : > { %v3467_v3 = vpop.eup %3466  ;;  %3476 = vpow2.f32 %v3038_v1  ;;  %v1910_v4 = vpack.c.bf16 %v3465_v2, %v3463_v63 }
 0x23e   : > { %v1736_v5 = vadd.f32 1.0, %v3467_v3  ;;  %v1401_v7 = vpop.f32.mrb[72].mxu0 }
 0x23f   : > { %v3469_v9 = vpop.eup %3468  ;;  %v1402_v19 = vadd.f32 %v4369_v32, %v1401_v7  ;;  %v1403_v10 = vpop.f32.mrb[73].mxu0  ;;  %2209 = vmatmul.mubr.bf16.gmra.mrb[56].mxu1 %v1910_v4 }
 0x240   : > { %v1737_v11 = vadd.f32 1.0, %v3469_v9  ;;  %v1404_v12 = vpop.f32.mrb[74].mxu0  ;;  %2218 = vmatprep.mubr.bf16.mxu1 %v3803_v0  ;;  %3478 = vrcp.f32 %v1736_v5  ;;  %v4468_v10 = vld [vmem:[%s4764_s4] ss:$0 sm:$0xff] }
 0x241   : > { %v3039_v13 = vmul.f32 -1.442695, %v1402_v19  ;;  %v1405_v14 = vadd.f32 %v4369_v32, %v1404_v12  ;;  %v1406_v15 = vpop.f32.mrb[75].mxu0 }
 0x242   : > { %3480 = vrcp.f32 %v1737_v11  ;;  %v3471_v16 = vpop.eup %3470 }
 0x243   : > { %3482 = vpow2.f32 %v3039_v13  ;;  %v3040_v17 = vmul.f32 -1.442695, %v1405_v14 }
 0x244   : > { %v3473_v18 = vpop.eup %3472 }
 0x245   : > { %v3475_v20 = vpop.eup %3474  ;;  %3484 = vpow2.f32 %v3040_v17  ;;  %v1911_v21 = vpack.c.bf16 %v3473_v18, %v3471_v16 }
 0x246   : > { %v1738_v22 = vadd.f32 1.0, %v3475_v20  ;;  %v1409_v23 = vpop.f32.mrb[76].mxu0 }
 0x247   : > { %v3477_v24 = vpop.eup %3476  ;;  %v1410_v25 = vadd.f32 %v4369_v32, %v1409_v23  ;;  %v1411_v26 = vpop.f32.mrb[77].mxu0  ;;  %2219 = vmatmul.mubr.bf16.gmra.mrb[60].mxu1 %v1911_v21 }
 0x248   : > { %v1739_v27 = vadd.f32 1.0, %v3477_v24  ;;  %v1412_v28 = vpop.f32.mrb[78].mxu0  ;;  %2228 = vmatprep.mubr.bf16.mxu1 %v3803_v0  ;;  %3486 = vrcp.f32 %v1738_v22 }
 0x249   : > { %v3041_v29 = vmul.f32 -1.442695, %v1410_v25  ;;  %v1413_v30 = vadd.f32 %v4369_v32, %v1412_v28  ;;  %v1414_v37 = vpop.f32.mrb[79].mxu0 }
 0x24a   : > { %3488 = vrcp.f32 %v1739_v27  ;;  %v3479_v33 = vpop.eup %3478 }
 0x24b   : > { %3490 = vpow2.f32 %v3041_v29  ;;  %v3042_v34 = vmul.f32 -1.442695, %v1413_v30 }
 0x24c   : > { %v3481_v35 = vpop.eup %3480 }
 0x24d   : > { %v3483_v36 = vpop.eup %3482  ;;  %3492 = vpow2.f32 %v3042_v34  ;;  %v1912_v38 = vpack.c.bf16 %v3481_v35, %v3479_v33 }
 0x24e   : > { %v1740_v39 = vadd.f32 1.0, %v3483_v36  ;;  %v1417_v40 = vpop.f32.mrb[80].mxu0 }
 0x24f   : > { %v3485_v41 = vpop.eup %3484  ;;  %v1418_v42 = vadd.f32 %v4369_v32, %v1417_v40  ;;  %v1419_v43 = vpop.f32.mrb[81].mxu0  ;;  %2229 = vmatmul.mubr.bf16.gmra.mrb[64].mxu1 %v1912_v38 }
 0x250   : > { %v1741_v44 = vadd.f32 1.0, %v3485_v41  ;;  %v1420_v45 = vpop.f32.mrb[82].mxu0  ;;  %2238 = vmatprep.mubr.bf16.mxu1 %v3803_v0  ;;  %3494 = vrcp.f32 %v1740_v39 }
 0x251   : > { %v3043_v46 = vmul.f32 -1.442695, %v1418_v42  ;;  %v1421_v47 = vadd.f32 %v4369_v32, %v1420_v45  ;;  %v1422_v48 = vpop.f32.mrb[83].mxu0 }
 0x252   : > { %3496 = vrcp.f32 %v1741_v44  ;;  %v3487_v49 = vpop.eup %3486 }
 0x253   : > { %3498 = vpow2.f32 %v3043_v46  ;;  %v3044_v50 = vmul.f32 -1.442695, %v1421_v47 }
 0x254   : > { %v3489_v51 = vpop.eup %3488 }
 0x255   : > { %v3491_v52 = vpop.eup %3490  ;;  %3500 = vpow2.f32 %v3044_v50  ;;  %v1913_v53 = vpack.c.bf16 %v3489_v51, %v3487_v49 }
 0x256   : > { %v1742_v54 = vadd.f32 1.0, %v3491_v52  ;;  %v1425_v55 = vpop.f32.mrb[84].mxu0 }
 0x257   : > { %v3493_v56 = vpop.eup %3492  ;;  %v1426_v57 = vadd.f32 %v4369_v32, %v1425_v55  ;;  %v1427_v58 = vpop.f32.mrb[85].mxu0  ;;  %2239 = vmatmul.mubr.bf16.gmra.mrb[68].mxu1 %v1913_v53 }
 0x258   : > { %v1743_v59 = vadd.f32 1.0, %v3493_v56  ;;  %v1428_v60 = vpop.f32.mrb[86].mxu0  ;;  %2248 = vmatprep.mubr.bf16.mxu1 %v3803_v0  ;;  %3502 = vrcp.f32 %v1742_v54 }
 0x259   : > { %v3045_v61 = vmul.f32 -1.442695, %v1426_v57  ;;  %v1429_v62 = vadd.f32 %v4369_v32, %v1428_v60  ;;  %v1430_v63 = vpop.f32.mrb[87].mxu0 }
 0x25a   : > { %3504 = vrcp.f32 %v1743_v59  ;;  %v3495_v1 = vpop.eup %3494 }
 0x25b   : > { %3506 = vpow2.f32 %v3045_v61  ;;  %v3046_v2 = vmul.f32 -1.442695, %v1429_v62 }
 0x25c   : > { %v3497_v3 = vpop.eup %3496 }
 0x25d   : > { %v3499_v4 = vpop.eup %3498  ;;  %3508 = vpow2.f32 %v3046_v2  ;;  %v1914_v5 = vpack.c.bf16 %v3497_v3, %v3495_v1 }
 0x25e   : > { %v1744_v7 = vadd.f32 1.0, %v3499_v4  ;;  %v1433_v9 = vpop.f32.mrb[88].mxu0 }
 0x25f   : > { %v3501_v19 = vpop.eup %3500  ;;  %v1434_v11 = vadd.f32 %v4468_v10, %v1433_v9  ;;  %v1435_v32 = vpop.f32.mrb[89].mxu0  ;;  %2249 = vmatmul.mubr.bf16.gmra.mrb[72].mxu1 %v1914_v5 }
 0x260   : > { %v1745_v12 = vadd.f32 1.0, %v3501_v19  ;;  %v1436_v13 = vpop.f32.mrb[90].mxu0  ;;  %2258 = vmatprep.mubr.bf16.mxu1 %v3803_v0  ;;  %3510 = vrcp.f32 %v1744_v7 }
 0x261   : > { %v3047_v14 = vmul.f32 -1.442695, %v1434_v11  ;;  %v1437_v15 = vadd.f32 %v4468_v10, %v1436_v13  ;;  %v1438_v16 = vpop.f32.mrb[91].mxu0 }
 0x262   : > { %3512 = vrcp.f32 %v1745_v12  ;;  %v3503_v17 = vpop.eup %3502 }
 0x263   : > { %3514 = vpow2.f32 %v3047_v14  ;;  %v3048_v18 = vmul.f32 -1.442695, %v1437_v15 }
 0x264   : > { %v3505_v20 = vpop.eup %3504 }
 0x265   : > { %v3507_v21 = vpop.eup %3506  ;;  %3516 = vpow2.f32 %v3048_v18  ;;  %v1915_v22 = vpack.c.bf16 %v3505_v20, %v3503_v17 }
 0x266   : > { %v1746_v23 = vadd.f32 1.0, %v3507_v21  ;;  %v1441_v24 = vpop.f32.mrb[92].mxu0 }
 0x267   : > { %v3509_v25 = vpop.eup %3508  ;;  %v1442_v26 = vadd.f32 %v4468_v10, %v1441_v24  ;;  %v1443_v27 = vpop.f32.mrb[93].mxu0  ;;  %2259 = vmatmul.mubr.bf16.gmra.mrb[76].mxu1 %v1915_v22 }
 0x268   : > { %v1747_v28 = vadd.f32 1.0, %v3509_v25  ;;  %v1444_v29 = vpop.f32.mrb[94].mxu0  ;;  %2268 = vmatprep.mubr.bf16.mxu1 %v3803_v0  ;;  %3518 = vrcp.f32 %v1746_v23 }
 0x269   : > { %v3049_v30 = vmul.f32 -1.442695, %v1442_v26  ;;  %v1445_v37 = vadd.f32 %v4468_v10, %v1444_v29  ;;  %v1446_v33 = vpop.f32.mrb[95].mxu0 }
 0x26a   : > { %3520 = vrcp.f32 %v1747_v28  ;;  %v3511_v34 = vpop.eup %3510 }
 0x26b   : > { %3522 = vpow2.f32 %v3049_v30  ;;  %v3050_v35 = vmul.f32 -1.442695, %v1445_v37 }
 0x26c   : > { %v3513_v36 = vpop.eup %3512 }
 0x26d   : > { %v3515_v38 = vpop.eup %3514  ;;  %3524 = vpow2.f32 %v3050_v35  ;;  %v1916_v39 = vpack.c.bf16 %v3513_v36, %v3511_v34 }
 0x26e   : > { %v1748_v40 = vadd.f32 1.0, %v3515_v38  ;;  %v1449_v41 = vpop.f32.mrb[96].mxu0 }
 0x26f   : > { %v3517_v42 = vpop.eup %3516  ;;  %v1450_v43 = vadd.f32 %v4468_v10, %v1449_v41  ;;  %v1451_v44 = vpop.f32.mrb[97].mxu0  ;;  %2269 = vmatmul.mubr.bf16.gmra.mrb[80].mxu1 %v1916_v39 }
 0x270   : > { %v1749_v45 = vadd.f32 1.0, %v3517_v42  ;;  %v1452_v46 = vpop.f32.mrb[98].mxu0  ;;  %2278 = vmatprep.mubr.bf16.mxu1 %v3803_v0  ;;  %3526 = vrcp.f32 %v1748_v40 }
 0x271   : > { %v3051_v47 = vmul.f32 -1.442695, %v1450_v43  ;;  %v1453_v48 = vadd.f32 %v4468_v10, %v1452_v46  ;;  %v1454_v49 = vpop.f32.mrb[99].mxu0 }
 0x272   : > { %3528 = vrcp.f32 %v1749_v45  ;;  %v3519_v50 = vpop.eup %3518 }
 0x273   : > { %3530 = vpow2.f32 %v3051_v47  ;;  %v3052_v51 = vmul.f32 -1.442695, %v1453_v48 }
 0x274   : > { %v3521_v52 = vpop.eup %3520 }
 0x275   : > { %v3523_v53 = vpop.eup %3522  ;;  %3532 = vpow2.f32 %v3052_v51  ;;  %v1917_v54 = vpack.c.bf16 %v3521_v52, %v3519_v50 }
 0x276   : > { %v1750_v55 = vadd.f32 1.0, %v3523_v53  ;;  %v1457_v56 = vpop.f32.mrb[100].mxu0 }
 0x277   : > { %v3525_v57 = vpop.eup %3524  ;;  %v1458_v58 = vadd.f32 %v4468_v10, %v1457_v56  ;;  %v1459_v59 = vpop.f32.mrb[101].mxu0  ;;  %2279 = vmatmul.mubr.bf16.gmra.mrb[84].mxu1 %v1917_v54 }
 0x278   : > { %v1751_v60 = vadd.f32 1.0, %v3525_v57  ;;  %v1460_v61 = vpop.f32.mrb[102].mxu0  ;;  %2288 = vmatprep.mubr.bf16.mxu1 %v3803_v0  ;;  %3534 = vrcp.f32 %v1750_v55 }
 0x279   : > { %v3053_v62 = vmul.f32 -1.442695, %v1458_v58  ;;  %v1461_v63 = vadd.f32 %v4468_v10, %v1460_v61  ;;  %v1462_v1 = vpop.f32.mrb[103].mxu0 }
 0x27a   : > { %3536 = vrcp.f32 %v1751_v60  ;;  %v3527_v2 = vpop.eup %3526 }
 0x27b   : > { %3538 = vpow2.f32 %v3053_v62  ;;  %v3054_v3 = vmul.f32 -1.442695, %v1461_v63 }
 0x27c   : > { %v3529_v4 = vpop.eup %3528 }
 0x27d   : > { %v3531_v5 = vpop.eup %3530  ;;  %3540 = vpow2.f32 %v3054_v3  ;;  %v1918_v7 = vpack.c.bf16 %v3529_v4, %v3527_v2 }
 0x27e   : > { %v1752_v9 = vadd.f32 1.0, %v3531_v5  ;;  %v1465_v19 = vpop.f32.mrb[104].mxu0 }
 0x27f   : > { %v3533_v11 = vpop.eup %3532  ;;  %v1466_v32 = vadd.f32 %v4468_v10, %v1465_v19  ;;  %v1467_v12 = vpop.f32.mrb[105].mxu0  ;;  %2289 = vmatmul.mubr.bf16.gmra.mrb[88].mxu1 %v1918_v7  ;;  %v1944_v7 = vld [vmem:[%s4766_s6] sm:$0x3] }
 0x280   : > { %v1753_v13 = vadd.f32 1.0, %v3533_v11  ;;  %v1468_v14 = vpop.f32.mrb[106].mxu0  ;;  %2298 = vmatprep.mubr.bf16.mxu1 %v3803_v0  ;;  %3542 = vrcp.f32 %v1752_v9 }
 0x281   : > { %v3055_v15 = vmul.f32 -1.442695, %v1466_v32  ;;  %v1469_v16 = vadd.f32 %v4468_v10, %v1468_v14  ;;  %v1470_v17 = vpop.f32.mrb[107].mxu0 }
 0x282   : > { %3544 = vrcp.f32 %v1753_v13  ;;  %v3535_v18 = vpop.eup %3534 }
 0x283   : > { %3546 = vpow2.f32 %v3055_v15  ;;  %v3056_v20 = vmul.f32 -1.442695, %v1469_v16  ;;  %v4500_v15 = vrot.slane %v1944_v7, %v760_v31 }
 0x284   : > { %v3537_v21 = vpop.eup %3536 }
 0x285   : > { %v3539_v22 = vpop.eup %3538  ;;  %3548 = vpow2.f32 %v3056_v20  ;;  %v1919_v23 = vpack.c.bf16 %v3537_v21, %v3535_v18  ;;  %v4504_v18 = vrot.slane %v1944_v7, %v764_v8 }
 0x286   : > { %v1754_v24 = vadd.f32 1.0, %v3539_v22  ;;  %v1473_v25 = vpop.f32.mrb[108].mxu0 }
 0x287   : > { %v3541_v26 = vpop.eup %3540  ;;  %v1474_v27 = vadd.f32 %v4468_v10, %v1473_v25  ;;  %v1475_v28 = vpop.f32.mrb[109].mxu0  ;;  %2299 = vmatmul.mubr.bf16.gmra.mrb[92].mxu1 %v1919_v23 }
 0x288   : > { %v1755_v29 = vadd.f32 1.0, %v3541_v26  ;;  %v1476_v30 = vpop.f32.mrb[110].mxu0  ;;  %2308 = vmatprep.mubr.bf16.mxu1 %v3803_v0  ;;  %3550 = vrcp.f32 %v1754_v24 }
 0x289   : > { %v3057_v37 = vmul.f32 -1.442695, %v1474_v27  ;;  %v1477_v33 = vadd.f32 %v4468_v10, %v1476_v30  ;;  %v1478_v34 = vpop.f32.mrb[111].mxu0 }
 0x28a   : > { %3552 = vrcp.f32 %v1755_v29  ;;  %v3543_v35 = vpop.eup %3542 }
 0x28b   : > { %3554 = vpow2.f32 %v3057_v37  ;;  %v3058_v36 = vmul.f32 -1.442695, %v1477_v33 }
 0x28c   : > { %v3545_v38 = vpop.eup %3544 }
 0x28d   : > { %v3547_v39 = vpop.eup %3546  ;;  %3556 = vpow2.f32 %v3058_v36  ;;  %v1920_v40 = vpack.c.bf16 %v3545_v38, %v3543_v35 }
 0x28e   : > { %v1756_v41 = vadd.f32 1.0, %v3547_v39  ;;  %v1481_v42 = vpop.f32.mrb[112].mxu0 }
 0x28f   : > { %v3549_v43 = vpop.eup %3548  ;;  %v1482_v44 = vadd.f32 %v4468_v10, %v1481_v42  ;;  %v1483_v45 = vpop.f32.mrb[113].mxu0  ;;  %2309 = vmatmul.mubr.bf16.gmra.mrb[96].mxu1 %v1920_v40 }
 0x290   : > { %v1757_v46 = vadd.f32 1.0, %v3549_v43  ;;  %v1484_v47 = vpop.f32.mrb[114].mxu0  ;;  %2318 = vmatprep.mubr.bf16.mxu1 %v3803_v0  ;;  %3558 = vrcp.f32 %v1756_v41 }
 0x291   : > { %v3059_v48 = vmul.f32 -1.442695, %v1482_v44  ;;  %v1485_v49 = vadd.f32 %v4468_v10, %v1484_v47  ;;  %v1486_v50 = vpop.f32.mrb[115].mxu0 }
 0x292   : > { %3560 = vrcp.f32 %v1757_v46  ;;  %v3551_v51 = vpop.eup %3550 }
 0x293   : > { %3562 = vpow2.f32 %v3059_v48  ;;  %v3060_v52 = vmul.f32 -1.442695, %v1485_v49 }
 0x294   : > { %v3553_v53 = vpop.eup %3552 }
 0x295   : > { %v3555_v54 = vpop.eup %3554  ;;  %3564 = vpow2.f32 %v3060_v52  ;;  %v1921_v55 = vpack.c.bf16 %v3553_v53, %v3551_v51 }
 0x296   : > { %v1758_v56 = vadd.f32 1.0, %v3555_v54  ;;  %v1489_v57 = vpop.f32.mrb[116].mxu0 }
 0x297   : > { %v3557_v58 = vpop.eup %3556  ;;  %v1490_v59 = vadd.f32 %v4468_v10, %v1489_v57  ;;  %v1491_v60 = vpop.f32.mrb[117].mxu0  ;;  %2319 = vmatmul.mubr.bf16.gmra.mrb[100].mxu1 %v1921_v55 }
 0x298   : > { %v1759_v61 = vadd.f32 1.0, %v3557_v58  ;;  %v1492_v62 = vpop.f32.mrb[118].mxu0  ;;  %2328 = vmatprep.mubr.bf16.mxu1 %v3803_v0  ;;  %3566 = vrcp.f32 %v1758_v56 }
 0x299   : > { %v3061_v63 = vmul.f32 -1.442695, %v1490_v59  ;;  %v1493_v1 = vadd.f32 %v4468_v10, %v1492_v62  ;;  %v1494_v2 = vpop.f32.mrb[119].mxu0 }
 0x29a   : > { %3568 = vrcp.f32 %v1759_v61  ;;  %v3559_v3 = vpop.eup %3558 }
 0x29b   : > { %3570 = vpow2.f32 %v3061_v63  ;;  %v3062_v4 = vmul.f32 -1.442695, %v1493_v1 }
 0x29c   : > { %v3561_v5 = vpop.eup %3560 }
 0x29d   : > { %v3563_v9 = vpop.eup %3562  ;;  %3572 = vpow2.f32 %v3062_v4  ;;  %v1922_v19 = vpack.c.bf16 %v3561_v5, %v3559_v3 }
 0x29e   : > { %v1760_v11 = vadd.f32 1.0, %v3563_v9  ;;  %v1497_v32 = vpop.f32.mrb[120].mxu0 }
 0x29f   : > { %v3565_v12 = vpop.eup %3564  ;;  %v1498_v13 = vadd.f32 %v4468_v10, %v1497_v32  ;;  %v1499_v14 = vpop.f32.mrb[121].mxu0  ;;  %2329 = vmatmul.mubr.bf16.gmra.mrb[104].mxu1 %v1922_v19 }
 0x2a0   : > { %v1761_v16 = vadd.f32 1.0, %v3565_v12  ;;  %v1500_v17 = vpop.f32.mrb[122].mxu0  ;;  %2338 = vmatprep.mubr.bf16.mxu1 %v3803_v0  ;;  %3574 = vrcp.f32 %v1760_v11 }
 0x2a1   : > { %v3063_v20 = vmul.f32 -1.442695, %v1498_v13  ;;  %v1501_v21 = vadd.f32 %v4468_v10, %v1500_v17  ;;  %v1502_v22 = vpop.f32.mrb[123].mxu0 }
 0x2a2   : > { %3576 = vrcp.f32 %v1761_v16  ;;  %v2070_v23 = vpop.f32.mrb[0].mxu1  ;;  %v3567_v24 = vpop.eup %3566 }
 0x2a3   : > { %3578 = vpow2.f32 %v3063_v20  ;;  %v3064_v25 = vmul.f32 -1.442695, %v1501_v21  ;;  %v2071_v31 = vadd.f32 %v2070_v23, %v4500_v15  ;;  %v2072_v26 = vpop.f32.mrb[1].mxu1 }
 0x2a4   : > { %v3569_v27 = vpop.eup %3568  ;;  %v2073_v6 = vadd.f32 %v2072_v26, %v4504_v18  ;;  %v2074_v8 = vpop.f32.mrb[2].mxu1 }
 0x2a5   : > { %v3571_v28 = vpop.eup %3570  ;;  %3580 = vpow2.f32 %v3064_v25  ;;  %v2075_v29 = vadd.f32 %v2074_v8, %v4500_v15  ;;  %v2076_v30 = vpop.f32.mrb[3].mxu1  ;;  %v1923_v37 = vpack.c.bf16 %v3569_v27, %v3567_v24 }
 0x2a6   : > { %v1762_v33 = vadd.f32 1.0, %v3571_v28  ;;  %v3157_v34 = vpack.c.bf16 %v2073_v6, %v2071_v31  ;;  %v2077_v35 = vadd.f32 %v2076_v30, %v4504_v18  ;;  %v1505_v36 = vpop.f32.mrb[124].mxu0 }
 0x2a7   : > { %v3573_v38 = vpop.eup %3572  ;;  %v1506_v39 = vadd.f32 %v4468_v10, %v1505_v36  ;;  %v1507_v40 = vpop.f32.mrb[125].mxu0  ;;  %2339 = vmatmul.mubr.bf16.gmra.mrb[108].mxu1 %v1923_v37 }
 0x2a8   : > { %v1763_v41 = vadd.f32 1.0, %v3573_v38  ;;  %2773 = vst [vmem:[%s4514_s11] sm:$0xff] %v3157_v34  ;;  %v3158_v42 = vpack.c.bf16 %v2077_v35, %v2075_v29  ;;  %v1508_v43 = vpop.f32.mrb[126].mxu0  ;;  %2348 = vmatprep.mubr.bf16.mxu1 %v3803_v0  ;;  %3582 = vrcp.f32 %v1762_v33 }
 0x2a9   : > { %v3065_v44 = vmul.f32 -1.442695, %v1506_v39  ;;  %v1509_v45 = vadd.f32 %v4468_v10, %v1508_v43  ;;  %v1510_v46 = vpop.f32.mrb[127].mxu0 }
 0x2aa   : > { %3584 = vrcp.f32 %v1763_v41  ;;  %2774 = vst [vmem:[%s4514_s11 + $0x8] sm:$0xff] %v3158_v42  ;;  %v2080_v47 = vpop.f32.mrb[4].mxu1  ;;  %v3575_v48 = vpop.eup %3574 }
 0x2ab   : > { %3586 = vpow2.f32 %v3065_v44  ;;  %v3066_v49 = vmul.f32 -1.442695, %v1509_v45  ;;  %v2081_v50 = vadd.f32 %v2080_v47, %v4500_v15  ;;  %v2082_v51 = vpop.f32.mrb[5].mxu1 }
 0x2ac   : > { %v3577_v52 = vpop.eup %3576  ;;  %v2083_v53 = vadd.f32 %v2082_v51, %v4504_v18  ;;  %v2084_v54 = vpop.f32.mrb[6].mxu1 }
 0x2ad   : > { %v3579_v55 = vpop.eup %3578  ;;  %3588 = vpow2.f32 %v3066_v49  ;;  %v2085_v10 = vadd.f32 %v2084_v54, %v4500_v15  ;;  %v2086_v56 = vpop.f32.mrb[7].mxu1  ;;  %v1924_v57 = vpack.c.bf16 %v3577_v52, %v3575_v48 }
 0x2ae   : > { %v1764_v58 = vadd.f32 1.0, %v3579_v55  ;;  %v3159_v59 = vpack.c.bf16 %v2083_v53, %v2081_v50  ;;  %v2087_v60 = vadd.f32 %v2086_v56, %v4504_v18 }
 0x2af   : > { %v3581_v61 = vpop.eup %3580  ;;  %2349 = vmatmul.mubr.bf16.gmra.mrb[112].mxu1 %v1924_v57 }
 0x2b0   : > { %v1765_v62 = vadd.f32 1.0, %v3581_v61  ;;  %2775 = vst [vmem:[%s4514_s11 + $0x10] sm:$0xff] %v3159_v59  ;;  %v3160_v63 = vpack.c.bf16 %v2087_v60, %v2085_v10  ;;  %2358 = vmatprep.mubr.bf16.mxu1 %v3803_v0  ;;  %3590 = vrcp.f32 %v1764_v58 }
 0x2b2   : > { %3592 = vrcp.f32 %v1765_v62  ;;  %2776 = vst [vmem:[%s4514_s11 + $0x18] sm:$0xff] %v3160_v63  ;;  %v2090_v1 = vpop.f32.mrb[8].mxu1  ;;  %v3583_v2 = vpop.eup %3582 }
 0x2b3   : > { %v2091_v3 = vadd.f32 %v2090_v1, %v4500_v15  ;;  %v2092_v4 = vpop.f32.mrb[9].mxu1 }
 0x2b4   : > { %v3585_v5 = vpop.eup %3584  ;;  %v2093_v7 = vadd.f32 %v2092_v4, %v4504_v18  ;;  %v2094_v9 = vpop.f32.mrb[10].mxu1 }
 0x2b5   : > { %v3587_v19 = vpop.eup %3586  ;;  %v2095_v11 = vadd.f32 %v2094_v9, %v4500_v15  ;;  %v2096_v32 = vpop.f32.mrb[11].mxu1  ;;  %v1925_v12 = vpack.c.bf16 %v3585_v5, %v3583_v2 }
 0x2b6   : > { %v1766_v13 = vadd.f32 1.0, %v3587_v19  ;;  %v3161_v14 = vpack.c.bf16 %v2093_v7, %v2091_v3  ;;  %v2097_v16 = vadd.f32 %v2096_v32, %v4504_v18 }
 0x2b7   : > { %v3589_v17 = vpop.eup %3588  ;;  %2359 = vmatmul.mubr.bf16.gmra.mrb[116].mxu1 %v1925_v12 }
 0x2b8   : > { %v1767_v20 = vadd.f32 1.0, %v3589_v17  ;;  %2777 = vst [vmem:[%s4514_s11 + $0x20] sm:$0xff] %v3161_v14  ;;  %v3162_v21 = vpack.c.bf16 %v2097_v16, %v2095_v11  ;;  %2368 = vmatprep.mubr.bf16.mxu1 %v3803_v0  ;;  %3594 = vrcp.f32 %v1766_v13 }
 0x2ba   : > { %3596 = vrcp.f32 %v1767_v20  ;;  %2778 = vst [vmem:[%s4514_s11 + $0x28] sm:$0xff] %v3162_v21  ;;  %v2100_v22 = vpop.f32.mrb[12].mxu1  ;;  %v3591_v23 = vpop.eup %3590 }
 0x2bb   : > { %v2101_v24 = vadd.f32 %v2100_v22, %v4500_v15  ;;  %v2102_v25 = vpop.f32.mrb[13].mxu1 }
 0x2bc   : > { %v3593_v31 = vpop.eup %3592  ;;  %v2103_v26 = vadd.f32 %v2102_v25, %v4504_v18  ;;  %v2104_v27 = vpop.f32.mrb[14].mxu1 }
 0x2bd   : > { %v2105_v6 = vadd.f32 %v2104_v27, %v4500_v15  ;;  %v2106_v8 = vpop.f32.mrb[15].mxu1  ;;  %v1926_v28 = vpack.c.bf16 %v3593_v31, %v3591_v23 }
 0x2be   : > { %v3163_v29 = vpack.c.bf16 %v2103_v26, %v2101_v24  ;;  %v2107_v30 = vadd.f32 %v2106_v8, %v4504_v18 }
 0x2bf   : > { %2369 = vmatmul.mubr.bf16.gmra.mrb[120].mxu1 %v1926_v28 }
 0x2c0   : > { %2779 = vst [vmem:[%s4514_s11 + $0x30] sm:$0xff] %v3163_v29  ;;  %v3164_v37 = vpack.c.bf16 %v2107_v30, %v2105_v6  ;;  %2378 = vmatprep.mubr.bf16.mxu1 %v3803_v0 }
 0x2c2   : > { %2780 = vst [vmem:[%s4514_s11 + $0x38] sm:$0xff] %v3164_v37  ;;  %v2110_v33 = vpop.f32.mrb[16].mxu1  ;;  %v3595_v34 = vpop.eup %3594 }
 0x2c3   : > { %v2111_v35 = vadd.f32 %v2110_v33, %v4500_v15  ;;  %v2112_v36 = vpop.f32.mrb[17].mxu1 }
 0x2c4   : > { %v3597_v38 = vpop.eup %3596  ;;  %v2113_v39 = vadd.f32 %v2112_v36, %v4504_v18  ;;  %v2114_v40 = vpop.f32.mrb[18].mxu1 }
 0x2c5   : > { %v2115_v41 = vadd.f32 %v2114_v40, %v4500_v15  ;;  %v2116_v42 = vpop.f32.mrb[19].mxu1  ;;  %v1927_v43 = vpack.c.bf16 %v3597_v38, %v3595_v34 }
 0x2c6   : > { %v3165_v44 = vpack.c.bf16 %v2113_v39, %v2111_v35  ;;  %v2117_v45 = vadd.f32 %v2116_v42, %v4504_v18 }
 0x2c7   : > { %2379 = vmatmul.mubr.bf16.gmra.mrb[124].mxu1 %v1927_v43 }
 0x2c8   : > { %2781 = vst [vmem:[%s4514_s11 + $0x40] sm:$0xff] %v3165_v44  ;;  %v3166_v0 = vpack.c.bf16 %v2117_v45, %v2115_v41 }
 0x2ca   : > { %2782 = vst [vmem:[%s4514_s11 + $0x48] sm:$0xff] %v3166_v0  ;;  %v2120_v46 = vpop.f32.mrb[20].mxu1 }
 0x2cb   : > { %v2121_v47 = vadd.f32 %v2120_v46, %v4500_v15  ;;  %v2122_v48 = vpop.f32.mrb[21].mxu1 }
 0x2cc   : > { %v2123_v49 = vadd.f32 %v2122_v48, %v4504_v18  ;;  %v2124_v50 = vpop.f32.mrb[22].mxu1 }
 0x2cd   : > { %v2125_v51 = vadd.f32 %v2124_v50, %v4500_v15  ;;  %v2126_v52 = vpop.f32.mrb[23].mxu1 }
 0x2ce   : > { %v3167_v53 = vpack.c.bf16 %v2123_v49, %v2121_v47  ;;  %v2127_v54 = vadd.f32 %v2126_v52, %v4504_v18 }
 0x2d0   : > { %2783 = vst [vmem:[%s4514_s11 + $0x50] sm:$0xff] %v3167_v53  ;;  %v3168_v55 = vpack.c.bf16 %v2127_v54, %v2125_v51 }
 0x2d2   : > { %2784 = vst [vmem:[%s4514_s11 + $0x58] sm:$0xff] %v3168_v55  ;;  %v2130_v10 = vpop.f32.mrb[24].mxu1 }
 0x2d3   : > { %v2131_v56 = vadd.f32 %v2130_v10, %v4500_v15  ;;  %v2132_v57 = vpop.f32.mrb[25].mxu1 }
 0x2d4   : > { %v2133_v58 = vadd.f32 %v2132_v57, %v4504_v18  ;;  %v2134_v59 = vpop.f32.mrb[26].mxu1 }
 0x2d5   : > { %v2135_v60 = vadd.f32 %v2134_v59, %v4500_v15  ;;  %v2136_v61 = vpop.f32.mrb[27].mxu1 }
 0x2d6   : > { %v3169_v62 = vpack.c.bf16 %v2133_v58, %v2131_v56  ;;  %v2137_v63 = vadd.f32 %v2136_v61, %v4504_v18 }
 0x2d8   : > { %2785 = vst [vmem:[%s4514_s11 + $0x60] sm:$0xff] %v3169_v62  ;;  %v3170_v1 = vpack.c.bf16 %v2137_v63, %v2135_v60 }
 0x2da   : > { %2786 = vst [vmem:[%s4514_s11 + $0x68] sm:$0xff] %v3170_v1  ;;  %v2140_v2 = vpop.f32.mrb[28].mxu1 }
 0x2db   : > { %v2141_v3 = vadd.f32 %v2140_v2, %v4500_v15  ;;  %v2142_v4 = vpop.f32.mrb[29].mxu1 }
 0x2dc   : > { %v2143_v5 = vadd.f32 %v2142_v4, %v4504_v18  ;;  %v2144_v7 = vpop.f32.mrb[30].mxu1 }
 0x2dd   : > { %v2145_v9 = vadd.f32 %v2144_v7, %v4500_v15  ;;  %v2146_v19 = vpop.f32.mrb[31].mxu1 }
 0x2de   : > { %v3171_v11 = vpack.c.bf16 %v2143_v5, %v2141_v3  ;;  %v2147_v32 = vadd.f32 %v2146_v19, %v4504_v18 }
 0x2e0   : > { %2787 = vst [vmem:[%s4514_s11 + $0x70] sm:$0xff] %v3171_v11  ;;  %v3172_v12 = vpack.c.bf16 %v2147_v32, %v2145_v9 }
 0x2e2   : > { %2788 = vst [vmem:[%s4514_s11 + $0x78] sm:$0xff] %v3172_v12  ;;  %v2150_v13 = vpop.f32.mrb[32].mxu1 }
 0x2e3   : > { %v2151_v14 = vadd.f32 %v2150_v13, %v4500_v15  ;;  %v2152_v16 = vpop.f32.mrb[33].mxu1 }
 0x2e4   : > { %v2153_v17 = vadd.f32 %v2152_v16, %v4504_v18  ;;  %v2154_v20 = vpop.f32.mrb[34].mxu1 }
 0x2e5   : > { %v2155_v21 = vadd.f32 %v2154_v20, %v4500_v15  ;;  %v2156_v22 = vpop.f32.mrb[35].mxu1 }
 0x2e6   : > { %v3173_v23 = vpack.c.bf16 %v2153_v17, %v2151_v14  ;;  %v2157_v24 = vadd.f32 %v2156_v22, %v4504_v18 }
 0x2e8   : > { %2789 = vst [vmem:[%s4514_s11 + $0x80] sm:$0xff] %v3173_v23  ;;  %v3174_v25 = vpack.c.bf16 %v2157_v24, %v2155_v21 }
 0x2ea   : > { %2790 = vst [vmem:[%s4514_s11 + $0x88] sm:$0xff] %v3174_v25  ;;  %v2160_v31 = vpop.f32.mrb[36].mxu1 }
 0x2eb   : > { %v2161_v26 = vadd.f32 %v2160_v31, %v4500_v15  ;;  %v2162_v27 = vpop.f32.mrb[37].mxu1 }
 0x2ec   : > { %v2163_v6 = vadd.f32 %v2162_v27, %v4504_v18  ;;  %v2164_v8 = vpop.f32.mrb[38].mxu1 }
 0x2ed   : > { %v2165_v28 = vadd.f32 %v2164_v8, %v4500_v15  ;;  %v2166_v29 = vpop.f32.mrb[39].mxu1 }
 0x2ee   : > { %v3175_v30 = vpack.c.bf16 %v2163_v6, %v2161_v26  ;;  %v2167_v37 = vadd.f32 %v2166_v29, %v4504_v18 }
 0x2f0   : > { %2791 = vst [vmem:[%s4514_s11 + $0x90] sm:$0xff] %v3175_v30  ;;  %v3176_v33 = vpack.c.bf16 %v2167_v37, %v2165_v28 }
 0x2f2   : > { %2792 = vst [vmem:[%s4514_s11 + $0x98] sm:$0xff] %v3176_v33  ;;  %v2170_v34 = vpop.f32.mrb[40].mxu1 }
 0x2f3   : > { %v2171_v35 = vadd.f32 %v2170_v34, %v4500_v15  ;;  %v2172_v36 = vpop.f32.mrb[41].mxu1 }
 0x2f4   : > { %v2173_v38 = vadd.f32 %v2172_v36, %v4504_v18  ;;  %v2174_v39 = vpop.f32.mrb[42].mxu1 }
 0x2f5   : > { %v2175_v40 = vadd.f32 %v2174_v39, %v4500_v15  ;;  %v2176_v41 = vpop.f32.mrb[43].mxu1 }
 0x2f6   : > { %v3177_v42 = vpack.c.bf16 %v2173_v38, %v2171_v35  ;;  %v2177_v43 = vadd.f32 %v2176_v41, %v4504_v18 }
 0x2f8   : > { %2793 = vst [vmem:[%s4514_s11 + $0xa0] sm:$0xff] %v3177_v42  ;;  %v3178_v44 = vpack.c.bf16 %v2177_v43, %v2175_v40 }
 0x2fa   : > { %2794 = vst [vmem:[%s4514_s11 + $0xa8] sm:$0xff] %v3178_v44  ;;  %v2180_v45 = vpop.f32.mrb[44].mxu1 }
 0x2fb   : > { %v2181_v0 = vadd.f32 %v2180_v45, %v4500_v15  ;;  %v2182_v46 = vpop.f32.mrb[45].mxu1 }
 0x2fc   : > { %v2183_v47 = vadd.f32 %v2182_v46, %v4504_v18  ;;  %v2184_v48 = vpop.f32.mrb[46].mxu1 }
 0x2fd   : > { %v2185_v49 = vadd.f32 %v2184_v48, %v4500_v15  ;;  %v2186_v50 = vpop.f32.mrb[47].mxu1 }
 0x2fe   : > { %v3179_v51 = vpack.c.bf16 %v2183_v47, %v2181_v0  ;;  %v2187_v52 = vadd.f32 %v2186_v50, %v4504_v18 }
 0x300   : > { %2795 = vst [vmem:[%s4514_s11 + $0xb0] sm:$0xff] %v3179_v51  ;;  %v3180_v53 = vpack.c.bf16 %v2187_v52, %v2185_v49 }
 0x302   : > { %2796 = vst [vmem:[%s4514_s11 + $0xb8] sm:$0xff] %v3180_v53  ;;  %v2190_v54 = vpop.f32.mrb[48].mxu1 }
 0x303   : > { %v2191_v55 = vadd.f32 %v2190_v54, %v4500_v15  ;;  %v2192_v10 = vpop.f32.mrb[49].mxu1 }
 0x304   : > { %v2193_v56 = vadd.f32 %v2192_v10, %v4504_v18  ;;  %v2194_v57 = vpop.f32.mrb[50].mxu1 }
 0x305   : > { %v2195_v58 = vadd.f32 %v2194_v57, %v4500_v15  ;;  %v2196_v59 = vpop.f32.mrb[51].mxu1 }
 0x306   : > { %v3181_v60 = vpack.c.bf16 %v2193_v56, %v2191_v55  ;;  %v2197_v61 = vadd.f32 %v2196_v59, %v4504_v18 }
 0x308   : > { %2797 = vst [vmem:[%s4514_s11 + $0xc0] sm:$0xff] %v3181_v60  ;;  %v3182_v62 = vpack.c.bf16 %v2197_v61, %v2195_v58 }
 0x30a   : > { %2798 = vst [vmem:[%s4514_s11 + $0xc8] sm:$0xff] %v3182_v62  ;;  %v2200_v63 = vpop.f32.mrb[52].mxu1 }
 0x30b   : > { %v2201_v1 = vadd.f32 %v2200_v63, %v4500_v15  ;;  %v2202_v2 = vpop.f32.mrb[53].mxu1 }
 0x30c   : > { %v2203_v3 = vadd.f32 %v2202_v2, %v4504_v18  ;;  %v2204_v4 = vpop.f32.mrb[54].mxu1 }
 0x30d   : > { %v2205_v5 = vadd.f32 %v2204_v4, %v4500_v15  ;;  %v2206_v7 = vpop.f32.mrb[55].mxu1 }
 0x30e   : > { %v3183_v9 = vpack.c.bf16 %v2203_v3, %v2201_v1  ;;  %v2207_v19 = vadd.f32 %v2206_v7, %v4504_v18 }
 0x310   : > { %2799 = vst [vmem:[%s4514_s11 + $0xd0] sm:$0xff] %v3183_v9  ;;  %v3184_v11 = vpack.c.bf16 %v2207_v19, %v2205_v5 }
 0x312   : > { %2800 = vst [vmem:[%s4514_s11 + $0xd8] sm:$0xff] %v3184_v11  ;;  %v2210_v32 = vpop.f32.mrb[56].mxu1 }
 0x313   : > { %v2211_v12 = vadd.f32 %v2210_v32, %v4500_v15  ;;  %v2212_v13 = vpop.f32.mrb[57].mxu1 }
 0x314   : > { %v2213_v14 = vadd.f32 %v2212_v13, %v4504_v18  ;;  %v2214_v16 = vpop.f32.mrb[58].mxu1 }
 0x315   : > { %v2215_v17 = vadd.f32 %v2214_v16, %v4500_v15  ;;  %v2216_v20 = vpop.f32.mrb[59].mxu1 }
 0x316   : > { %v3185_v21 = vpack.c.bf16 %v2213_v14, %v2211_v12  ;;  %v2217_v22 = vadd.f32 %v2216_v20, %v4504_v18 }
 0x318   : > { %2801 = vst [vmem:[%s4514_s11 + $0xe0] sm:$0xff] %v3185_v21  ;;  %v3186_v23 = vpack.c.bf16 %v2217_v22, %v2215_v17 }
 0x31a   : > { %2802 = vst [vmem:[%s4514_s11 + $0xe8] sm:$0xff] %v3186_v23  ;;  %v2220_v24 = vpop.f32.mrb[60].mxu1 }
 0x31b   : > { %v2221_v25 = vadd.f32 %v2220_v24, %v4500_v15  ;;  %v2222_v31 = vpop.f32.mrb[61].mxu1 }
 0x31c   : > { %v2223_v26 = vadd.f32 %v2222_v31, %v4504_v18  ;;  %v2224_v27 = vpop.f32.mrb[62].mxu1 }
 0x31d   : > { %v2225_v6 = vadd.f32 %v2224_v27, %v4500_v15  ;;  %v2226_v8 = vpop.f32.mrb[63].mxu1 }
 0x31e   : > { %v3187_v28 = vpack.c.bf16 %v2223_v26, %v2221_v25  ;;  %v2227_v29 = vadd.f32 %v2226_v8, %v4504_v18 }
 0x320   : > { %2803 = vst [vmem:[%s4514_s11 + $0xf0] sm:$0xff] %v3187_v28  ;;  %v3188_v30 = vpack.c.bf16 %v2227_v29, %v2225_v6 }
 0x322   : > { %2804 = vst [vmem:[%s4514_s11 + $0xf8] sm:$0xff] %v3188_v30  ;;  %v2230_v37 = vpop.f32.mrb[64].mxu1 }
 0x323   : > { %v2231_v33 = vadd.f32 %v2230_v37, %v4500_v15  ;;  %v2232_v34 = vpop.f32.mrb[65].mxu1 }
 0x324   : > { %v2233_v35 = vadd.f32 %v2232_v34, %v4504_v18  ;;  %v2234_v36 = vpop.f32.mrb[66].mxu1 }
 0x325   : > { %v2235_v38 = vadd.f32 %v2234_v36, %v4500_v15  ;;  %v2236_v39 = vpop.f32.mrb[67].mxu1 }
 0x326   : > { %v3189_v40 = vpack.c.bf16 %v2233_v35, %v2231_v33  ;;  %v2237_v41 = vadd.f32 %v2236_v39, %v4504_v18 }
 0x328   : > { %2805 = vst [vmem:[%s4514_s11 + $0x100] sm:$0xff] %v3189_v40  ;;  %v3190_v42 = vpack.c.bf16 %v2237_v41, %v2235_v38 }
 0x32a   : > { %2806 = vst [vmem:[%s4514_s11 + $0x108] sm:$0xff] %v3190_v42  ;;  %v2240_v43 = vpop.f32.mrb[68].mxu1 }
 0x32b   : > { %v2241_v44 = vadd.f32 %v2240_v43, %v4500_v15  ;;  %v2242_v45 = vpop.f32.mrb[69].mxu1 }
 0x32c   : > { %v2243_v0 = vadd.f32 %v2242_v45, %v4504_v18  ;;  %v2244_v46 = vpop.f32.mrb[70].mxu1 }
 0x32d   : > { %v2245_v47 = vadd.f32 %v2244_v46, %v4500_v15  ;;  %v2246_v48 = vpop.f32.mrb[71].mxu1 }
 0x32e   : > { %v3191_v49 = vpack.c.bf16 %v2243_v0, %v2241_v44  ;;  %v2247_v50 = vadd.f32 %v2246_v48, %v4504_v18 }
 0x330   : > { %2807 = vst [vmem:[%s4514_s11 + $0x110] sm:$0xff] %v3191_v49  ;;  %v3192_v51 = vpack.c.bf16 %v2247_v50, %v2245_v47 }
 0x332   : > { %2808 = vst [vmem:[%s4514_s11 + $0x118] sm:$0xff] %v3192_v51  ;;  %v2250_v52 = vpop.f32.mrb[72].mxu1 }
 0x333   : > { %v2251_v53 = vadd.f32 %v2250_v52, %v4500_v15  ;;  %v2252_v54 = vpop.f32.mrb[73].mxu1 }
 0x334   : > { %v2253_v55 = vadd.f32 %v2252_v54, %v4504_v18  ;;  %v2254_v10 = vpop.f32.mrb[74].mxu1 }
 0x335   : > { %v2255_v56 = vadd.f32 %v2254_v10, %v4500_v15  ;;  %v2256_v57 = vpop.f32.mrb[75].mxu1 }
 0x336   : > { %v3193_v58 = vpack.c.bf16 %v2253_v55, %v2251_v53  ;;  %v2257_v59 = vadd.f32 %v2256_v57, %v4504_v18 }
 0x338   : > { %2809 = vst [vmem:[%s4514_s11 + $0x120] sm:$0xff] %v3193_v58  ;;  %v3194_v60 = vpack.c.bf16 %v2257_v59, %v2255_v56 }
 0x33a   : > { %2810 = vst [vmem:[%s4514_s11 + $0x128] sm:$0xff] %v3194_v60  ;;  %v2260_v61 = vpop.f32.mrb[76].mxu1 }
 0x33b   : > { %v2261_v62 = vadd.f32 %v2260_v61, %v4500_v15  ;;  %v2262_v63 = vpop.f32.mrb[77].mxu1 }
 0x33c   : > { %v2263_v1 = vadd.f32 %v2262_v63, %v4504_v18  ;;  %v2264_v2 = vpop.f32.mrb[78].mxu1 }
 0x33d   : > { %v2265_v3 = vadd.f32 %v2264_v2, %v4500_v15  ;;  %v2266_v4 = vpop.f32.mrb[79].mxu1 }
 0x33e   : > { %v3195_v5 = vpack.c.bf16 %v2263_v1, %v2261_v62  ;;  %v2267_v7 = vadd.f32 %v2266_v4, %v4504_v18 }
 0x340   : > { %2811 = vst [vmem:[%s4514_s11 + $0x130] sm:$0xff] %v3195_v5  ;;  %v3196_v9 = vpack.c.bf16 %v2267_v7, %v2265_v3 }
 0x342   : > { %2812 = vst [vmem:[%s4514_s11 + $0x138] sm:$0xff] %v3196_v9  ;;  %v2270_v19 = vpop.f32.mrb[80].mxu1 }
 0x343   : > { %v2271_v11 = vadd.f32 %v2270_v19, %v4500_v15  ;;  %v2272_v32 = vpop.f32.mrb[81].mxu1 }
 0x344   : > { %v2273_v12 = vadd.f32 %v2272_v32, %v4504_v18  ;;  %v2274_v13 = vpop.f32.mrb[82].mxu1 }
 0x345   : > { %v2275_v14 = vadd.f32 %v2274_v13, %v4500_v15  ;;  %v2276_v16 = vpop.f32.mrb[83].mxu1 }
 0x346   : > { %v3197_v17 = vpack.c.bf16 %v2273_v12, %v2271_v11  ;;  %v2277_v20 = vadd.f32 %v2276_v16, %v4504_v18 }
 0x348   : > { %2813 = vst [vmem:[%s4514_s11 + $0x140] sm:$0xff] %v3197_v17  ;;  %v3198_v21 = vpack.c.bf16 %v2277_v20, %v2275_v14 }
 0x34a   : > { %2814 = vst [vmem:[%s4514_s11 + $0x148] sm:$0xff] %v3198_v21  ;;  %v2280_v22 = vpop.f32.mrb[84].mxu1 }
 0x34b   : > { %v2281_v23 = vadd.f32 %v2280_v22, %v4500_v15  ;;  %v2282_v24 = vpop.f32.mrb[85].mxu1 }
 0x34c   : > { %v2283_v25 = vadd.f32 %v2282_v24, %v4504_v18  ;;  %v2284_v31 = vpop.f32.mrb[86].mxu1 }
 0x34d   : > { %v2285_v26 = vadd.f32 %v2284_v31, %v4500_v15  ;;  %v2286_v27 = vpop.f32.mrb[87].mxu1 }
 0x34e   : > { %v3199_v6 = vpack.c.bf16 %v2283_v25, %v2281_v23  ;;  %v2287_v8 = vadd.f32 %v2286_v27, %v4504_v18 }
 0x350   : > { %2815 = vst [vmem:[%s4514_s11 + $0x150] sm:$0xff] %v3199_v6  ;;  %v3200_v28 = vpack.c.bf16 %v2287_v8, %v2285_v26 }
 0x352   : > { %2816 = vst [vmem:[%s4514_s11 + $0x158] sm:$0xff] %v3200_v28  ;;  %v2290_v29 = vpop.f32.mrb[88].mxu1 }
 0x353   : > { %v2291_v30 = vadd.f32 %v2290_v29, %v4500_v15  ;;  %v2292_v37 = vpop.f32.mrb[89].mxu1 }
 0x354   : > { %v2293_v33 = vadd.f32 %v2292_v37, %v4504_v18  ;;  %v2294_v34 = vpop.f32.mrb[90].mxu1 }
 0x355   : > { %v2295_v35 = vadd.f32 %v2294_v34, %v4500_v15  ;;  %v2296_v36 = vpop.f32.mrb[91].mxu1 }
 0x356   : > { %v3201_v38 = vpack.c.bf16 %v2293_v33, %v2291_v30  ;;  %v2297_v39 = vadd.f32 %v2296_v36, %v4504_v18 }
 0x358   : > { %2817 = vst [vmem:[%s4514_s11 + $0x160] sm:$0xff] %v3201_v38  ;;  %v3202_v40 = vpack.c.bf16 %v2297_v39, %v2295_v35 }
 0x35a   : > { %2818 = vst [vmem:[%s4514_s11 + $0x168] sm:$0xff] %v3202_v40  ;;  %v2300_v41 = vpop.f32.mrb[92].mxu1 }
 0x35b   : > { %v2301_v42 = vadd.f32 %v2300_v41, %v4500_v15  ;;  %v2302_v43 = vpop.f32.mrb[93].mxu1 }
 0x35c   : > { %v2303_v44 = vadd.f32 %v2302_v43, %v4504_v18  ;;  %v2304_v45 = vpop.f32.mrb[94].mxu1 }
 0x35d   : > { %v2305_v0 = vadd.f32 %v2304_v45, %v4500_v15  ;;  %v2306_v46 = vpop.f32.mrb[95].mxu1 }
 0x35e   : > { %v3203_v47 = vpack.c.bf16 %v2303_v44, %v2301_v42  ;;  %v2307_v48 = vadd.f32 %v2306_v46, %v4504_v18 }
 0x360   : > { %2819 = vst [vmem:[%s4514_s11 + $0x170] sm:$0xff] %v3203_v47  ;;  %v3204_v49 = vpack.c.bf16 %v2307_v48, %v2305_v0 }
 0x362   : > { %2820 = vst [vmem:[%s4514_s11 + $0x178] sm:$0xff] %v3204_v49  ;;  %v2310_v50 = vpop.f32.mrb[96].mxu1 }
 0x363   : > { %v2311_v51 = vadd.f32 %v2310_v50, %v4500_v15  ;;  %v2312_v52 = vpop.f32.mrb[97].mxu1 }
 0x364   : > { %v2313_v53 = vadd.f32 %v2312_v52, %v4504_v18  ;;  %v2314_v54 = vpop.f32.mrb[98].mxu1 }
 0x365   : > { %v2315_v55 = vadd.f32 %v2314_v54, %v4500_v15  ;;  %v2316_v10 = vpop.f32.mrb[99].mxu1 }
 0x366   : > { %v3205_v56 = vpack.c.bf16 %v2313_v53, %v2311_v51  ;;  %v2317_v57 = vadd.f32 %v2316_v10, %v4504_v18 }
 0x368   : > { %2821 = vst [vmem:[%s4514_s11 + $0x180] sm:$0xff] %v3205_v56  ;;  %v3206_v58 = vpack.c.bf16 %v2317_v57, %v2315_v55 }
 0x36a   : > { %2822 = vst [vmem:[%s4514_s11 + $0x188] sm:$0xff] %v3206_v58  ;;  %v2320_v59 = vpop.f32.mrb[100].mxu1 }
 0x36b   : > { %v2321_v60 = vadd.f32 %v2320_v59, %v4500_v15  ;;  %v2322_v61 = vpop.f32.mrb[101].mxu1 }
 0x36c   : > { %v2323_v62 = vadd.f32 %v2322_v61, %v4504_v18  ;;  %v2324_v63 = vpop.f32.mrb[102].mxu1 }
 0x36d   : > { %v2325_v1 = vadd.f32 %v2324_v63, %v4500_v15  ;;  %v2326_v2 = vpop.f32.mrb[103].mxu1 }
 0x36e   : > { %v3207_v3 = vpack.c.bf16 %v2323_v62, %v2321_v60  ;;  %v2327_v4 = vadd.f32 %v2326_v2, %v4504_v18 }
 0x370   : > { %2823 = vst [vmem:[%s4514_s11 + $0x190] sm:$0xff] %v3207_v3  ;;  %v3208_v5 = vpack.c.bf16 %v2327_v4, %v2325_v1 }
 0x372   : > { %2824 = vst [vmem:[%s4514_s11 + $0x198] sm:$0xff] %v3208_v5  ;;  %v2330_v7 = vpop.f32.mrb[104].mxu1 }
 0x373   : > { %v2331_v9 = vadd.f32 %v2330_v7, %v4500_v15  ;;  %v2332_v19 = vpop.f32.mrb[105].mxu1 }
 0x374   : > { %v2333_v11 = vadd.f32 %v2332_v19, %v4504_v18  ;;  %v2334_v32 = vpop.f32.mrb[106].mxu1 }
 0x375   : > { %v2335_v12 = vadd.f32 %v2334_v32, %v4500_v15  ;;  %v2336_v13 = vpop.f32.mrb[107].mxu1 }
 0x376   : > { %v3209_v14 = vpack.c.bf16 %v2333_v11, %v2331_v9  ;;  %v2337_v16 = vadd.f32 %v2336_v13, %v4504_v18 }
 0x378   : > { %2825 = vst [vmem:[%s4514_s11 + $0x1a0] sm:$0xff] %v3209_v14  ;;  %v3210_v17 = vpack.c.bf16 %v2337_v16, %v2335_v12 }
 0x37a   : > { %2826 = vst [vmem:[%s4514_s11 + $0x1a8] sm:$0xff] %v3210_v17  ;;  %v2340_v20 = vpop.f32.mrb[108].mxu1 }
 0x37b   : > { %v2341_v21 = vadd.f32 %v2340_v20, %v4500_v15  ;;  %v2342_v22 = vpop.f32.mrb[109].mxu1 }
 0x37c   : > { %v2343_v23 = vadd.f32 %v2342_v22, %v4504_v18  ;;  %v2344_v24 = vpop.f32.mrb[110].mxu1 }
 0x37d   : > { %v2345_v25 = vadd.f32 %v2344_v24, %v4500_v15  ;;  %v2346_v31 = vpop.f32.mrb[111].mxu1 }
 0x37e   : > { %v3211_v26 = vpack.c.bf16 %v2343_v23, %v2341_v21  ;;  %v2347_v27 = vadd.f32 %v2346_v31, %v4504_v18 }
 0x380   : > { %2827 = vst [vmem:[%s4514_s11 + $0x1b0] sm:$0xff] %v3211_v26  ;;  %v3212_v6 = vpack.c.bf16 %v2347_v27, %v2345_v25 }
 0x382   : > { %2828 = vst [vmem:[%s4514_s11 + $0x1b8] sm:$0xff] %v3212_v6  ;;  %v2350_v8 = vpop.f32.mrb[112].mxu1 }
 0x383   : > { %v2351_v28 = vadd.f32 %v2350_v8, %v4500_v15  ;;  %v2352_v29 = vpop.f32.mrb[113].mxu1 }
 0x384   : > { %v2353_v30 = vadd.f32 %v2352_v29, %v4504_v18  ;;  %v2354_v37 = vpop.f32.mrb[114].mxu1 }
 0x385   : > { %v2355_v33 = vadd.f32 %v2354_v37, %v4500_v15  ;;  %v2356_v34 = vpop.f32.mrb[115].mxu1 }
 0x386   : > { %v3213_v35 = vpack.c.bf16 %v2353_v30, %v2351_v28  ;;  %v2357_v36 = vadd.f32 %v2356_v34, %v4504_v18 }
 0x388   : > { %2829 = vst [vmem:[%s4514_s11 + $0x1c0] sm:$0xff] %v3213_v35  ;;  %v3214_v38 = vpack.c.bf16 %v2357_v36, %v2355_v33 }
 0x38a   : > { %2830 = vst [vmem:[%s4514_s11 + $0x1c8] sm:$0xff] %v3214_v38  ;;  %v2360_v39 = vpop.f32.mrb[116].mxu1 }
 0x38b   : > { %v2361_v40 = vadd.f32 %v2360_v39, %v4500_v15  ;;  %v2362_v41 = vpop.f32.mrb[117].mxu1 }
 0x38c   : > { %v2363_v42 = vadd.f32 %v2362_v41, %v4504_v18  ;;  %v2364_v43 = vpop.f32.mrb[118].mxu1 }
 0x38d   : > { %v2365_v44 = vadd.f32 %v2364_v43, %v4500_v15  ;;  %v2366_v45 = vpop.f32.mrb[119].mxu1 }
 0x38e   : > { %v3215_v0 = vpack.c.bf16 %v2363_v42, %v2361_v40  ;;  %v2367_v46 = vadd.f32 %v2366_v45, %v4504_v18 }
 0x390   : > { %2831 = vst [vmem:[%s4514_s11 + $0x1d0] sm:$0xff] %v3215_v0  ;;  %v3216_v47 = vpack.c.bf16 %v2367_v46, %v2365_v44 }
 0x392   : > { %2832 = vst [vmem:[%s4514_s11 + $0x1d8] sm:$0xff] %v3216_v47  ;;  %v2370_v48 = vpop.f32.mrb[120].mxu1 }
 0x393   : > { %v2371_v49 = vadd.f32 %v2370_v48, %v4500_v15  ;;  %v2372_v50 = vpop.f32.mrb[121].mxu1 }
 0x394   : > { %v2373_v51 = vadd.f32 %v2372_v50, %v4504_v18  ;;  %v2374_v52 = vpop.f32.mrb[122].mxu1 }
 0x395   : > { %v2375_v53 = vadd.f32 %v2374_v52, %v4500_v15  ;;  %v2376_v54 = vpop.f32.mrb[123].mxu1 }
 0x396   : > { %v3217_v55 = vpack.c.bf16 %v2373_v51, %v2371_v49  ;;  %v2377_v10 = vadd.f32 %v2376_v54, %v4504_v18 }
 0x398   : > { %2833 = vst [vmem:[%s4514_s11 + $0x1e0] sm:$0xff] %v3217_v55  ;;  %v3218_v56 = vpack.c.bf16 %v2377_v10, %v2375_v53 }
 0x39a   : > { %2834 = vst [vmem:[%s4514_s11 + $0x1e8] sm:$0xff] %v3218_v56  ;;  %v2380_v57 = vpop.f32.mrb[124].mxu1 }
 0x39b   : > { %v2381_v58 = vadd.f32 %v2380_v57, %v4500_v15  ;;  %v2382_v59 = vpop.f32.mrb[125].mxu1 }
 0x39c   : > { %v2383_v60 = vadd.f32 %v2382_v59, %v4504_v18  ;;  %v2384_v61 = vpop.f32.mrb[126].mxu1 }
 0x39d   : > { %v2385_v62 = vadd.f32 %v2384_v61, %v4500_v15  ;;  %v2386_v63 = vpop.f32.mrb[127].mxu1 }
 0x39e   : > { %v3219_v1 = vpack.c.bf16 %v2383_v60, %v2381_v58  ;;  %v2387_v2 = vadd.f32 %v2386_v63, %v4504_v18 }
 0x3a0   : > { %2835 = vst [vmem:[%s4514_s11 + $0x1f0] sm:$0xff] %v3219_v1  ;;  %v3220_v3 = vpack.c.bf16 %v2387_v2, %v2385_v62 }
 0x3a2   : > { %2836 = vst [vmem:[%s4514_s11 + $0x1f8] sm:$0xff] %v3220_v3 }
 0x3a3   : > { %3728 = shalt.err (!%p3725_p5)
}
 0x3a4   : > { %s3729_s21 = scalar_lea.hbm %s4712_s18, 8192  ;;  %s3733_s5 = scalar_lea.hbm %s4767_s7, 16384 }
 0x3a5   : > { %p3730_p9 = scmp.ne.s32.totalorder %s4712_s18, %s3729_s21  ;;  %p3734_p11 = scmp.lt.u32.totalorder %s4712_s18, %s4767_s7 }
 0x3a6   : > { %p3735_p1 = scmp.lt.u32.totalorder %s3733_s5, %s3729_s21  ;;  %p3737_p2 = scmp.lt.u32.totalorder %s3729_s21, %s4712_s18 }
 0x3a7   : > { %p3731_p0 = pnand %p3730_p9, %p4796_p13 }
 0x3a8   : > { %p3736_p12 = por %p3735_p1, %p3734_p11 }
 0x3a9   : > { %p3732_p8 = pneg %p3731_p0 }
 0x3aa   : > { %p3738_p6 = por %p3737_p2, %p3736_p12 }
 0x3ac   : > { %p3739_p10 = pnand %p3738_p6, %p3732_p8 }
 0x3ae   : > { %3742 = shalt.err (!%p3739_p10)
}
 0x3af   : > { %s3805_s3 = smov 128   ;;  %s3806_s11 = smov 8  }
 0x3b0   : > { %3235 = dma.vmem_to_hbm [thread:$0]  (%p4796_p13), %s4714_s0, 8192, %s4712_s18, %s2838_s28, %s3805_s3, %s3805_s3, %s3806_s11  }
 0x3b1 PF: > { %s2867_s10 = sand.u32 1, %s3781_s24   ;;  %p4797_p4 = scmp.ne.s32.totalorder %s4779_s8, 0 }
 0x3b2   : > { %p4798_p7 = scmp.ge.s32.totalorder %s3793_s27, 2  ;;  %s2868_s14 = scalar_lea.sflag [#allocation4], %s2867_s10 }
 0x3b4   : > { %p3252_p3 = pnand %p4798_p7, %p4797_p4 }
 0x3b6   : > { %3776 = dma.done.wait (!%p3252_p3), %s2868_s14, 8192  }
 0x3b7   : > { %3778 = vsyncadd (!%p3252_p3), %s2868_s14, 4294959104  ;;  %s4799_s15 = sld [smem:[#allocation16_spill]]  ;;  %p24_p5 = scmp.ge.s32.totalorder %s3960_s13, 4  }
 0x3b8   : > { %s4800_s24 = smov %s3785_s25  ;;  %s4801_s25 = smov %s3789_s26 }
 0x3b9   : > { %s4803_s27 = smov %s3960_s13  ;;  %26 = sbr.rel (!%p24_p5) target bundleno = 12 (0xc), region = 114 }
 0x3bd   : > { %s4802_s26 = smov %s4799_s15 }
 0x3c0   :  { %2873 = vsyncpa [#allocation3], 1 }
 0x3c1   :  { %2875 = vsyncpa [#allocation3 + $0x1], 1 }
 0x3c2   :  { %2876 = vsyncpa [#allocation6], 1 }
 0x3c3   :  { %2878 = vsyncpa [#allocation6 + $0x1], 1 }
 0x3c4   :  { %2879 = vsyncpa [#allocation9], 1 }
 0x3c5   :  { %2880 = vsyncpa [#allocation4], 1 }
 0x3c6   :  { %2882 = vsyncpa [#allocation4 + $0x1], 1 }

</bundles_post_ra>
